<compile_context>
chip_gen: v7x
topology: tpu7x:2x2x1
jax: 0.10.0
libtpu: 0.0.40
codegen_flags: <defaults>
</compile_context>

<pallas_src>
import functools

import numpy as np

import jax
import jax.numpy as jnp
from jax import lax
from jax.experimental import pallas as pl
from jax.experimental.pallas import tpu as pltpu


# ----------------------------- Pallas kernels -----------------------------

def conv_bn_kernel(x_ref, w_ref, s_ref, o_ref, a_scr, *, width):
    """One (batch-tile, group) block of a 3x3 'same' grouped conv + BN.

    x_ref : (Bt, Cin_g, H*W + 2*(W+1)) f32   flat input with a (W+1) zero halo
    w_ref : (Cout_g, 9*Cin_g)          bf16  BN scale folded in, tap-major
    s_ref : (Cout_g, 1)                f32   BN shift
    o_ref : (Bt, Cout_g, H*W)          f32   channel-major, lane-dense spatial
    a_scr : (9*Cin_g, Bt*H*W)          bf16  im2col tile, batch on the lane axis
    """
    bt, cg_in, _ = x_ref.shape
    hw = o_ref.shape[-1]

    # Column-edge masks hoisted out of the 9-tap loop (computed once per step).
    col = lax.broadcasted_iota(jnp.int32, (1, 1, hw), 2) % width
    left = col == 0
    right = col == width - 1

    # Build the im2col tile in VMEM: each 3x3 tap is a static lane-offset slice
    # of the flat-padded input (the +/-1 row taps are absorbed by the zero
    # halo; the column wrap-around of the +/-1 column taps is masked).  Batch
    # is folded onto the lane axis so ONE MXU matmul covers the whole step.
    for t in range(9):
        dh, dw = t // 3 - 1, t % 3 - 1
        off = (dh + 1) * width + (dw + 1)
        xs = x_ref[:, :, off:off + hw]                 # (Bt, Cin_g, HW) f32
        if dw == -1:
            xs = jnp.where(left, 0.0, xs)
        elif dw == 1:
            xs = jnp.where(right, 0.0, xs)
        xs = xs.astype(jnp.bfloat16)
        for bb in range(bt):
            a_scr[t * cg_in:(t + 1) * cg_in, bb * hw:(bb + 1) * hw] = xs[bb]

    # Single fused MXU matmul: (Cout_g, K) x (K, Bt*HW), f32 accumulation.
    res = lax.dot_general(w_ref[...], a_scr[...], (((1,), (0,)), ((), ())),
                          preferred_element_type=jnp.float32)
    shift = s_ref[...]                                 # (Cout_g, 1)
    for bb in range(bt):                               # lane-dense stores
        o_ref[bb] = res[:, bb * hw:(bb + 1) * hw] + shift


def rel_patch_attn_kernel(q_ref, k_ref, v_ref, pidx_ref, wlin_ref, blin_ref,
                          o_ref):
    """Relative patch attention for a block of Bt batches.

    q/k : (Bt, P, D) f32 patched; v: (Bt, Cout, HW) f32 raster (conv layout)
    pidx: (Cout, HW) int32 patch index of every (channel, pixel) position
    wlin: (1, P); blin: (1, 1); out: (Bt, Cout, HW) raster.
      sim[b, pk, pq] = Tanimoto(sigmoid(q[b, pq]), sigmoid(k[b, pk]))
      wgt[b, pk]     = sum_pq sim[b, pk, pq] * W[pq] + bias     (shrink_2_1)
      out[b, c, s]   = sigmoid(wgt[b, pidx[c, s]] * v[b, c, s])
    """
    eps = 1e-5
    # TODO(synk): D2Sigmoid source not provided; scale=False interpreted as a
    # plain elementwise sigmoid.
    q = jax.nn.sigmoid(q_ref[...])                     # (Bt, P, D) f32
    k = jax.nn.sigmoid(k_ref[...])
    bt, p, d = q.shape

    # qk on the MXU in bf16 (f32 accumulation), key-major so every later
    # broadcast / reduction is a natural lane-axis op.
    qk = lax.dot_general(k.astype(jnp.bfloat16), q.astype(jnp.bfloat16),
                         (((2,), (2,)), ((0,), (0,))),
                         preferred_element_type=jnp.float32)     # (Bt, Pk, Pq)
    # Squared norms as exact f32 lane reductions (VPU/XLU; MXU stays free).
    kk = jnp.sum(k * k, axis=-1, keepdims=True)                  # (Bt, Pk, 1)
    qq = jnp.sum(q * q, axis=-1)[:, None, :]                     # (Bt, 1, Pq)

    sim = (qk + eps) / (qq + kk - qk + eps)                      # (Bt, Pk, Pq)

    # shrink_2_1 over query patches: VPU multiply + lane reduce.
    wgt = jnp.sum(sim * wlin_ref[...][None], axis=-1, keepdims=True)
    wgt = wgt + blin_ref[0, 0]                                   # (Bt, Pk, 1)

    # Fused epilogue on the raster-layout v: broadcast the per-patch weight
    # with P selects (VPU filler hidden under the v/out DMA) -- no patchify
    # round trip for v or for the output.
    v = v_ref[...]                                               # (Bt, Cout, HW)
    pidx = pidx_ref[...][None]                                   # (1, Cout, HW)
    wmap = jnp.zeros_like(v)
    for pp in range(p):
        wmap = jnp.where(pidx == pp, wgt[:, pp:pp + 1, :], wmap)
    o_ref[...] = jax.nn.sigmoid(wmap * v)


# ------------------------------ JAX glue ----------------------------------

def _vmem_budget_bytes():
    # Generation-aware VMEM budget for block sizing (v5e/v6e: 128 MiB physical,
    # v7x: 64 MiB).  Keep the double-buffered blocks within ~1/4 of physical.
    try:
        cap = pltpu.get_tpu_info().vmem_capacity_bytes
    except Exception:
        cap = 128 * 1024 * 1024
    return min(cap // 4, 24 * 1024 * 1024)


def _pick_batch_tile(b, per_batch_bytes, cap, *, ensure_two_steps):
    bt = max(1, min(cap, b, _vmem_budget_bytes() // max(per_batch_bytes, 1)))
    if ensure_two_steps and b >= 2:
        # >= 2 grid steps so dimension_semantics="parallel" can shard across
        # both v7x TensorCores.
        bt = min(bt, pl.cdiv(b, 2))
    return bt


def conv2d_bn(x, weight, bn, *, groups, bn_eps=1e-5, max_batch_block=8):
    """3x3 'same' grouped conv + inference BatchNorm as one gridded Pallas call.

    Returns a channel-major (B, groups, Cout_g, H*W) tensor (lane-dense).
    """
    # TODO(synk): Conv2DNormed source not provided; assumed Conv2d(bias=False)
    # followed by BatchNorm2d in inference mode.
    gamma, beta, mean, var = bn
    b, cin, h, w = x.shape
    cout = weight.shape[0]
    cg_in, cg_out = cin // groups, cout // groups
    hw = h * w
    hwp = hw + 2 * (w + 1)
    kdim = 9 * cg_in

    inv_std = gamma / jnp.sqrt(var + bn_eps)
    # Fold BN scale into the conv weight at trace time; reorder to tap-major
    # (kh, kw, cin_g) to match the in-kernel im2col rows; bf16 MXU operand.
    wmat = (weight * inv_std[:, None, None, None]).transpose(0, 2, 3, 1)
    wmat = wmat.reshape(groups, cg_out, kdim).astype(jnp.bfloat16)
    shift = (beta - mean * inv_std).reshape(groups, cg_out, 1).astype(jnp.float32)

    # Channel-major flat input with a (W+1) zero halo on both ends of the
    # flattened spatial axis: the 3x3 row shifts become pure lane offsets.
    xf = x.reshape(b, groups, cg_in, hw)
    xf = jnp.pad(xf, ((0, 0), (0, 0), (0, 0), (w + 1, w + 1)))

    per_batch = 2 * cg_in * hwp * 4 + 2 * cg_out * hw * 4 + kdim * hw * 2
    bt = _pick_batch_tile(b, per_batch, max_batch_block,
                          ensure_two_steps=(groups == 1))
    nb = pl.cdiv(b, bt)

    flops = 2 * b * cout * kdim * hw
    bytes_accessed = 4 * (b * cin * hwp + b * cout * hw) + 2 * cout * kdim

    out = pl.pallas_call(
        functools.partial(conv_bn_kernel, width=w),
        out_shape=jax.ShapeDtypeStruct((b, groups, cg_out, hw), jnp.float32),
        grid=(nb, groups),
        in_specs=[
            pl.BlockSpec((bt, None, cg_in, hwp), lambda m, g: (m, g, 0, 0)),
            pl.BlockSpec((None, cg_out, kdim), lambda m, g: (g, 0, 0)),
            pl.BlockSpec((None, cg_out, 1), lambda m, g: (g, 0, 0)),
        ],
        out_specs=pl.BlockSpec((bt, None, cg_out, hw),
                               lambda m, g: (m, g, 0, 0)),
        scratch_shapes=[pltpu.VMEM((kdim, bt * hw), jnp.bfloat16)],
        compiler_params=pltpu.CompilerParams(
            dimension_semantics=("parallel", "parallel"),
            vmem_limit_bytes=32 * 1024 * 1024),
        cost_estimate=pl.CostEstimate(
            flops=flops, transcendentals=0, bytes_accessed=bytes_accessed),
    )(xf, wmat, shift)
    return out                                   # (B, groups, Cout_g, H*W)


def _to_patches(x, sc, sh, sw):
    # matches torch unfold(1,c,c).unfold(2,h,h).unfold(3,w,w) -> (B,P,D)
    b, c, h, w = x.shape
    pc, ph, pw = c // sc, h // sh, w // sw
    x = x.reshape(b, sc, pc, sh, ph, sw, pw)
    x = x.transpose(0, 1, 3, 5, 2, 4, 6)
    return x.reshape(b, sc * sh * sw, pc * ph * pw)


def _from_patches(p, b, c, h, w, sc, sh, sw):
    # matches PatchifyCHW._2tensor (permute(0,1,4,2,5,3,6) + view)
    pc, ph, pw = c // sc, h // sh, w // sw
    p = p.reshape(b, sc, sh, sw, pc, ph, pw)
    p = p.transpose(0, 1, 4, 2, 5, 3, 6)
    return p.reshape(b, c, h, w)


def rel_patch_attention(qp, kp, kv, w_lin, b_lin, *, patch_dims,
                        max_batch_block=256):
    """Fused Tanimoto patch attention + shrink_2_1 + weighted-v epilogue.

    qp, kp : (B, P, D) patched (pre-sigmoid) query / key
    kv     : (B, 2, Cout, H*W) kv-conv output; group 1 (= v) is read directly
             by the kernel via its BlockSpec (no split / patchify copy).
    Returns the raster-layout output (B, Cout, H*W).
    """
    b, p, d = qp.shape
    _, _, cout, hw = kv.shape
    pc, sh, sw, ph, pw = patch_dims
    width = sw * pw

    wrow = w_lin.reshape(1, p).astype(jnp.float32)
    bmat = b_lin.reshape(1, 1).astype(jnp.float32)

    # Patch index of every (channel, pixel) position as a small constant array
    # (keeps integer div/mod out of the kernel).
    c_idx = np.arange(cout)[:, None] // pc
    hh = np.arange(hw)[None, :] // width
    ww = np.arange(hw)[None, :] % width
    pidx = (c_idx * (sh * sw) + (hh // ph) * sw + ww // pw).astype(np.int32)
    pidx = jnp.asarray(pidx)

    per_batch = 2 * (2 * p * d * 4) + 2 * (2 * cout * hw * 4)
    bt = _pick_batch_tile(b, per_batch, max_batch_block, ensure_two_steps=True)
    nb = pl.cdiv(b, bt)

    flops = b * (2 * p * p * d + 4 * p * d + 6 * p * p + 2 * cout * hw)
    out = pl.pallas_call(
        rel_patch_attn_kernel,
        out_shape=jax.ShapeDtypeStruct((b, cout, hw), jnp.float32),
        grid=(nb,),
        in_specs=[
            pl.BlockSpec((bt, p, d), lambda i: (i, 0, 0)),
            pl.BlockSpec((bt, p, d), lambda i: (i, 0, 0)),
            pl.BlockSpec((bt, None, cout, hw), lambda i: (i, 1, 0, 0)),  # v
            pl.BlockSpec((cout, hw), lambda i: (0, 0)),
            pl.BlockSpec((1, p), lambda i: (0, 0)),
            pl.BlockSpec((1, 1), lambda i: (0, 0)),
        ],
        out_specs=pl.BlockSpec((bt, cout, hw), lambda i: (i, 0, 0)),
        compiler_params=pltpu.CompilerParams(
            dimension_semantics=("parallel",),
            vmem_limit_bytes=32 * 1024 * 1024),
        cost_estimate=pl.CostEstimate(
            flops=flops, transcendentals=b * (2 * p * d + cout * hw),
            bytes_accessed=4 * b * (2 * p * d + 2 * cout * hw)),
    )(qp, kp, kv, pidx, wrow, bmat)
    return out                                   # (B, Cout, H*W)


def rel_patch_attention2d_forward(x1, x2, params, *, scales):
    b, _, h, w = x1.shape
    cout = params["w_q"].shape[0]
    sc, sp = scales
    pc, ph, pw = cout // sc, h // sp, w // sp

    # query conv (groups=nheads=1) and kv conv (groups=2): channel-major,
    # lane-dense outputs.  k and v stay packed in the kv-conv output; the
    # attention kernel reads v (group 1) straight from it and writes its
    # output back in the same raster layout (no _from_patches round trip).
    q = conv2d_bn(x1, params["w_q"], params["bn_q"], groups=1)
    kv = conv2d_bn(x2, params["w_kv"], params["bn_kv"], groups=2)

    # TODO(synk): q/k still go through one XLA patchify each (the qk MXU
    # contraction needs the (P, D) element pairing); folding this relayout
    # into the conv output store would remove the last extra HBM round trip.
    qp = _to_patches(q.reshape(b, cout, h, w), sc, sp, sp)
    kp = _to_patches(kv[:, 0].reshape(b, cout, h, w), sc, sp, sp)

    out = rel_patch_attention(qp, kp, kv, params["w_lin"], params["b_lin"],
                              patch_dims=(pc, sp, sp, ph, pw))
    return out.reshape(b, cout, h, w)


# -------------------------- params / reference ----------------------------

def init_params(key, in_channels, out_channels, scales):
    p = scales[0] * scales[1] ** 2
    ks = jax.random.split(key, 6)
    w_q = 0.1 * jax.random.normal(ks[0], (out_channels, in_channels, 3, 3),
                                  jnp.float32)
    w_kv = 0.1 * jax.random.normal(ks[1], (2 * out_channels, in_channels // 2,
                                           3, 3), jnp.float32)

    def bn(kk, n):
        k1, k2, k3, k4 = jax.random.split(kk, 4)
        gamma = 1.0 + 0.1 * jax.random.normal(k1, (n,), jnp.float32)
        beta = 0.1 * jax.random.normal(k2, (n,), jnp.float32)
        mean = 0.1 * jax.random.normal(k3, (n,), jnp.float32)
        var = 1.0 + 0.1 * jnp.abs(jax.random.normal(k4, (n,), jnp.float32))
        return gamma, beta, mean, var

    bn_q = bn(ks[2], out_channels)
    bn_kv = bn(ks[3], 2 * out_channels)
    w_lin = jax.random.normal(ks[4], (1, p), jnp.float32) / jnp.sqrt(p)
    b_lin = 0.1 * jax.random.normal(ks[5], (1,), jnp.float32)
    return dict(w_q=w_q, w_kv=w_kv, bn_q=bn_q, bn_kv=bn_kv,
                w_lin=w_lin, b_lin=b_lin)


def reference_forward(x1, x2, params, scales):
    """Pure-JAX reference mirroring the PyTorch forward (for validation)."""
    def conv_bn_ref(x, w, bn, groups):
        gamma, beta, mean, var = bn
        out = lax.conv_general_dilated(
            x, w, window_strides=(1, 1), padding=((1, 1), (1, 1)),
            dimension_numbers=("NCHW", "OIHW", "NCHW"),
            feature_group_count=groups)
        s = gamma / jnp.sqrt(var + 1e-5)
        return out * s[None, :, None, None] + (beta - mean * s)[None, :, None, None]

    q = jax.nn.sigmoid(conv_bn_ref(x1, params["w_q"], params["bn_q"], 1))
    kv = conv_bn_ref(x2, params["w_kv"], params["bn_kv"], 2)
    cout = q.shape[1]
    k = jax.nn.sigmoid(kv[:, :cout])
    v = kv[:, cout:]
    sc, sp = scales
    qp, kp, vp = (_to_patches(t, sc, sp, sp) for t in (q, k, v))
    eps = 1e-5
    qk = jnp.einsum("bpd,bqd->bpq", qp, kp)
    qq = jnp.sum(qp * qp, axis=-1)
    kk = jnp.sum(kp * kp, axis=-1)
    sim = (qk + eps) / (qq[:, :, None] + kk[:, None, :] - qk + eps)
    weight = jnp.einsum("bpq,p->bq", sim,
                        params["w_lin"].reshape(-1)) + params["b_lin"][0]
    outp = weight[:, :, None] * vp
    b, c, h, w = q.shape
    return jax.nn.sigmoid(_from_patches(outp, b, c, h, w, sc, sp, sp))


# ---------------------------------- main -----------------------------------

if __name__ == "__main__":
    key = jax.random.PRNGKey(0)
    kx1, kx2, kp = jax.random.split(key, 3)
    B, Cin, Cout, H = 2, 4, 4, 16
    scales = (2, 2)   # (cscale, hscale==wscale) -> P=8 patches of D=128 elems

    x1 = jax.random.normal(kx1, (B, Cin, H, H), jnp.float32)
    x2 = jax.random.normal(kx2, (B, Cin, H, H), jnp.float32)
    params = init_params(kp, Cin, Cout, scales)

    fwd = jax.jit(functools.partial(rel_patch_attention2d_forward,
                                    scales=scales))
    out = jax.block_until_ready(fwd(x1, x2, params))

    ref = reference_forward(x1, x2, params, scales)
    assert out.shape == (B, Cout, H, H)
    max_err = float(jnp.max(jnp.abs(out - ref)))
    assert bool(jnp.allclose(out, ref, atol=2e-2, rtol=2e-2)), max_err

    print("KERNEL_OK")
</pallas_src>

<mosaic_0001>
module attributes {stable_mosaic.version = 11 : i64} {
  func.func @conv_bn_kernel(%arg0: i32, %arg1: i32, %arg2: memref<2x1x2x290xf32, #tpu.memory_space<vmem>>, %arg3: memref<1x4x18xbf16, #tpu.memory_space<vmem>>, %arg4: memref<1x4x1xf32, #tpu.memory_space<vmem>>, %arg5: memref<2x1x4x256xf32, #tpu.memory_space<vmem>>, %arg6: memref<18x512xbf16, #tpu.memory_space<vmem>>) attributes {dimension_semantics = [#tpu.dimension_semantics<parallel>, #tpu.dimension_semantics<parallel>], iteration_bounds = array<i64: 1, 2>, scalar_prefetch = 0 : i64, scratch_operands = 1 : i64, tpu.core_type = #tpu.core_type<tc>, window_params = [{transform_indices = @transform_0, window_bounds = array<i64: 2, 1, 2, 290>}, {transform_indices = @transform_1, window_bounds = array<i64: 1, 4, 18>}, {transform_indices = @transform_2, window_bounds = array<i64: 1, 4, 1>}, {transform_indices = @transform_3, window_bounds = array<i64: 2, 1, 4, 256>}]} {
    %0 = tpu.iota {dimensions = array<i32: 2>} : vector<1x1x256xi32>
    %c16_i32 = arith.constant 16 : i32
    %c0_i32 = arith.constant 0 : i32
    %1 = arith.cmpi eq, %c16_i32, %c0_i32 : i32
    %c1_i32 = arith.constant 1 : i32
    %2 = arith.select %1, %c1_i32, %c16_i32 : i32
    %3 = vector.broadcast %2 : i32 to vector<1x1x256xi32>
    %4 = arith.remsi %0, %3 : vector<1x1x256xi32>
    %c0_i32_0 = arith.constant 0 : i32
    %5 = vector.broadcast %c0_i32_0 : i32 to vector<1x1x256xi32>
    %6 = arith.cmpi ne, %4, %5 : vector<1x1x256xi32>
    %c0_i32_1 = arith.constant 0 : i32
    %7 = vector.broadcast %c0_i32_1 : i32 to vector<1x1x256xi32>
    %8 = arith.cmpi slt, %4, %7 : vector<1x1x256xi32>
    %c0_i32_2 = arith.constant 0 : i32
    %9 = arith.cmpi slt, %2, %c0_i32_2 : i32
    %10 = vector.broadcast %9 : i1 to vector<1x1x256xi1>
    %11 = vector.broadcast %10 : vector<1x1x256xi1> to vector<1x1x256xi1>
    %12 = arith.xori %8, %11 : vector<1x1x256xi1>
    %13 = arith.andi %12, %6 : vector<1x1x256xi1>
    %14 = vector.broadcast %2 : i32 to vector<1x1x256xi32>
    %15 = arith.addi %4, %14 : vector<1x1x256xi32>
    %16 = arith.select %13, %15, %4 : vector<1x1x256xi1>, vector<1x1x256xi32>
    %c0_i32_3 = arith.constant 0 : i32
    %17 = vector.broadcast %c0_i32_3 : i32 to vector<1x1x256xi32>
    %18 = arith.cmpi eq, %16, %17 : vector<1x1x256xi32>
    %c15_i32 = arith.constant 15 : i32
    %19 = vector.broadcast %c15_i32 : i32 to vector<1x1x256xi32>
    %20 = arith.cmpi eq, %16, %19 : vector<1x1x256xi32>
    %c0 = arith.constant 0 : index
    %c0_4 = arith.constant 0 : index
    %c0_5 = arith.constant 0 : index
    %c0_6 = arith.constant 0 : index
    %21 = vector.load %arg2[%c0, %c0_4, %c0_5, %c0_6] : memref<2x1x2x290xf32, #tpu.memory_space<vmem>>, vector<2x1x2x256xf32>
    %22 = vector.shape_cast %21 : vector<2x1x2x256xf32> to vector<2x2x256xf32>
    %cst = arith.constant 0.000000e+00 : f32
    %23 = vector.shape_cast %18 : vector<1x1x256xi1> to vector<1x1x256xi1>
    %24 = vector.broadcast %23 : vector<1x1x256xi1> to vector<2x2x256xi1>
    %25 = vector.broadcast %cst : f32 to vector<2x2x256xf32>
    %26 = arith.select %24, %25, %22 : vector<2x2x256xi1>, vector<2x2x256xf32>
    %27 = arith.truncf %26 : vector<2x2x256xf32> to vector<2x2x256xbf16>
    %28 = vector.extract_strided_slice %27 {offsets = [0, 0, 0], sizes = [1, 2, 256], strides = [1, 1, 1]} : vector<2x2x256xbf16> to vector<1x2x256xbf16>
    %29 = vector.shape_cast %28 : vector<1x2x256xbf16> to vector<2x256xbf16>
    %c0_7 = arith.constant 0 : index
    %c0_8 = arith.constant 0 : index
    %30 = vector.load %arg6[%c0_7, %c0_8] : memref<18x512xbf16, #tpu.memory_space<vmem>>, vector<2x256xbf16>
    tpu.vector_store %arg6[%c0_7, %c0_8], %29 {strides = array<i32>} : memref<18x512xbf16, #tpu.memory_space<vmem>>, vector<2x256xbf16>,
    %31 = vector.extract_strided_slice %27 {offsets = [1, 0, 0], sizes = [1, 2, 256], strides = [1, 1, 1]} : vector<2x2x256xbf16> to vector<1x2x256xbf16>
    %32 = vector.shape_cast %31 : vector<1x2x256xbf16> to vector<2x256xbf16>
    %c0_9 = arith.constant 0 : index
    %c256 = arith.constant 256 : index
    %33 = vector.load %arg6[%c0_9, %c256] : memref<18x512xbf16, #tpu.memory_space<vmem>>, vector<2x256xbf16>
    tpu.vector_store %arg6[%c0_9, %c256], %32 {strides = array<i32>} : memref<18x512xbf16, #tpu.memory_space<vmem>>, vector<2x256xbf16>,
    %c0_10 = arith.constant 0 : index
    %c0_11 = arith.constant 0 : index
    %c0_12 = arith.constant 0 : index
    %c1 = arith.constant 1 : index
    %34 = vector.load %arg2[%c0_10, %c0_11, %c0_12, %c1] : memref<2x1x2x290xf32, #tpu.memory_space<vmem>>, vector<2x1x2x256xf32>
    %35 = vector.shape_cast %34 : vector<2x1x2x256xf32> to vector<2x2x256xf32>
    %36 = arith.truncf %35 : vector<2x2x256xf32> to vector<2x2x256xbf16>
    %37 = vector.extract_strided_slice %36 {offsets = [0, 0, 0], sizes = [1, 2, 256], strides = [1, 1, 1]} : vector<2x2x256xbf16> to vector<1x2x256xbf16>
    %38 = vector.shape_cast %37 : vector<1x2x256xbf16> to vector<2x256xbf16>
    %c2 = arith.constant 2 : index
    %c0_13 = arith.constant 0 : index
    %39 = vector.load %arg6[%c2, %c0_13] : memref<18x512xbf16, #tpu.memory_space<vmem>>, vector<2x256xbf16>
    tpu.vector_store %arg6[%c2, %c0_13], %38 {strides = array<i32>} : memref<18x512xbf16, #tpu.memory_space<vmem>>, vector<2x256xbf16>,
    %40 = vector.extract_strided_slice %36 {offsets = [1, 0, 0], sizes = [1, 2, 256], strides = [1, 1, 1]} : vector<2x2x256xbf16> to vector<1x2x256xbf16>
    %41 = vector.shape_cast %40 : vector<1x2x256xbf16> to vector<2x256xbf16>
    %c2_14 = arith.constant 2 : index
    %c256_15 = arith.constant 256 : index
    %42 = vector.load %arg6[%c2_14, %c256_15] : memref<18x512xbf16, #tpu.memory_space<vmem>>, vector<2x256xbf16>
    tpu.vector_store %arg6[%c2_14, %c256_15], %41 {strides = array<i32>} : memref<18x512xbf16, #tpu.memory_space<vmem>>, vector<2x256xbf16>,
    %c0_16 = arith.constant 0 : index
    %c0_17 = arith.constant 0 : index
    %c0_18 = arith.constant 0 : index
    %c2_19 = arith.constant 2 : index
    %43 = vector.load %arg2[%c0_16, %c0_17, %c0_18, %c2_19] : memref<2x1x2x290xf32, #tpu.memory_space<vmem>>, vector<2x1x2x256xf32>
    %44 = vector.shape_cast %43 : vector<2x1x2x256xf32> to vector<2x2x256xf32>
    %cst_20 = arith.constant 0.000000e+00 : f32
    %45 = vector.shape_cast %20 : vector<1x1x256xi1> to vector<1x1x256xi1>
    %46 = vector.broadcast %45 : vector<1x1x256xi1> to vector<2x2x256xi1>
    %47 = vector.broadcast %cst_20 : f32 to vector<2x2x256xf32>
    %48 = arith.select %46, %47, %44 : vector<2x2x256xi1>, vector<2x2x256xf32>
    %49 = arith.truncf %48 : vector<2x2x256xf32> to vector<2x2x256xbf16>
    %50 = vector.extract_strided_slice %49 {offsets = [0, 0, 0], sizes = [1, 2, 256], strides = [1, 1, 1]} : vector<2x2x256xbf16> to vector<1x2x256xbf16>
    %51 = vector.shape_cast %50 : vector<1x2x256xbf16> to vector<2x256xbf16>
    %c4 = arith.constant 4 : index
    %c0_21 = arith.constant 0 : index
    %52 = vector.load %arg6[%c4, %c0_21] : memref<18x512xbf16, #tpu.memory_space<vmem>>, vector<2x256xbf16>
    tpu.vector_store %arg6[%c4, %c0_21], %51 {strides = array<i32>} : memref<18x512xbf16, #tpu.memory_space<vmem>>, vector<2x256xbf16>,
    %53 = vector.extract_strided_slice %49 {offsets = [1, 0, 0], sizes = [1, 2, 256], strides = [1, 1, 1]} : vector<2x2x256xbf16> to vector<1x2x256xbf16>
    %54 = vector.shape_cast %53 : vector<1x2x256xbf16> to vector<2x256xbf16>
    %c4_22 = arith.constant 4 : index
    %c256_23 = arith.constant 256 : index
    %55 = vector.load %arg6[%c4_22, %c256_23] : memref<18x512xbf16, #tpu.memory_space<vmem>>, vector<2x256xbf16>
    tpu.vector_store %arg6[%c4_22, %c256_23], %54 {strides = array<i32>} : memref<18x512xbf16, #tpu.memory_space<vmem>>, vector<2x256xbf16>,
    %c0_24 = arith.constant 0 : index
    %c0_25 = arith.constant 0 : index
    %c0_26 = arith.constant 0 : index
    %c16 = arith.constant 16 : index
    %56 = vector.load %arg2[%c0_24, %c0_25, %c0_26, %c16] : memref<2x1x2x290xf32, #tpu.memory_space<vmem>>, vector<2x1x2x256xf32>
    %57 = vector.shape_cast %56 : vector<2x1x2x256xf32> to vector<2x2x256xf32>
    %cst_27 = arith.constant 0.000000e+00 : f32
    %58 = vector.shape_cast %18 : vector<1x1x256xi1> to vector<1x1x256xi1>
    %59 = vector.broadcast %58 : vector<1x1x256xi1> to vector<2x2x256xi1>
    %60 = vector.broadcast %cst_27 : f32 to vector<2x2x256xf32>
    %61 = arith.select %59, %60, %57 : vector<2x2x256xi1>, vector<2x2x256xf32>
    %62 = arith.truncf %61 : vector<2x2x256xf32> to vector<2x2x256xbf16>
    %63 = vector.extract_strided_slice %62 {offsets = [0, 0, 0], sizes = [1, 2, 256], strides = [1, 1, 1]} : vector<2x2x256xbf16> to vector<1x2x256xbf16>
    %64 = vector.shape_cast %63 : vector<1x2x256xbf16> to vector<2x256xbf16>
    %c6 = arith.constant 6 : index
    %c0_28 = arith.constant 0 : index
    %65 = vector.load %arg6[%c6, %c0_28] : memref<18x512xbf16, #tpu.memory_space<vmem>>, vector<2x256xbf16>
    tpu.vector_store %arg6[%c6, %c0_28], %64 {strides = array<i32>} : memref<18x512xbf16, #tpu.memory_space<vmem>>, vector<2x256xbf16>,
    %66 = vector.extract_strided_slice %62 {offsets = [1, 0, 0], sizes = [1, 2, 256], strides = [1, 1, 1]} : vector<2x2x256xbf16> to vector<1x2x256xbf16>
    %67 = vector.shape_cast %66 : vector<1x2x256xbf16> to vector<2x256xbf16>
    %c6_29 = arith.constant 6 : index
    %c256_30 = arith.constant 256 : index
    %68 = vector.load %arg6[%c6_29, %c256_30] : memref<18x512xbf16, #tpu.memory_space<vmem>>, vector<2x256xbf16>
    tpu.vector_store %arg6[%c6_29, %c256_30], %67 {strides = array<i32>} : memref<18x512xbf16, #tpu.memory_space<vmem>>, vector<2x256xbf16>,
    %c0_31 = arith.constant 0 : index
    %c0_32 = arith.constant 0 : index
    %c0_33 = arith.constant 0 : index
    %c17 = arith.constant 17 : index
    %69 = vector.load %arg2[%c0_31, %c0_32, %c0_33, %c17] : memref<2x1x2x290xf32, #tpu.memory_space<vmem>>, vector<2x1x2x256xf32>
    %70 = vector.shape_cast %69 : vector<2x1x2x256xf32> to vector<2x2x256xf32>
    %71 = arith.truncf %70 : vector<2x2x256xf32> to vector<2x2x256xbf16>
    %72 = vector.extract_strided_slice %71 {offsets = [0, 0, 0], sizes = [1, 2, 256], strides = [1, 1, 1]} : vector<2x2x256xbf16> to vector<1x2x256xbf16>
    %73 = vector.shape_cast %72 : vector<1x2x256xbf16> to vector<2x256xbf16>
    %c8 = arith.constant 8 : index
    %c0_34 = arith.constant 0 : index
    %74 = vector.load %arg6[%c8, %c0_34] : memref<18x512xbf16, #tpu.memory_space<vmem>>, vector<2x256xbf16>
    tpu.vector_store %arg6[%c8, %c0_34], %73 {strides = array<i32>} : memref<18x512xbf16, #tpu.memory_space<vmem>>, vector<2x256xbf16>,
    %75 = vector.extract_strided_slice %71 {offsets = [1, 0, 0], sizes = [1, 2, 256], strides = [1, 1, 1]} : vector<2x2x256xbf16> to vector<1x2x256xbf16>
    %76 = vector.shape_cast %75 : vector<1x2x256xbf16> to vector<2x256xbf16>
    %c8_35 = arith.constant 8 : index
    %c256_36 = arith.constant 256 : index
    %77 = vector.load %arg6[%c8_35, %c256_36] : memref<18x512xbf16, #tpu.memory_space<vmem>>, vector<2x256xbf16>
    tpu.vector_store %arg6[%c8_35, %c256_36], %76 {strides = array<i32>} : memref<18x512xbf16, #tpu.memory_space<vmem>>, vector<2x256xbf16>,
    %c0_37 = arith.constant 0 : index
    %c0_38 = arith.constant 0 : index
    %c0_39 = arith.constant 0 : index
    %c18 = arith.constant 18 : index
    %78 = vector.load %arg2[%c0_37, %c0_38, %c0_39, %c18] : memref<2x1x2x290xf32, #tpu.memory_space<vmem>>, vector<2x1x2x256xf32>
    %79 = vector.shape_cast %78 : vector<2x1x2x256xf32> to vector<2x2x256xf32>
    %cst_40 = arith.constant 0.000000e+00 : f32
    %80 = vector.shape_cast %20 : vector<1x1x256xi1> to vector<1x1x256xi1>
    %81 = vector.broadcast %80 : vector<1x1x256xi1> to vector<2x2x256xi1>
    %82 = vector.broadcast %cst_40 : f32 to vector<2x2x256xf32>
    %83 = arith.select %81, %82, %79 : vector<2x2x256xi1>, vector<2x2x256xf32>
    %84 = arith.truncf %83 : vector<2x2x256xf32> to vector<2x2x256xbf16>
    %85 = vector.extract_strided_slice %84 {offsets = [0, 0, 0], sizes = [1, 2, 256], strides = [1, 1, 1]} : vector<2x2x256xbf16> to vector<1x2x256xbf16>
    %86 = vector.shape_cast %85 : vector<1x2x256xbf16> to vector<2x256xbf16>
    %c10 = arith.constant 10 : index
    %c0_41 = arith.constant 0 : index
    %87 = vector.load %arg6[%c10, %c0_41] : memref<18x512xbf16, #tpu.memory_space<vmem>>, vector<2x256xbf16>
    tpu.vector_store %arg6[%c10, %c0_41], %86 {strides = array<i32>} : memref<18x512xbf16, #tpu.memory_space<vmem>>, vector<2x256xbf16>,
    %88 = vector.extract_strided_slice %84 {offsets = [1, 0, 0], sizes = [1, 2, 256], strides = [1, 1, 1]} : vector<2x2x256xbf16> to vector<1x2x256xbf16>
    %89 = vector.shape_cast %88 : vector<1x2x256xbf16> to vector<2x256xbf16>
    %c10_42 = arith.constant 10 : index
    %c256_43 = arith.constant 256 : index
    %90 = vector.load %arg6[%c10_42, %c256_43] : memref<18x512xbf16, #tpu.memory_space<vmem>>, vector<2x256xbf16>
    tpu.vector_store %arg6[%c10_42, %c256_43], %89 {strides = array<i32>} : memref<18x512xbf16, #tpu.memory_space<vmem>>, vector<2x256xbf16>,
    %c0_44 = arith.constant 0 : index
    %c0_45 = arith.constant 0 : index
    %c0_46 = arith.constant 0 : index
    %c32 = arith.constant 32 : index
    %91 = vector.load %arg2[%c0_44, %c0_45, %c0_46, %c32] : memref<2x1x2x290xf32, #tpu.memory_space<vmem>>, vector<2x1x2x256xf32>
    %92 = vector.shape_cast %91 : vector<2x1x2x256xf32> to vector<2x2x256xf32>
    %cst_47 = arith.constant 0.000000e+00 : f32
    %93 = vector.shape_cast %18 : vector<1x1x256xi1> to vector<1x1x256xi1>
    %94 = vector.broadcast %93 : vector<1x1x256xi1> to vector<2x2x256xi1>
    %95 = vector.broadcast %cst_47 : f32 to vector<2x2x256xf32>
    %96 = arith.select %94, %95, %92 : vector<2x2x256xi1>, vector<2x2x256xf32>
    %97 = arith.truncf %96 : vector<2x2x256xf32> to vector<2x2x256xbf16>
    %98 = vector.extract_strided_slice %97 {offsets = [0, 0, 0], sizes = [1, 2, 256], strides = [1, 1, 1]} : vector<2x2x256xbf16> to vector<1x2x256xbf16>
    %99 = vector.shape_cast %98 : vector<1x2x256xbf16> to vector<2x256xbf16>
    %c12 = arith.constant 12 : index
    %c0_48 = arith.constant 0 : index
    %100 = vector.load %arg6[%c12, %c0_48] : memref<18x512xbf16, #tpu.memory_space<vmem>>, vector<2x256xbf16>
    tpu.vector_store %arg6[%c12, %c0_48], %99 {strides = array<i32>} : memref<18x512xbf16, #tpu.memory_space<vmem>>, vector<2x256xbf16>,
    %101 = vector.extract_strided_slice %97 {offsets = [1, 0, 0], sizes = [1, 2, 256], strides = [1, 1, 1]} : vector<2x2x256xbf16> to vector<1x2x256xbf16>
    %102 = vector.shape_cast %101 : vector<1x2x256xbf16> to vector<2x256xbf16>
    %c12_49 = arith.constant 12 : index
    %c256_50 = arith.constant 256 : index
    %103 = vector.load %arg6[%c12_49, %c256_50] : memref<18x512xbf16, #tpu.memory_space<vmem>>, vector<2x256xbf16>
    tpu.vector_store %arg6[%c12_49, %c256_50], %102 {strides = array<i32>} : memref<18x512xbf16, #tpu.memory_space<vmem>>, vector<2x256xbf16>,
    %c0_51 = arith.constant 0 : index
    %c0_52 = arith.constant 0 : index
    %c0_53 = arith.constant 0 : index
    %c33 = arith.constant 33 : index
    %104 = vector.load %arg2[%c0_51, %c0_52, %c0_53, %c33] : memref<2x1x2x290xf32, #tpu.memory_space<vmem>>, vector<2x1x2x256xf32>
    %105 = vector.shape_cast %104 : vector<2x1x2x256xf32> to vector<2x2x256xf32>
    %106 = arith.truncf %105 : vector<2x2x256xf32> to vector<2x2x256xbf16>
    %107 = vector.extract_strided_slice %106 {offsets = [0, 0, 0], sizes = [1, 2, 256], strides = [1, 1, 1]} : vector<2x2x256xbf16> to vector<1x2x256xbf16>
    %108 = vector.shape_cast %107 : vector<1x2x256xbf16> to vector<2x256xbf16>
    %c14 = arith.constant 14 : index
    %c0_54 = arith.constant 0 : index
    %109 = vector.load %arg6[%c14, %c0_54] : memref<18x512xbf16, #tpu.memory_space<vmem>>, vector<2x256xbf16>
    tpu.vector_store %arg6[%c14, %c0_54], %108 {strides = array<i32>} : memref<18x512xbf16, #tpu.memory_space<vmem>>, vector<2x256xbf16>,
    %110 = vector.extract_strided_slice %106 {offsets = [1, 0, 0], sizes = [1, 2, 256], strides = [1, 1, 1]} : vector<2x2x256xbf16> to vector<1x2x256xbf16>
    %111 = vector.shape_cast %110 : vector<1x2x256xbf16> to vector<2x256xbf16>
    %c14_55 = arith.constant 14 : index
    %c256_56 = arith.constant 256 : index
    %112 = vector.load %arg6[%c14_55, %c256_56] : memref<18x512xbf16, #tpu.memory_space<vmem>>, vector<2x256xbf16>
    tpu.vector_store %arg6[%c14_55, %c256_56], %111 {strides = array<i32>} : memref<18x512xbf16, #tpu.memory_space<vmem>>, vector<2x256xbf16>,
    %c0_57 = arith.constant 0 : index
    %c0_58 = arith.constant 0 : index
    %c0_59 = arith.constant 0 : index
    %c34 = arith.constant 34 : index
    %113 = vector.load %arg2[%c0_57, %c0_58, %c0_59, %c34] : memref<2x1x2x290xf32, #tpu.memory_space<vmem>>, vector<2x1x2x256xf32>
    %114 = vector.shape_cast %113 : vector<2x1x2x256xf32> to vector<2x2x256xf32>
    %cst_60 = arith.constant 0.000000e+00 : f32
    %115 = vector.shape_cast %20 : vector<1x1x256xi1> to vector<1x1x256xi1>
    %116 = vector.broadcast %115 : vector<1x1x256xi1> to vector<2x2x256xi1>
    %117 = vector.broadcast %cst_60 : f32 to vector<2x2x256xf32>
    %118 = arith.select %116, %117, %114 : vector<2x2x256xi1>, vector<2x2x256xf32>
    %119 = arith.truncf %118 : vector<2x2x256xf32> to vector<2x2x256xbf16>
    %120 = vector.extract_strided_slice %119 {offsets = [0, 0, 0], sizes = [1, 2, 256], strides = [1, 1, 1]} : vector<2x2x256xbf16> to vector<1x2x256xbf16>
    %121 = vector.shape_cast %120 : vector<1x2x256xbf16> to vector<2x256xbf16>
    %c16_61 = arith.constant 16 : index
    %c0_62 = arith.constant 0 : index
    %122 = vector.load %arg6[%c16_61, %c0_62] : memref<18x512xbf16, #tpu.memory_space<vmem>>, vector<2x256xbf16>
    tpu.vector_store %arg6[%c16_61, %c0_62], %121 {strides = array<i32>} : memref<18x512xbf16, #tpu.memory_space<vmem>>, vector<2x256xbf16>,
    %123 = vector.extract_strided_slice %119 {offsets = [1, 0, 0], sizes = [1, 2, 256], strides = [1, 1, 1]} : vector<2x2x256xbf16> to vector<1x2x256xbf16>
    %124 = vector.shape_cast %123 : vector<1x2x256xbf16> to vector<2x256xbf16>
    %c16_63 = arith.constant 16 : index
    %c256_64 = arith.constant 256 : index
    %125 = vector.load %arg6[%c16_63, %c256_64] : memref<18x512xbf16, #tpu.memory_space<vmem>>, vector<2x256xbf16>
    tpu.vector_store %arg6[%c16_63, %c256_64], %124 {strides = array<i32>} : memref<18x512xbf16, #tpu.memory_space<vmem>>, vector<2x256xbf16>,
    %c0_65 = arith.constant 0 : index
    %c0_66 = arith.constant 0 : index
    %c0_67 = arith.constant 0 : index
    %126 = vector.load %arg3[%c0_65, %c0_66, %c0_67] : memref<1x4x18xbf16, #tpu.memory_space<vmem>>, vector<1x4x18xbf16>
    %127 = vector.shape_cast %126 : vector<1x4x18xbf16> to vector<4x18xbf16>
    %c0_68 = arith.constant 0 : index
    %c0_69 = arith.constant 0 : index
    %128 = vector.load %arg6[%c0_68, %c0_69] : memref<18x512xbf16, #tpu.memory_space<vmem>>, vector<18x512xbf16>
    %cst_70 = arith.constant dense<0.000000e+00> : vector<4x512xf32>
    %129 = tpu.matmul %127, %128, %cst_70 {dimension_numbers = #tpu.dot_dimension_numbers<[1], [0], [0], [1], [0, 0, 1, 1], [], []>} : vector<4x18xbf16>, vector<18x512xbf16>, vector<4x512xf32> -> vector<4x512xf32>
    %c0_71 = arith.constant 0 : index
    %c0_72 = arith.constant 0 : index
    %c0_73 = arith.constant 0 : index
    %130 = vector.load %arg4[%c0_71, %c0_72, %c0_73] : memref<1x4x1xf32, #tpu.memory_space<vmem>>, vector<1x4x1xf32>
    %131 = vector.shape_cast %130 : vector<1x4x1xf32> to vector<4x1xf32>
    %132 = vector.extract_strided_slice %129 {offsets = [0, 0], sizes = [4, 256], strides = [1, 1]} : vector<4x512xf32> to vector<4x256xf32>
    %133 = vector.broadcast %131 : vector<4x1xf32> to vector<4x256xf32>
    %134 = arith.addf %132, %133 : vector<4x256xf32>
    %c0_74 = arith.constant 0 : index
    %c0_75 = arith.constant 0 : index
    %c0_76 = arith.constant 0 : index
    %c0_77 = arith.constant 0 : index
    %135 = vector.load %arg5[%c0_74, %c0_75, %c0_76, %c0_77] : memref<2x1x4x256xf32, #tpu.memory_space<vmem>>, vector<1x1x4x256xf32>
    %136 = vector.shape_cast %135 : vector<1x1x4x256xf32> to vector<4x256xf32>
    %137 = vector.shape_cast %134 : vector<4x256xf32> to vector<1x1x4x256xf32>
    tpu.vector_store %arg5[%c0_74, %c0_75, %c0_76, %c0_77], %137 {strides = array<i32>} : memref<2x1x4x256xf32, #tpu.memory_space<vmem>>, vector<1x1x4x256xf32>,
    %138 = vector.extract_strided_slice %129 {offsets = [0, 256], sizes = [4, 256], strides = [1, 1]} : vector<4x512xf32> to vector<4x256xf32>
    %139 = vector.broadcast %131 : vector<4x1xf32> to vector<4x256xf32>
    %140 = arith.addf %138, %139 : vector<4x256xf32>
    %c1_78 = arith.constant 1 : index
    %c0_79 = arith.constant 0 : index
    %c0_80 = arith.constant 0 : index
    %c0_81 = arith.constant 0 : index
    %141 = vector.load %arg5[%c1_78, %c0_79, %c0_80, %c0_81] : memref<2x1x4x256xf32, #tpu.memory_space<vmem>>, vector<1x1x4x256xf32>
    %142 = vector.shape_cast %141 : vector<1x1x4x256xf32> to vector<4x256xf32>
    %143 = vector.shape_cast %140 : vector<4x256xf32> to vector<1x1x4x256xf32>
    tpu.vector_store %arg5[%c1_78, %c0_79, %c0_80, %c0_81], %143 {strides = array<i32>} : memref<2x1x4x256xf32, #tpu.memory_space<vmem>>, vector<1x1x4x256xf32>,
    return
  }
  func.func @transform_0(%arg0: i32, %arg1: i32) -> (i32, i32, i32, i32) {
    %c0_i32 = arith.constant 0 : i32
    %c0_i32_0 = arith.constant 0 : i32
    %c0_i32_1 = arith.constant 0 : i32
    return %arg0, %arg1, %c0_i32, %c0_i32_0 : i32, i32, i32, i32
  }
  func.func @transform_1(%arg0: i32, %arg1: i32) -> (i32, i32, i32) {
    %c0_i32 = arith.constant 0 : i32
    %c0_i32_0 = arith.constant 0 : i32
    %c0_i32_1 = arith.constant 0 : i32
    return %arg1, %c0_i32, %c0_i32_0 : i32, i32, i32
  }
  func.func @transform_2(%arg0: i32, %arg1: i32) -> (i32, i32, i32) {
    %c0_i32 = arith.constant 0 : i32
    %c0_i32_0 = arith.constant 0 : i32
    %c0_i32_1 = arith.constant 0 : i32
    return %arg1, %c0_i32, %c0_i32_0 : i32, i32, i32
  }
  func.func @transform_3(%arg0: i32, %arg1: i32) -> (i32, i32, i32, i32) {
    %c0_i32 = arith.constant 0 : i32
    %c0_i32_0 = arith.constant 0 : i32
    %c0_i32_1 = arith.constant 0 : i32
    return %arg0, %arg1, %c0_i32, %c0_i32_0 : i32, i32, i32, i32
  }
}

module attributes {stable_mosaic.version = 11 : i64} {
  func.func @conv_bn_kernel(%arg0: i32, %arg1: i32, %arg2: memref<1x1x4x290xf32, #tpu.memory_space<vmem>>, %arg3: memref<1x4x36xbf16, #tpu.memory_space<vmem>>, %arg4: memref<1x4x1xf32, #tpu.memory_space<vmem>>, %arg5: memref<1x1x4x256xf32, #tpu.memory_space<vmem>>, %arg6: memref<36x256xbf16, #tpu.memory_space<vmem>>) attributes {dimension_semantics = [#tpu.dimension_semantics<parallel>, #tpu.dimension_semantics<parallel>], iteration_bounds = array<i64: 2, 1>, scalar_prefetch = 0 : i64, scratch_operands = 1 : i64, tpu.core_type = #tpu.core_type<tc>, window_params = [{transform_indices = @transform_0, window_bounds = array<i64: 1, 1, 4, 290>}, {transform_indices = @transform_1, window_bounds = array<i64: 1, 4, 36>}, {transform_indices = @transform_2, window_bounds = array<i64: 1, 4, 1>}, {transform_indices = @transform_3, window_bounds = array<i64: 1, 1, 4, 256>}]} {
    %0 = tpu.iota {dimensions = array<i32: 2>} : vector<1x1x256xi32>
    %c16_i32 = arith.constant 16 : i32
    %c0_i32 = arith.constant 0 : i32
    %1 = arith.cmpi eq, %c16_i32, %c0_i32 : i32
    %c1_i32 = arith.constant 1 : i32
    %2 = arith.select %1, %c1_i32, %c16_i32 : i32
    %3 = vector.broadcast %2 : i32 to vector<1x1x256xi32>
    %4 = arith.remsi %0, %3 : vector<1x1x256xi32>
    %c0_i32_0 = arith.constant 0 : i32
    %5 = vector.broadcast %c0_i32_0 : i32 to vector<1x1x256xi32>
    %6 = arith.cmpi ne, %4, %5 : vector<1x1x256xi32>
    %c0_i32_1 = arith.constant 0 : i32
    %7 = vector.broadcast %c0_i32_1 : i32 to vector<1x1x256xi32>
    %8 = arith.cmpi slt, %4, %7 : vector<1x1x256xi32>
    %c0_i32_2 = arith.constant 0 : i32
    %9 = arith.cmpi slt, %2, %c0_i32_2 : i32
    %10 = vector.broadcast %9 : i1 to vector<1x1x256xi1>
    %11 = vector.broadcast %10 : vector<1x1x256xi1> to vector<1x1x256xi1>
    %12 = arith.xori %8, %11 : vector<1x1x256xi1>
    %13 = arith.andi %12, %6 : vector<1x1x256xi1>
    %14 = vector.broadcast %2 : i32 to vector<1x1x256xi32>
    %15 = arith.addi %4, %14 : vector<1x1x256xi32>
    %16 = arith.select %13, %15, %4 : vector<1x1x256xi1>, vector<1x1x256xi32>
    %c0_i32_3 = arith.constant 0 : i32
    %17 = vector.broadcast %c0_i32_3 : i32 to vector<1x1x256xi32>
    %18 = arith.cmpi eq, %16, %17 : vector<1x1x256xi32>
    %c15_i32 = arith.constant 15 : i32
    %19 = vector.broadcast %c15_i32 : i32 to vector<1x1x256xi32>
    %20 = arith.cmpi eq, %16, %19 : vector<1x1x256xi32>
    %c0 = arith.constant 0 : index
    %c0_4 = arith.constant 0 : index
    %c0_5 = arith.constant 0 : index
    %c0_6 = arith.constant 0 : index
    %21 = vector.load %arg2[%c0, %c0_4, %c0_5, %c0_6] : memref<1x1x4x290xf32, #tpu.memory_space<vmem>>, vector<1x1x4x256xf32>
    %22 = vector.shape_cast %21 : vector<1x1x4x256xf32> to vector<1x4x256xf32>
    %cst = arith.constant 0.000000e+00 : f32
    %23 = vector.shape_cast %18 : vector<1x1x256xi1> to vector<1x1x256xi1>
    %24 = vector.broadcast %23 : vector<1x1x256xi1> to vector<1x4x256xi1>
    %25 = vector.broadcast %cst : f32 to vector<1x4x256xf32>
    %26 = arith.select %24, %25, %22 : vector<1x4x256xi1>, vector<1x4x256xf32>
    %27 = arith.truncf %26 : vector<1x4x256xf32> to vector<1x4x256xbf16>
    %28 = vector.shape_cast %27 : vector<1x4x256xbf16> to vector<4x256xbf16>
    %c0_7 = arith.constant 0 : index
    %c0_8 = arith.constant 0 : index
    %29 = vector.load %arg6[%c0_7, %c0_8] : memref<36x256xbf16, #tpu.memory_space<vmem>>, vector<4x256xbf16>
    tpu.vector_store %arg6[%c0_7, %c0_8], %28 {strides = array<i32>} : memref<36x256xbf16, #tpu.memory_space<vmem>>, vector<4x256xbf16>,
    %c0_9 = arith.constant 0 : index
    %c0_10 = arith.constant 0 : index
    %c0_11 = arith.constant 0 : index
    %c1 = arith.constant 1 : index
    %30 = vector.load %arg2[%c0_9, %c0_10, %c0_11, %c1] : memref<1x1x4x290xf32, #tpu.memory_space<vmem>>, vector<1x1x4x256xf32>
    %31 = vector.shape_cast %30 : vector<1x1x4x256xf32> to vector<1x4x256xf32>
    %32 = arith.truncf %31 : vector<1x4x256xf32> to vector<1x4x256xbf16>
    %33 = vector.shape_cast %32 : vector<1x4x256xbf16> to vector<4x256xbf16>
    %c4 = arith.constant 4 : index
    %c0_12 = arith.constant 0 : index
    %34 = vector.load %arg6[%c4, %c0_12] : memref<36x256xbf16, #tpu.memory_space<vmem>>, vector<4x256xbf16>
    tpu.vector_store %arg6[%c4, %c0_12], %33 {strides = array<i32>} : memref<36x256xbf16, #tpu.memory_space<vmem>>, vector<4x256xbf16>,
    %c0_13 = arith.constant 0 : index
    %c0_14 = arith.constant 0 : index
    %c0_15 = arith.constant 0 : index
    %c2 = arith.constant 2 : index
    %35 = vector.load %arg2[%c0_13, %c0_14, %c0_15, %c2] : memref<1x1x4x290xf32, #tpu.memory_space<vmem>>, vector<1x1x4x256xf32>
    %36 = vector.shape_cast %35 : vector<1x1x4x256xf32> to vector<1x4x256xf32>
    %cst_16 = arith.constant 0.000000e+00 : f32
    %37 = vector.shape_cast %20 : vector<1x1x256xi1> to vector<1x1x256xi1>
    %38 = vector.broadcast %37 : vector<1x1x256xi1> to vector<1x4x256xi1>
    %39 = vector.broadcast %cst_16 : f32 to vector<1x4x256xf32>
    %40 = arith.select %38, %39, %36 : vector<1x4x256xi1>, vector<1x4x256xf32>
    %41 = arith.truncf %40 : vector<1x4x256xf32> to vector<1x4x256xbf16>
    %42 = vector.shape_cast %41 : vector<1x4x256xbf16> to vector<4x256xbf16>
    %c8 = arith.constant 8 : index
    %c0_17 = arith.constant 0 : index
    %43 = vector.load %arg6[%c8, %c0_17] : memref<36x256xbf16, #tpu.memory_space<vmem>>, vector<4x256xbf16>
    tpu.vector_store %arg6[%c8, %c0_17], %42 {strides = array<i32>} : memref<36x256xbf16, #tpu.memory_space<vmem>>, vector<4x256xbf16>,
    %c0_18 = arith.constant 0 : index
    %c0_19 = arith.constant 0 : index
    %c0_20 = arith.constant 0 : index
    %c16 = arith.constant 16 : index
    %44 = vector.load %arg2[%c0_18, %c0_19, %c0_20, %c16] : memref<1x1x4x290xf32, #tpu.memory_space<vmem>>, vector<1x1x4x256xf32>
    %45 = vector.shape_cast %44 : vector<1x1x4x256xf32> to vector<1x4x256xf32>
    %cst_21 = arith.constant 0.000000e+00 : f32
    %46 = vector.shape_cast %18 : vector<1x1x256xi1> to vector<1x1x256xi1>
    %47 = vector.broadcast %46 : vector<1x1x256xi1> to vector<1x4x256xi1>
    %48 = vector.broadcast %cst_21 : f32 to vector<1x4x256xf32>
    %49 = arith.select %47, %48, %45 : vector<1x4x256xi1>, vector<1x4x256xf32>
    %50 = arith.truncf %49 : vector<1x4x256xf32> to vector<1x4x256xbf16>
    %51 = vector.shape_cast %50 : vector<1x4x256xbf16> to vector<4x256xbf16>
    %c12 = arith.constant 12 : index
    %c0_22 = arith.constant 0 : index
    %52 = vector.load %arg6[%c12, %c0_22] : memref<36x256xbf16, #tpu.memory_space<vmem>>, vector<4x256xbf16>
    tpu.vector_store %arg6[%c12, %c0_22], %51 {strides = array<i32>} : memref<36x256xbf16, #tpu.memory_space<vmem>>, vector<4x256xbf16>,
    %c0_23 = arith.constant 0 : index
    %c0_24 = arith.constant 0 : index
    %c0_25 = arith.constant 0 : index
    %c17 = arith.constant 17 : index
    %53 = vector.load %arg2[%c0_23, %c0_24, %c0_25, %c17] : memref<1x1x4x290xf32, #tpu.memory_space<vmem>>, vector<1x1x4x256xf32>
    %54 = vector.shape_cast %53 : vector<1x1x4x256xf32> to vector<1x4x256xf32>
    %55 = arith.truncf %54 : vector<1x4x256xf32> to vector<1x4x256xbf16>
    %56 = vector.shape_cast %55 : vector<1x4x256xbf16> to vector<4x256xbf16>
    %c16_26 = arith.constant 16 : index
    %c0_27 = arith.constant 0 : index
    %57 = vector.load %arg6[%c16_26, %c0_27] : memref<36x256xbf16, #tpu.memory_space<vmem>>, vector<4x256xbf16>
    tpu.vector_store %arg6[%c16_26, %c0_27], %56 {strides = array<i32>} : memref<36x256xbf16, #tpu.memory_space<vmem>>, vector<4x256xbf16>,
    %c0_28 = arith.constant 0 : index
    %c0_29 = arith.constant 0 : index
    %c0_30 = arith.constant 0 : index
    %c18 = arith.constant 18 : index
    %58 = vector.load %arg2[%c0_28, %c0_29, %c0_30, %c18] : memref<1x1x4x290xf32, #tpu.memory_space<vmem>>, vector<1x1x4x256xf32>
    %59 = vector.shape_cast %58 : vector<1x1x4x256xf32> to vector<1x4x256xf32>
    %cst_31 = arith.constant 0.000000e+00 : f32
    %60 = vector.shape_cast %20 : vector<1x1x256xi1> to vector<1x1x256xi1>
    %61 = vector.broadcast %60 : vector<1x1x256xi1> to vector<1x4x256xi1>
    %62 = vector.broadcast %cst_31 : f32 to vector<1x4x256xf32>
    %63 = arith.select %61, %62, %59 : vector<1x4x256xi1>, vector<1x4x256xf32>
    %64 = arith.truncf %63 : vector<1x4x256xf32> to vector<1x4x256xbf16>
    %65 = vector.shape_cast %64 : vector<1x4x256xbf16> to vector<4x256xbf16>
    %c20 = arith.constant 20 : index
    %c0_32 = arith.constant 0 : index
    %66 = vector.load %arg6[%c20, %c0_32] : memref<36x256xbf16, #tpu.memory_space<vmem>>, vector<4x256xbf16>
    tpu.vector_store %arg6[%c20, %c0_32], %65 {strides = array<i32>} : memref<36x256xbf16, #tpu.memory_space<vmem>>, vector<4x256xbf16>,
    %c0_33 = arith.constant 0 : index
    %c0_34 = arith.constant 0 : index
    %c0_35 = arith.constant 0 : index
    %c32 = arith.constant 32 : index
    %67 = vector.load %arg2[%c0_33, %c0_34, %c0_35, %c32] : memref<1x1x4x290xf32, #tpu.memory_space<vmem>>, vector<1x1x4x256xf32>
    %68 = vector.shape_cast %67 : vector<1x1x4x256xf32> to vector<1x4x256xf32>
    %cst_36 = arith.constant 0.000000e+00 : f32
    %69 = vector.shape_cast %18 : vector<1x1x256xi1> to vector<1x1x256xi1>
    %70 = vector.broadcast %69 : vector<1x1x256xi1> to vector<1x4x256xi1>
    %71 = vector.broadcast %cst_36 : f32 to vector<1x4x256xf32>
    %72 = arith.select %70, %71, %68 : vector<1x4x256xi1>, vector<1x4x256xf32>
    %73 = arith.truncf %72 : vector<1x4x256xf32> to vector<1x4x256xbf16>
    %74 = vector.shape_cast %73 : vector<1x4x256xbf16> to vector<4x256xbf16>
    %c24 = arith.constant 24 : index
    %c0_37 = arith.constant 0 : index
    %75 = vector.load %arg6[%c24, %c0_37] : memref<36x256xbf16, #tpu.memory_space<vmem>>, vector<4x256xbf16>
    tpu.vector_store %arg6[%c24, %c0_37], %74 {strides = array<i32>} : memref<36x256xbf16, #tpu.memory_space<vmem>>, vector<4x256xbf16>,
    %c0_38 = arith.constant 0 : index
    %c0_39 = arith.constant 0 : index
    %c0_40 = arith.constant 0 : index
    %c33 = arith.constant 33 : index
    %76 = vector.load %arg2[%c0_38, %c0_39, %c0_40, %c33] : memref<1x1x4x290xf32, #tpu.memory_space<vmem>>, vector<1x1x4x256xf32>
    %77 = vector.shape_cast %76 : vector<1x1x4x256xf32> to vector<1x4x256xf32>
    %78 = arith.truncf %77 : vector<1x4x256xf32> to vector<1x4x256xbf16>
    %79 = vector.shape_cast %78 : vector<1x4x256xbf16> to vector<4x256xbf16>
    %c28 = arith.constant 28 : index
    %c0_41 = arith.constant 0 : index
    %80 = vector.load %arg6[%c28, %c0_41] : memref<36x256xbf16, #tpu.memory_space<vmem>>, vector<4x256xbf16>
    tpu.vector_store %arg6[%c28, %c0_41], %79 {strides = array<i32>} : memref<36x256xbf16, #tpu.memory_space<vmem>>, vector<4x256xbf16>,
    %c0_42 = arith.constant 0 : index
    %c0_43 = arith.constant 0 : index
    %c0_44 = arith.constant 0 : index
    %c34 = arith.constant 34 : index
    %81 = vector.load %arg2[%c0_42, %c0_43, %c0_44, %c34] : memref<1x1x4x290xf32, #tpu.memory_space<vmem>>, vector<1x1x4x256xf32>
    %82 = vector.shape_cast %81 : vector<1x1x4x256xf32> to vector<1x4x256xf32>
    %cst_45 = arith.constant 0.000000e+00 : f32
    %83 = vector.shape_cast %20 : vector<1x1x256xi1> to vector<1x1x256xi1>
    %84 = vector.broadcast %83 : vector<1x1x256xi1> to vector<1x4x256xi1>
    %85 = vector.broadcast %cst_45 : f32 to vector<1x4x256xf32>
    %86 = arith.select %84, %85, %82 : vector<1x4x256xi1>, vector<1x4x256xf32>
    %87 = arith.truncf %86 : vector<1x4x256xf32> to vector<1x4x256xbf16>
    %88 = vector.shape_cast %87 : vector<1x4x256xbf16> to vector<4x256xbf16>
    %c32_46 = arith.constant 32 : index
    %c0_47 = arith.constant 0 : index
    %89 = vector.load %arg6[%c32_46, %c0_47] : memref<36x256xbf16, #tpu.memory_space<vmem>>, vector<4x256xbf16>
    tpu.vector_store %arg6[%c32_46, %c0_47], %88 {strides = array<i32>} : memref<36x256xbf16, #tpu.memory_space<vmem>>, vector<4x256xbf16>,
    %c0_48 = arith.constant 0 : index
    %c0_49 = arith.constant 0 : index
    %c0_50 = arith.constant 0 : index
    %90 = vector.load %arg3[%c0_48, %c0_49, %c0_50] : memref<1x4x36xbf16, #tpu.memory_space<vmem>>, vector<1x4x36xbf16>
    %91 = vector.shape_cast %90 : vector<1x4x36xbf16> to vector<4x36xbf16>
    %c0_51 = arith.constant 0 : index
    %c0_52 = arith.constant 0 : index
    %92 = vector.load %arg6[%c0_51, %c0_52] : memref<36x256xbf16, #tpu.memory_space<vmem>>, vector<36x256xbf16>
    %cst_53 = arith.constant dense<0.000000e+00> : vector<4x256xf32>
    %93 = tpu.matmul %91, %92, %cst_53 {dimension_numbers = #tpu.dot_dimension_numbers<[1], [0], [0], [1], [0, 0, 1, 1], [], []>} : vector<4x36xbf16>, vector<36x256xbf16>, vector<4x256xf32> -> vector<4x256xf32>
    %c0_54 = arith.constant 0 : index
    %c0_55 = arith.constant 0 : index
    %c0_56 = arith.constant 0 : index
    %94 = vector.load %arg4[%c0_54, %c0_55, %c0_56] : memref<1x4x1xf32, #tpu.memory_space<vmem>>, vector<1x4x1xf32>
    %95 = vector.shape_cast %94 : vector<1x4x1xf32> to vector<4x1xf32>
    %96 = vector.broadcast %95 : vector<4x1xf32> to vector<4x256xf32>
    %97 = arith.addf %93, %96 : vector<4x256xf32>
    %c0_57 = arith.constant 0 : index
    %c0_58 = arith.constant 0 : index
    %c0_59 = arith.constant 0 : index
    %c0_60 = arith.constant 0 : index
    %98 = vector.load %arg5[%c0_57, %c0_58, %c0_59, %c0_60] : memref<1x1x4x256xf32, #tpu.memory_space<vmem>>, vector<1x1x4x256xf32>
    %99 = vector.shape_cast %98 : vector<1x1x4x256xf32> to vector<4x256xf32>
    %100 = vector.shape_cast %97 : vector<4x256xf32> to vector<1x1x4x256xf32>
    tpu.vector_store %arg5[%c0_57, %c0_58, %c0_59, %c0_60], %100 {strides = array<i32>} : memref<1x1x4x256xf32, #tpu.memory_space<vmem>>, vector<1x1x4x256xf32>,
    return
  }
  func.func @transform_0(%arg0: i32, %arg1: i32) -> (i32, i32, i32, i32) {
    %c0_i32 = arith.constant 0 : i32
    %c0_i32_0 = arith.constant 0 : i32
    %c0_i32_1 = arith.constant 0 : i32
    return %arg0, %arg1, %c0_i32, %c0_i32_0 : i32, i32, i32, i32
  }
  func.func @transform_1(%arg0: i32, %arg1: i32) -> (i32, i32, i32) {
    %c0_i32 = arith.constant 0 : i32
    %c0_i32_0 = arith.constant 0 : i32
    %c0_i32_1 = arith.constant 0 : i32
    return %arg1, %c0_i32, %c0_i32_0 : i32, i32, i32
  }
  func.func @transform_2(%arg0: i32, %arg1: i32) -> (i32, i32, i32) {
    %c0_i32 = arith.constant 0 : i32
    %c0_i32_0 = arith.constant 0 : i32
    %c0_i32_1 = arith.constant 0 : i32
    return %arg1, %c0_i32, %c0_i32_0 : i32, i32, i32
  }
  func.func @transform_3(%arg0: i32, %arg1: i32) -> (i32, i32, i32, i32) {
    %c0_i32 = arith.constant 0 : i32
    %c0_i32_0 = arith.constant 0 : i32
    %c0_i32_1 = arith.constant 0 : i32
    return %arg0, %arg1, %c0_i32, %c0_i32_0 : i32, i32, i32, i32
  }
}

module attributes {stable_mosaic.version = 11 : i64} {
  func.func @rel_patch_attn_kernel(%arg0: i32, %arg1: memref<1x8x128xf32, #tpu.memory_space<vmem>>, %arg2: memref<1x8x128xf32, #tpu.memory_space<vmem>>, %arg3: memref<1x1x4x256xf32, #tpu.memory_space<vmem>>, %arg4: memref<4x256xi32, #tpu.memory_space<vmem>>, %arg5: memref<1x8xf32, #tpu.memory_space<vmem>>, %arg6: memref<1x1xf32, #tpu.memory_space<vmem>>, %arg7: memref<1x4x256xf32, #tpu.memory_space<vmem>>) attributes {dimension_semantics = [#tpu.dimension_semantics<parallel>], iteration_bounds = array<i64: 2>, scalar_prefetch = 0 : i64, scratch_operands = 0 : i64, tpu.core_type = #tpu.core_type<tc>, window_params = [{transform_indices = @transform_0, window_bounds = array<i64: 1, 8, 128>}, {transform_indices = @transform_1, window_bounds = array<i64: 1, 8, 128>}, {transform_indices = @transform_2, window_bounds = array<i64: 1, 1, 4, 256>}, {pipeline_mode = #tpu.pipeline_mode<synchronous>, transform_indices = @transform_3, window_bounds = array<i64: 4, 256>}, {pipeline_mode = #tpu.pipeline_mode<synchronous>, transform_indices = @transform_4, window_bounds = array<i64: 1, 8>}, {pipeline_mode = #tpu.pipeline_mode<synchronous>, transform_indices = @transform_5, window_bounds = array<i64: 1, 1>}, {transform_indices = @transform_6, window_bounds = array<i64: 1, 4, 256>}]} {
    %c0 = arith.constant 0 : index
    %c0_0 = arith.constant 0 : index
    %c0_1 = arith.constant 0 : index
    %0 = vector.load %arg1[%c0, %c0_0, %c0_1] : memref<1x8x128xf32, #tpu.memory_space<vmem>>, vector<1x8x128xf32>
    %1 = arith.negf %0 : vector<1x8x128xf32>
    %2 = math.exp %1 : vector<1x8x128xf32>
    %cst = arith.constant 1.000000e+00 : f32
    %3 = vector.broadcast %cst : f32 to vector<1x8x128xf32>
    %4 = arith.addf %3, %2 : vector<1x8x128xf32>
    %5 = arith.divf %3, %4 : vector<1x8x128xf32>
    %c0_2 = arith.constant 0 : index
    %c0_3 = arith.constant 0 : index
    %c0_4 = arith.constant 0 : index
    %6 = vector.load %arg2[%c0_2, %c0_3, %c0_4] : memref<1x8x128xf32, #tpu.memory_space<vmem>>, vector<1x8x128xf32>
    %7 = arith.negf %6 : vector<1x8x128xf32>
    %8 = math.exp %7 : vector<1x8x128xf32>
    %cst_5 = arith.constant 1.000000e+00 : f32
    %9 = vector.broadcast %cst_5 : f32 to vector<1x8x128xf32>
    %10 = arith.addf %9, %8 : vector<1x8x128xf32>
    %11 = arith.divf %9, %10 : vector<1x8x128xf32>
    %12 = arith.truncf %11 : vector<1x8x128xf32> to vector<1x8x128xbf16>
    %13 = arith.truncf %5 : vector<1x8x128xf32> to vector<1x8x128xbf16>
    %cst_6 = arith.constant dense<0.000000e+00> : vector<1x8x8xf32>
    %14 = tpu.matmul %12, %13, %cst_6 {dimension_numbers = #tpu.dot_dimension_numbers<[2], [2], [1], [1], [0, 0, 0, 1, 1, 1], [0], [0]>} : vector<1x8x128xbf16>, vector<1x8x128xbf16>, vector<1x8x8xf32> -> vector<1x8x8xf32>
    %15 = arith.mulf %11, %11 : vector<1x8x128xf32>
    %cst_7 = arith.constant dense<0.000000e+00> : vector<1x8xf32>
    %16 = vector.multi_reduction <add>, %15, %cst_7 [2] : vector<1x8x128xf32> to vector<1x8xf32>
    %17 = vector.shape_cast %16 : vector<1x8xf32> to vector<1x8x1xf32>
    %18 = arith.mulf %5, %5 : vector<1x8x128xf32>
    %cst_8 = arith.constant dense<0.000000e+00> : vector<1x8xf32>
    %19 = vector.multi_reduction <add>, %18, %cst_8 [2] : vector<1x8x128xf32> to vector<1x8xf32>
    %20 = vector.shape_cast %19 : vector<1x8xf32> to vector<1x1x8xf32>
    %cst_9 = arith.constant 9.99999974E-6 : f32
    %21 = vector.broadcast %cst_9 : f32 to vector<1x8x8xf32>
    %22 = arith.addf %14, %21 : vector<1x8x8xf32>
    %23 = vector.broadcast %20 : vector<1x1x8xf32> to vector<1x8x8xf32>
    %24 = vector.broadcast %17 : vector<1x8x1xf32> to vector<1x8x8xf32>
    %25 = arith.addf %23, %24 : vector<1x8x8xf32>
    %26 = arith.subf %25, %14 : vector<1x8x8xf32>
    %cst_10 = arith.constant 9.99999974E-6 : f32
    %27 = vector.broadcast %cst_10 : f32 to vector<1x8x8xf32>
    %28 = arith.addf %26, %27 : vector<1x8x8xf32>
    %29 = arith.divf %22, %28 : vector<1x8x8xf32>
    %c0_11 = arith.constant 0 : index
    %c0_12 = arith.constant 0 : index
    %30 = vector.load %arg5[%c0_11, %c0_12] : memref<1x8xf32, #tpu.memory_space<vmem>>, vector<1x8xf32>
    %31 = vector.shape_cast %30 : vector<1x8xf32> to vector<1x1x8xf32>
    %32 = vector.broadcast %31 : vector<1x1x8xf32> to vector<1x8x8xf32>
    %33 = arith.mulf %29, %32 : vector<1x8x8xf32>
    %cst_13 = arith.constant dense<0.000000e+00> : vector<1x8xf32>
    %34 = vector.multi_reduction <add>, %33, %cst_13 [2] : vector<1x8x8xf32> to vector<1x8xf32>
    %35 = vector.shape_cast %34 : vector<1x8xf32> to vector<1x8x1xf32>
    %c0_14 = arith.constant 0 : index
    %c0_15 = arith.constant 0 : index
    %36 = vector.load %arg6[%c0_14, %c0_15] : memref<1x1xf32, #tpu.memory_space<vmem>>, vector<1x1xf32>
    %37 = vector.extract %36[0, 0] : f32 from vector<1x1xf32>
    %38 = vector.broadcast %37 : f32 to vector<1x8x1xf32>
    %39 = arith.addf %35, %38 : vector<1x8x1xf32>
    %c0_16 = arith.constant 0 : index
    %c0_17 = arith.constant 0 : index
    %c0_18 = arith.constant 0 : index
    %c0_19 = arith.constant 0 : index
    %40 = vector.load %arg3[%c0_16, %c0_17, %c0_18, %c0_19] : memref<1x1x4x256xf32, #tpu.memory_space<vmem>>, vector<1x1x4x256xf32>
    %41 = vector.shape_cast %40 : vector<1x1x4x256xf32> to vector<1x4x256xf32>
    %c0_20 = arith.constant 0 : index
    %c0_21 = arith.constant 0 : index
    %42 = vector.load %arg4[%c0_20, %c0_21] : memref<4x256xi32, #tpu.memory_space<vmem>>, vector<4x256xi32>
    %43 = vector.shape_cast %42 : vector<4x256xi32> to vector<1x4x256xi32>
    %cst_22 = arith.constant 0.000000e+00 : f32
    %44 = vector.broadcast %cst_22 : f32 to vector<1x4x256xf32>
    %c0_i32 = arith.constant 0 : i32
    %45 = vector.broadcast %c0_i32 : i32 to vector<1x4x256xi32>
    %46 = arith.cmpi eq, %43, %45 : vector<1x4x256xi32>
    %47 = vector.extract_strided_slice %39 {offsets = [0, 0, 0], sizes = [1, 1, 1], strides = [1, 1, 1]} : vector<1x8x1xf32> to vector<1x1x1xf32>
    %48 = vector.shape_cast %47 : vector<1x1x1xf32> to vector<1x1x1xf32>
    %49 = vector.broadcast %48 : vector<1x1x1xf32> to vector<1x4x256xf32>
    %50 = arith.select %46, %49, %44 : vector<1x4x256xi1>, vector<1x4x256xf32>
    %c1_i32 = arith.constant 1 : i32
    %51 = vector.broadcast %c1_i32 : i32 to vector<1x4x256xi32>
    %52 = arith.cmpi eq, %43, %51 : vector<1x4x256xi32>
    %53 = vector.extract_strided_slice %39 {offsets = [0, 1, 0], sizes = [1, 1, 1], strides = [1, 1, 1]} : vector<1x8x1xf32> to vector<1x1x1xf32>
    %54 = vector.shape_cast %53 : vector<1x1x1xf32> to vector<1x1x1xf32>
    %55 = vector.broadcast %54 : vector<1x1x1xf32> to vector<1x4x256xf32>
    %56 = arith.select %52, %55, %50 : vector<1x4x256xi1>, vector<1x4x256xf32>
    %c2_i32 = arith.constant 2 : i32
    %57 = vector.broadcast %c2_i32 : i32 to vector<1x4x256xi32>
    %58 = arith.cmpi eq, %43, %57 : vector<1x4x256xi32>
    %59 = vector.extract_strided_slice %39 {offsets = [0, 2, 0], sizes = [1, 1, 1], strides = [1, 1, 1]} : vector<1x8x1xf32> to vector<1x1x1xf32>
    %60 = vector.shape_cast %59 : vector<1x1x1xf32> to vector<1x1x1xf32>
    %61 = vector.broadcast %60 : vector<1x1x1xf32> to vector<1x4x256xf32>
    %62 = arith.select %58, %61, %56 : vector<1x4x256xi1>, vector<1x4x256xf32>
    %c3_i32 = arith.constant 3 : i32
    %63 = vector.broadcast %c3_i32 : i32 to vector<1x4x256xi32>
    %64 = arith.cmpi eq, %43, %63 : vector<1x4x256xi32>
    %65 = vector.extract_strided_slice %39 {offsets = [0, 3, 0], sizes = [1, 1, 1], strides = [1, 1, 1]} : vector<1x8x1xf32> to vector<1x1x1xf32>
    %66 = vector.shape_cast %65 : vector<1x1x1xf32> to vector<1x1x1xf32>
    %67 = vector.broadcast %66 : vector<1x1x1xf32> to vector<1x4x256xf32>
    %68 = arith.select %64, %67, %62 : vector<1x4x256xi1>, vector<1x4x256xf32>
    %c4_i32 = arith.constant 4 : i32
    %69 = vector.broadcast %c4_i32 : i32 to vector<1x4x256xi32>
    %70 = arith.cmpi eq, %43, %69 : vector<1x4x256xi32>
    %71 = vector.extract_strided_slice %39 {offsets = [0, 4, 0], sizes = [1, 1, 1], strides = [1, 1, 1]} : vector<1x8x1xf32> to vector<1x1x1xf32>
    %72 = vector.shape_cast %71 : vector<1x1x1xf32> to vector<1x1x1xf32>
    %73 = vector.broadcast %72 : vector<1x1x1xf32> to vector<1x4x256xf32>
    %74 = arith.select %70, %73, %68 : vector<1x4x256xi1>, vector<1x4x256xf32>
    %c5_i32 = arith.constant 5 : i32
    %75 = vector.broadcast %c5_i32 : i32 to vector<1x4x256xi32>
    %76 = arith.cmpi eq, %43, %75 : vector<1x4x256xi32>
    %77 = vector.extract_strided_slice %39 {offsets = [0, 5, 0], sizes = [1, 1, 1], strides = [1, 1, 1]} : vector<1x8x1xf32> to vector<1x1x1xf32>
    %78 = vector.shape_cast %77 : vector<1x1x1xf32> to vector<1x1x1xf32>
    %79 = vector.broadcast %78 : vector<1x1x1xf32> to vector<1x4x256xf32>
    %80 = arith.select %76, %79, %74 : vector<1x4x256xi1>, vector<1x4x256xf32>
    %c6_i32 = arith.constant 6 : i32
    %81 = vector.broadcast %c6_i32 : i32 to vector<1x4x256xi32>
    %82 = arith.cmpi eq, %43, %81 : vector<1x4x256xi32>
    %83 = vector.extract_strided_slice %39 {offsets = [0, 6, 0], sizes = [1, 1, 1], strides = [1, 1, 1]} : vector<1x8x1xf32> to vector<1x1x1xf32>
    %84 = vector.shape_cast %83 : vector<1x1x1xf32> to vector<1x1x1xf32>
    %85 = vector.broadcast %84 : vector<1x1x1xf32> to vector<1x4x256xf32>
    %86 = arith.select %82, %85, %80 : vector<1x4x256xi1>, vector<1x4x256xf32>
    %c7_i32 = arith.constant 7 : i32
    %87 = vector.broadcast %c7_i32 : i32 to vector<1x4x256xi32>
    %88 = arith.cmpi eq, %43, %87 : vector<1x4x256xi32>
    %89 = vector.extract_strided_slice %39 {offsets = [0, 7, 0], sizes = [1, 1, 1], strides = [1, 1, 1]} : vector<1x8x1xf32> to vector<1x1x1xf32>
    %90 = vector.shape_cast %89 : vector<1x1x1xf32> to vector<1x1x1xf32>
    %91 = vector.broadcast %90 : vector<1x1x1xf32> to vector<1x4x256xf32>
    %92 = arith.select %88, %91, %86 : vector<1x4x256xi1>, vector<1x4x256xf32>
    %93 = arith.mulf %92, %41 : vector<1x4x256xf32>
    %94 = arith.negf %93 : vector<1x4x256xf32>
    %95 = math.exp %94 : vector<1x4x256xf32>
    %cst_23 = arith.constant 1.000000e+00 : f32
    %96 = vector.broadcast %cst_23 : f32 to vector<1x4x256xf32>
    %97 = arith.addf %96, %95 : vector<1x4x256xf32>
    %98 = arith.divf %96, %97 : vector<1x4x256xf32>
    %c0_24 = arith.constant 0 : index
    %c0_25 = arith.constant 0 : index
    %c0_26 = arith.constant 0 : index
    %99 = vector.load %arg7[%c0_24, %c0_25, %c0_26] : memref<1x4x256xf32, #tpu.memory_space<vmem>>, vector<1x4x256xf32>
    tpu.vector_store %arg7[%c0_24, %c0_25, %c0_26], %98 {strides = array<i32>} : memref<1x4x256xf32, #tpu.memory_space<vmem>>, vector<1x4x256xf32>,
    return
  }
  func.func @transform_0(%arg0: i32) -> (i32, i32, i32) {
    %c0_i32 = arith.constant 0 : i32
    %c0_i32_0 = arith.constant 0 : i32
    %c0_i32_1 = arith.constant 0 : i32
    return %arg0, %c0_i32, %c0_i32_0 : i32, i32, i32
  }
  func.func @transform_1(%arg0: i32) -> (i32, i32, i32) {
    %c0_i32 = arith.constant 0 : i32
    %c0_i32_0 = arith.constant 0 : i32
    %c0_i32_1 = arith.constant 0 : i32
    return %arg0, %c0_i32, %c0_i32_0 : i32, i32, i32
  }
  func.func @transform_2(%arg0: i32) -> (i32, i32, i32, i32) {
    %c1_i32 = arith.constant 1 : i32
    %c0_i32 = arith.constant 0 : i32
    %c0_i32_0 = arith.constant 0 : i32
    %c0_i32_1 = arith.constant 0 : i32
    return %arg0, %c1_i32, %c0_i32, %c0_i32_0 : i32, i32, i32, i32
  }
  func.func @transform_3(%arg0: i32) -> (i32, i32) {
    %c0_i32 = arith.constant 0 : i32
    %c0_i32_0 = arith.constant 0 : i32
    %c0_i32_1 = arith.constant 0 : i32
    return %c0_i32, %c0_i32_0 : i32, i32
  }
  func.func @transform_4(%arg0: i32) -> (i32, i32) {
    %c0_i32 = arith.constant 0 : i32
    %c0_i32_0 = arith.constant 0 : i32
    %c0_i32_1 = arith.constant 0 : i32
    return %c0_i32, %c0_i32_0 : i32, i32
  }
  func.func @transform_5(%arg0: i32) -> (i32, i32) {
    %c0_i32 = arith.constant 0 : i32
    %c0_i32_0 = arith.constant 0 : i32
    %c0_i32_1 = arith.constant 0 : i32
    return %c0_i32, %c0_i32_0 : i32, i32
  }
  func.func @transform_6(%arg0: i32) -> (i32, i32, i32) {
    %c0_i32 = arith.constant 0 : i32
    %c0_i32_0 = arith.constant 0 : i32
    %c0_i32_1 = arith.constant 0 : i32
    return %arg0, %c0_i32, %c0_i32_0 : i32, i32, i32
  }
}

</mosaic_0001>

<bundles_post_ra>
// kernel: squeeze.1
= control target key start
LH: loop header
LB: loop body
LE: loop exit
PB: predicated region body
PF: predicated region fallthrough
CT: control target
= control target key end

     0   :  { %vm21_vm0 = vcmask 64512   ;;  %s1718_s14 = smov 120   ;;  %s1719_s15 = smov 104   ;;  %s2411_s0 = inlined_call_operand.vmem [shape: f32[2,1,4,256], index: 0, kind: input, shape index: {}]   ;;  %s2412_s1 = inlined_call_operand.vmem [shape: f32[2,2,2,2,8,2,8], index: 1, kind: output, shape index: {}]  }
   0x1   :  { %v1574_v0 = vld [vmem:[%s2411_s0 + $0x4] sm:$0xf]  ;;  %v18_v1 = vld [vmem:[%s2411_s0] sm:$0xf]  ;;  %v1572_v2 = vld [vmem:[%s2411_s0 + $0xc] sm:$0xf] }
   0x2   :  { %17 = vst [vmem:[#allocation1 + $0x8] sm:$0xf] %v1574_v0  ;;  %19 = vst [vmem:[#allocation1] sm:$0xf] %v18_v1  ;;  %v1573_v3 = vld [vmem:[%s2411_s0 + $0x8] sm:$0xf] }
   0x3   :  { %8 = vst [vmem:[#allocation1 + $0x18] sm:$0xf] %v1572_v2  ;;  %13 = vst [vmem:[#allocation1 + $0x10] sm:$0xf] %v1573_v3  ;;  %s1717_s0 = smov 112   ;;  %s1720_s16 = smov 96  }
   0x4   :  { %s1721_s17 = smov 88   ;;  %s1722_s18 = smov 80  }
   0x5   :  { %s1723_s19 = smov 72   ;;  %s1724_s20 = smov 64  }
   0x6   :  { %s1725_s21 = smov 56   ;;  %s1726_s22 = smov 48  }
   0x7   :  { %s1727_s23 = smov 40   ;;  %s1728_s24 = smov 32  }
   0x8   :  { %s1729_s25 = smov 24   ;;  %s1730_s26 = smov 16  }
   0x9   :  { %v1754_v4 = vld.sshfl [vmem:[#allocation1] sm:$0xff pattern:$0xba983210]   ;;  %s1731_s27 = smov 8  }
   0xa   :  { %v20_v5 = vld [vmem:[#allocation1] sm:$0xf]   ;;  %104 = vrot.lane.b32.xlu1 %v1754_v4, %s1717_s0  ;;  %63 = vrot.lane.b32.xlu0 %v1754_v4, %s1718_s14  ;;  %v124_v6 = vld.sshfl [vmem:[#allocation1 + $0x10] sm:$0xff pattern:$0xba983210]  }
   0xb   :  { %22 = vst.msk [vmem:[#allocation0] sm:$0x1] %vm21_vm0, %v20_v5   ;;  %24 = vst.msk [vmem:[#allocation0 + $0x7f] sm:$0x2] %vm21_vm0, %v20_v5   ;;  %v30_v7 = vld [vmem:[#allocation1 + $0x8] sm:$0xf]  }
   0xc   :  { %26 = vst.msk [vmem:[#allocation0 + $0xfe] sm:$0x4] %vm21_vm0, %v20_v5   ;;  %28 = vst.msk [vmem:[#allocation0 + $0x17d] sm:$0x8] %vm21_vm0, %v20_v5   ;;  %v41_v8 = vld [vmem:[#allocation1 + $0x10] sm:$0xf]  }
   0xd   :  { %33 = vst.msk [vmem:[#allocation0 + $0x40] sm:$0x1] %vm21_vm0, %v30_v7   ;;  %35 = vst.msk [vmem:[#allocation0 + $0xbf] sm:$0x2] %vm21_vm0, %v30_v7   ;;  %v52_v9 = vld [vmem:[#allocation1 + $0x18] sm:$0xf]  }
   0xe   :  { %37 = vst.msk [vmem:[#allocation0 + $0x13e] sm:$0x4] %vm21_vm0, %v30_v7   ;;  %39 = vst.msk [vmem:[#allocation0 + $0x1bd] sm:$0x8] %vm21_vm0, %v30_v7   ;;  %125 = vrot.lane.b32.xlu1 %v124_v6, %s1717_s0  ;;  %84 = vrot.lane.b32.xlu0 %v124_v6, %s1718_s14 }
   0xf   :  { %44 = vst.msk [vmem:[#allocation0 + $0x200] sm:$0x1] %vm21_vm0, %v41_v8   ;;  %46 = vst.msk [vmem:[#allocation0 + $0x27f] sm:$0x2] %vm21_vm0, %v41_v8  }
  0x10   :  { %48 = vst.msk [vmem:[#allocation0 + $0x2fe] sm:$0x4] %vm21_vm0, %v41_v8   ;;  %50 = vst.msk [vmem:[#allocation0 + $0x37d] sm:$0x8] %vm21_vm0, %v41_v8  }
  0x11   :  { %55 = vst.msk [vmem:[#allocation0 + $0x240] sm:$0x1] %vm21_vm0, %v52_v9   ;;  %57 = vst.msk [vmem:[#allocation0 + $0x2bf] sm:$0x2] %vm21_vm0, %v52_v9  }
  0x12   :  { %59 = vst.msk [vmem:[#allocation0 + $0x33e] sm:$0x4] %vm21_vm0, %v52_v9   ;;  %61 = vst.msk [vmem:[#allocation0 + $0x3bd] sm:$0x8] %vm21_vm0, %v52_v9   ;;  %166 = vrot.lane.b32.xlu1 %v124_v6, %s1719_s15  ;;  %145 = vrot.lane.b32.xlu0 %v1754_v4, %s1719_s15 }
  0x16   :  { %207 = vrot.lane.b32.xlu1 %v124_v6, %s1720_s16  ;;  %186 = vrot.lane.b32.xlu0 %v1754_v4, %s1720_s16 }
  0x1a   :  { %248 = vrot.lane.b32.xlu1 %v124_v6, %s1721_s17  ;;  %227 = vrot.lane.b32.xlu0 %v1754_v4, %s1721_s17 }
  0x1e   :  { %289 = vrot.lane.b32.xlu1 %v124_v6, %s1722_s18  ;;  %268 = vrot.lane.b32.xlu0 %v1754_v4, %s1722_s18 }
  0x22   :  { %330 = vrot.lane.b32.xlu1 %v124_v6, %s1723_s19  ;;  %309 = vrot.lane.b32.xlu0 %v1754_v4, %s1723_s19 }
  0x26   :  { %371 = vrot.lane.b32.xlu1 %v124_v6, %s1724_s20  ;;  %350 = vrot.lane.b32.xlu0 %v1754_v4, %s1724_s20 }
  0x2a   :  { %412 = vrot.lane.b32.xlu1 %v124_v6, %s1725_s21  ;;  %391 = vrot.lane.b32.xlu0 %v1754_v4, %s1725_s21 }
  0x2e   :  { %453 = vrot.lane.b32.xlu1 %v124_v6, %s1726_s22  ;;  %432 = vrot.lane.b32.xlu0 %v1754_v4, %s1726_s22 }
  0x32   :  { %494 = vrot.lane.b32.xlu1 %v124_v6, %s1727_s23  ;;  %473 = vrot.lane.b32.xlu0 %v1754_v4, %s1727_s23 }
  0x36   :  { %535 = vrot.lane.b32.xlu1 %v124_v6, %s1728_s24  ;;  %514 = vrot.lane.b32.xlu0 %v1754_v4, %s1728_s24 }
  0x3a   :  { %576 = vrot.lane.b32.xlu1 %v124_v6, %s1729_s25  ;;  %555 = vrot.lane.b32.xlu0 %v1754_v4, %s1729_s25 }
  0x3e   :  { %617 = vrot.lane.b32.xlu1 %v124_v6, %s1730_s26  ;;  %596 = vrot.lane.b32.xlu0 %v1754_v4, %s1730_s26 }
  0x42   :  { %658 = vrot.lane.b32.xlu1 %v124_v6, %s1731_s27  ;;  %637 = vrot.lane.b32.xlu0 %v1754_v4, %s1731_s27 }
  0x7c   :  { %v105_v10 = vpop.permute.xlu1 %104   ;;  %v64_v11 = vpop.permute.xlu0 %63  }
  0x7d   :  { %108 = vst.msk [vmem:[#allocation0 + $0x8] sm:$0x1] %vm21_vm0, %v105_v10   ;;  %110 = vst.msk [vmem:[#allocation0 + $0x87] sm:$0x2] %vm21_vm0, %v105_v10  }
  0x7e   :  { %112 = vst.msk [vmem:[#allocation0 + $0x106] sm:$0x4] %vm21_vm0, %v105_v10   ;;  %114 = vst.msk [vmem:[#allocation0 + $0x185] sm:$0x8] %vm21_vm0, %v105_v10  }
  0x7f   :  { %116 = vst.msk [vmem:[#allocation0 + $0x44] sm:$0x10] %vm21_vm0, %v105_v10   ;;  %118 = vst.msk [vmem:[#allocation0 + $0xc3] sm:$0x20] %vm21_vm0, %v105_v10  }
  0x80   :  { %120 = vst.msk [vmem:[#allocation0 + $0x142] sm:$0x40] %vm21_vm0, %v105_v10   ;;  %122 = vst.msk [vmem:[#allocation0 + $0x1c1] sm:$0x80] %vm21_vm0, %v105_v10   ;;  %v126_v12 = vpop.permute.xlu1 %125   ;;  %v85_v13 = vpop.permute.xlu0 %84  }
  0x81   :  { %67 = vst.msk [vmem:[#allocation0 + $0x1] sm:$0x1] %vm21_vm0, %v64_v11   ;;  %69 = vst.msk [vmem:[#allocation0 + $0x80] sm:$0x2] %vm21_vm0, %v64_v11  }
  0x82   :  { %71 = vst.msk [vmem:[#allocation0 + $0xff] sm:$0x4] %vm21_vm0, %v64_v11   ;;  %73 = vst.msk [vmem:[#allocation0 + $0x17e] sm:$0x8] %vm21_vm0, %v64_v11  }
  0x83   :  { %75 = vst.msk [vmem:[#allocation0 + $0x3d] sm:$0x10] %vm21_vm0, %v64_v11   ;;  %77 = vst.msk [vmem:[#allocation0 + $0xbc] sm:$0x20] %vm21_vm0, %v64_v11  }
  0x84   :  { %79 = vst.msk [vmem:[#allocation0 + $0x13b] sm:$0x40] %vm21_vm0, %v64_v11   ;;  %81 = vst.msk [vmem:[#allocation0 + $0x1ba] sm:$0x80] %vm21_vm0, %v64_v11   ;;  %v167_v17 = vpop.permute.xlu1 %166   ;;  %v146_v18 = vpop.permute.xlu0 %145  }
  0x85   :  { %129 = vst.msk [vmem:[#allocation0 + $0x208] sm:$0x1] %vm21_vm0, %v126_v12   ;;  %131 = vst.msk [vmem:[#allocation0 + $0x287] sm:$0x2] %vm21_vm0, %v126_v12  }
  0x86   :  { %133 = vst.msk [vmem:[#allocation0 + $0x306] sm:$0x4] %vm21_vm0, %v126_v12   ;;  %135 = vst.msk [vmem:[#allocation0 + $0x385] sm:$0x8] %vm21_vm0, %v126_v12  }
  0x87   :  { %137 = vst.msk [vmem:[#allocation0 + $0x244] sm:$0x10] %vm21_vm0, %v126_v12   ;;  %139 = vst.msk [vmem:[#allocation0 + $0x2c3] sm:$0x20] %vm21_vm0, %v126_v12  }
  0x88   :  { %141 = vst.msk [vmem:[#allocation0 + $0x342] sm:$0x40] %vm21_vm0, %v126_v12   ;;  %143 = vst.msk [vmem:[#allocation0 + $0x3c1] sm:$0x80] %vm21_vm0, %v126_v12   ;;  %v680_v14 = vld [vmem:[#allocation0] sm:$0x3]  ;;  %v208_v27 = vpop.permute.xlu1 %207   ;;  %v187_v28 = vpop.permute.xlu0 %186  }
  0x89   :  { %88 = vst.msk [vmem:[#allocation0 + $0x201] sm:$0x1] %vm21_vm0, %v85_v13   ;;  %90 = vst.msk [vmem:[#allocation0 + $0x280] sm:$0x2] %vm21_vm0, %v85_v13   ;;  %v773_v16 = vld [vmem:[#allocation0 + $0x80] sm:$0x3] }
  0x8a   :  { %92 = vst.msk [vmem:[#allocation0 + $0x2ff] sm:$0x4] %vm21_vm0, %v85_v13   ;;  %94 = vst.msk [vmem:[#allocation0 + $0x37e] sm:$0x8] %vm21_vm0, %v85_v13   ;;  %v725_v15 = vld [vmem:[#allocation0 + $0x40] sm:$0x3] }
  0x8b   :  { %96 = vst.msk [vmem:[#allocation0 + $0x23d] sm:$0x10] %vm21_vm0, %v85_v13   ;;  %98 = vst.msk [vmem:[#allocation0 + $0x2bc] sm:$0x20] %vm21_vm0, %v85_v13   ;;  %v821_v19 = vld [vmem:[#allocation0 + $0xc0] sm:$0x3] }
  0x8c   :  { %100 = vst.msk [vmem:[#allocation0 + $0x33b] sm:$0x40] %vm21_vm0, %v85_v13   ;;  %102 = vst.msk [vmem:[#allocation0 + $0x3ba] sm:$0x80] %vm21_vm0, %v85_v13   ;;  %v869_v20 = vld [vmem:[#allocation0 + $0x100] sm:$0x3]  ;;  %v249_v37 = vpop.permute.xlu1 %248   ;;  %v228_v38 = vpop.permute.xlu0 %227  }
  0x8d   :  { %682 = vst [vmem:[%s2412_s1] sm:$0x3] %v680_v14  ;;  %1582 = vst [vmem:[%s2412_s1 + $0x10] sm:$0x3] %v725_v15  ;;  %v917_v21 = vld [vmem:[#allocation0 + $0x140] sm:$0x3] }
  0x8e   :  { %1590 = vst [vmem:[%s2412_s1 + $0x20] sm:$0x3] %v773_v16  ;;  %170 = vst.msk [vmem:[#allocation0 + $0x209] sm:$0x1] %vm21_vm0, %v167_v17   ;;  %v965_v22 = vld [vmem:[#allocation0 + $0x180] sm:$0x3] }
  0x8f   :  { %172 = vst.msk [vmem:[#allocation0 + $0x288] sm:$0x2] %vm21_vm0, %v167_v17   ;;  %174 = vst.msk [vmem:[#allocation0 + $0x307] sm:$0x4] %vm21_vm0, %v167_v17   ;;  %v1013_v23 = vld [vmem:[#allocation0 + $0x1c0] sm:$0x3] }
  0x90   :  { %176 = vst.msk [vmem:[#allocation0 + $0x386] sm:$0x8] %vm21_vm0, %v167_v17   ;;  %178 = vst.msk [vmem:[#allocation0 + $0x245] sm:$0x10] %vm21_vm0, %v167_v17   ;;  %v1061_v24 = vld [vmem:[#allocation0 + $0x200] sm:$0x3]  ;;  %v290_v51 = vpop.permute.xlu1 %289   ;;  %v269_v52 = vpop.permute.xlu0 %268  }
  0x91   :  { %180 = vst.msk [vmem:[#allocation0 + $0x2c4] sm:$0x20] %vm21_vm0, %v167_v17   ;;  %182 = vst.msk [vmem:[#allocation0 + $0x343] sm:$0x40] %vm21_vm0, %v167_v17   ;;  %v1157_v26 = vld [vmem:[#allocation0 + $0x280] sm:$0x3] }
  0x92   :  { %184 = vst.msk [vmem:[#allocation0 + $0x3c2] sm:$0x80] %vm21_vm0, %v167_v17   ;;  %149 = vst.msk [vmem:[#allocation0 + $0x9] sm:$0x1] %vm21_vm0, %v146_v18   ;;  %v1109_v25 = vld [vmem:[#allocation0 + $0x240] sm:$0x3] }
  0x93   :  { %151 = vst.msk [vmem:[#allocation0 + $0x88] sm:$0x2] %vm21_vm0, %v146_v18   ;;  %153 = vst.msk [vmem:[#allocation0 + $0x107] sm:$0x4] %vm21_vm0, %v146_v18   ;;  %v1205_v29 = vld [vmem:[#allocation0 + $0x2c0] sm:$0x3] }
  0x94   :  { %155 = vst.msk [vmem:[#allocation0 + $0x186] sm:$0x8] %vm21_vm0, %v146_v18   ;;  %157 = vst.msk [vmem:[#allocation0 + $0x45] sm:$0x10] %vm21_vm0, %v146_v18   ;;  %v1253_v30 = vld [vmem:[#allocation0 + $0x300] sm:$0x3]  ;;  %v331_v57 = vpop.permute.xlu1 %330   ;;  %v310_v58 = vpop.permute.xlu0 %309  }
  0x95   :  { %159 = vst.msk [vmem:[#allocation0 + $0xc4] sm:$0x20] %vm21_vm0, %v146_v18   ;;  %161 = vst.msk [vmem:[#allocation0 + $0x143] sm:$0x40] %vm21_vm0, %v146_v18   ;;  %v1301_v31 = vld [vmem:[#allocation0 + $0x340] sm:$0x3] }
  0x96   :  { %163 = vst.msk [vmem:[#allocation0 + $0x1c2] sm:$0x80] %vm21_vm0, %v146_v18   ;;  %1598 = vst [vmem:[%s2412_s1 + $0x30] sm:$0x3] %v821_v19  ;;  %v1349_v32 = vld [vmem:[#allocation0 + $0x380] sm:$0x3] }
  0x97   :  { %1606 = vst [vmem:[%s2412_s1 + $0x40] sm:$0x3] %v869_v20  ;;  %1614 = vst [vmem:[%s2412_s1 + $0x50] sm:$0x3] %v917_v21  ;;  %v1397_v33 = vld [vmem:[#allocation0 + $0x3c0] sm:$0x3] }
  0x98   :  { %1622 = vst [vmem:[%s2412_s1 + $0x60] sm:$0x3] %v965_v22  ;;  %1630 = vst [vmem:[%s2412_s1 + $0x70] sm:$0x3] %v1013_v23  ;;  %v1067_v34 = vld [vmem:[#allocation0 + $0x208] sm:$0x3]  ;;  %v372_v7 = vpop.permute.xlu1 %371   ;;  %v351_v8 = vpop.permute.xlu0 %350  }
  0x99   :  { %1638 = vst [vmem:[%s2412_s1 + $0x80] sm:$0x3] %v1061_v24  ;;  %1646 = vst [vmem:[%s2412_s1 + $0x90] sm:$0x3] %v1109_v25  ;;  %v1115_v35 = vld [vmem:[#allocation0 + $0x248] sm:$0x3] }
  0x9a   :  { %1654 = vst [vmem:[%s2412_s1 + $0xa0] sm:$0x3] %v1157_v26  ;;  %211 = vst.msk [vmem:[#allocation0 + $0x210] sm:$0x1] %vm21_vm0, %v208_v27   ;;  %v1163_v36 = vld [vmem:[#allocation0 + $0x288] sm:$0x3] }
  0x9b   :  { %213 = vst.msk [vmem:[#allocation0 + $0x28f] sm:$0x2] %vm21_vm0, %v208_v27   ;;  %215 = vst.msk [vmem:[#allocation0 + $0x30e] sm:$0x4] %vm21_vm0, %v208_v27   ;;  %v1211_v39 = vld [vmem:[#allocation0 + $0x2c8] sm:$0x3] }
  0x9c   :  { %217 = vst.msk [vmem:[#allocation0 + $0x38d] sm:$0x8] %vm21_vm0, %v208_v27   ;;  %219 = vst.msk [vmem:[#allocation0 + $0x24c] sm:$0x10] %vm21_vm0, %v208_v27   ;;  %v1259_v40 = vld [vmem:[#allocation0 + $0x308] sm:$0x3]  ;;  %v413_v13 = vpop.permute.xlu1 %412   ;;  %v392_v14 = vpop.permute.xlu0 %391  }
  0x9d   :  { %221 = vst.msk [vmem:[#allocation0 + $0x2cb] sm:$0x20] %vm21_vm0, %v208_v27   ;;  %223 = vst.msk [vmem:[#allocation0 + $0x34a] sm:$0x40] %vm21_vm0, %v208_v27   ;;  %v1307_v41 = vld [vmem:[#allocation0 + $0x348] sm:$0x3] }
  0x9e   :  { %225 = vst.msk [vmem:[#allocation0 + $0x3c9] sm:$0x80] %vm21_vm0, %v208_v27   ;;  %190 = vst.msk [vmem:[#allocation0 + $0x10] sm:$0x1] %vm21_vm0, %v187_v28   ;;  %v1355_v42 = vld [vmem:[#allocation0 + $0x388] sm:$0x3] }
  0x9f   :  { %192 = vst.msk [vmem:[#allocation0 + $0x8f] sm:$0x2] %vm21_vm0, %v187_v28   ;;  %194 = vst.msk [vmem:[#allocation0 + $0x10e] sm:$0x4] %vm21_vm0, %v187_v28   ;;  %v1403_v43 = vld [vmem:[#allocation0 + $0x3c8] sm:$0x3] }
  0xa0   :  { %196 = vst.msk [vmem:[#allocation0 + $0x18d] sm:$0x8] %vm21_vm0, %v187_v28   ;;  %198 = vst.msk [vmem:[#allocation0 + $0x4c] sm:$0x10] %vm21_vm0, %v187_v28   ;;  %v1019_v44 = vld [vmem:[#allocation0 + $0x1c8] sm:$0x3]  ;;  %v454_v27 = vpop.permute.xlu1 %453  }
  0xa1   :  { %200 = vst.msk [vmem:[#allocation0 + $0xcb] sm:$0x20] %vm21_vm0, %v187_v28   ;;  %202 = vst.msk [vmem:[#allocation0 + $0x14a] sm:$0x40] %vm21_vm0, %v187_v28   ;;  %v684_v45 = vld [vmem:[#allocation0 + $0x8] sm:$0x3] }
  0xa2   :  { %204 = vst.msk [vmem:[#allocation0 + $0x1c9] sm:$0x80] %vm21_vm0, %v187_v28   ;;  %1662 = vst [vmem:[%s2412_s1 + $0xb0] sm:$0x3] %v1205_v29  ;;  %v731_v46 = vld [vmem:[#allocation0 + $0x48] sm:$0x3]  ;;  %v433_v28 = vpop.permute.xlu0 %432  }
  0xa3   :  { %1670 = vst [vmem:[%s2412_s1 + $0xc0] sm:$0x3] %v1253_v30  ;;  %1678 = vst [vmem:[%s2412_s1 + $0xd0] sm:$0x3] %v1301_v31  ;;  %v779_v47 = vld [vmem:[#allocation0 + $0x88] sm:$0x3] }
  0xa4   :  { %1686 = vst [vmem:[%s2412_s1 + $0xe0] sm:$0x3] %v1349_v32  ;;  %1694 = vst [vmem:[%s2412_s1 + $0xf0] sm:$0x3] %v1397_v33  ;;  %v827_v48 = vld [vmem:[#allocation0 + $0xc8] sm:$0x3]  ;;  %v495_v33 = vpop.permute.xlu1 %494  }
  0xa5   :  { %1639 = vst [vmem:[%s2412_s1 + $0x82] sm:$0x3] %v1067_v34  ;;  %1647 = vst [vmem:[%s2412_s1 + $0x92] sm:$0x3] %v1115_v35  ;;  %v875_v49 = vld [vmem:[#allocation0 + $0x108] sm:$0x3] }
  0xa6   :  { %1655 = vst [vmem:[%s2412_s1 + $0xa2] sm:$0x3] %v1163_v36  ;;  %252 = vst.msk [vmem:[#allocation0 + $0x211] sm:$0x1] %vm21_vm0, %v249_v37   ;;  %v923_v50 = vld [vmem:[#allocation0 + $0x148] sm:$0x3]  ;;  %v474_v34 = vpop.permute.xlu0 %473  }
  0xa7   :  { %254 = vst.msk [vmem:[#allocation0 + $0x290] sm:$0x2] %vm21_vm0, %v249_v37   ;;  %256 = vst.msk [vmem:[#allocation0 + $0x30f] sm:$0x4] %vm21_vm0, %v249_v37   ;;  %v971_v53 = vld [vmem:[#allocation0 + $0x188] sm:$0x3] }
  0xa8   :  { %258 = vst.msk [vmem:[#allocation0 + $0x38e] sm:$0x8] %vm21_vm0, %v249_v37   ;;  %260 = vst.msk [vmem:[#allocation0 + $0x24d] sm:$0x10] %vm21_vm0, %v249_v37  }
  0xa9   :  { %262 = vst.msk [vmem:[#allocation0 + $0x2cc] sm:$0x20] %vm21_vm0, %v249_v37   ;;  %264 = vst.msk [vmem:[#allocation0 + $0x34b] sm:$0x40] %vm21_vm0, %v249_v37  }
  0xaa   :  { %266 = vst.msk [vmem:[#allocation0 + $0x3ca] sm:$0x80] %vm21_vm0, %v249_v37   ;;  %231 = vst.msk [vmem:[#allocation0 + $0x11] sm:$0x1] %vm21_vm0, %v228_v38  }
  0xab   :  { %233 = vst.msk [vmem:[#allocation0 + $0x90] sm:$0x2] %vm21_vm0, %v228_v38   ;;  %235 = vst.msk [vmem:[#allocation0 + $0x10f] sm:$0x4] %vm21_vm0, %v228_v38  }
  0xac   :  { %237 = vst.msk [vmem:[#allocation0 + $0x18e] sm:$0x8] %vm21_vm0, %v228_v38   ;;  %239 = vst.msk [vmem:[#allocation0 + $0x4d] sm:$0x10] %vm21_vm0, %v228_v38  }
  0xad   :  { %241 = vst.msk [vmem:[#allocation0 + $0xcc] sm:$0x20] %vm21_vm0, %v228_v38   ;;  %243 = vst.msk [vmem:[#allocation0 + $0x14b] sm:$0x40] %vm21_vm0, %v228_v38   ;;  %v1073_v54 = vld [vmem:[#allocation0 + $0x210] sm:$0x3] }
  0xae   :  { %245 = vst.msk [vmem:[#allocation0 + $0x1ca] sm:$0x80] %vm21_vm0, %v228_v38   ;;  %1663 = vst [vmem:[%s2412_s1 + $0xb2] sm:$0x3] %v1211_v39  ;;  %v1169_v55 = vld [vmem:[#allocation0 + $0x290] sm:$0x3] }
  0xaf   :  { %1671 = vst [vmem:[%s2412_s1 + $0xc2] sm:$0x3] %v1259_v40  ;;  %1679 = vst [vmem:[%s2412_s1 + $0xd2] sm:$0x3] %v1307_v41  ;;  %v1121_v56 = vld [vmem:[#allocation0 + $0x250] sm:$0x3] }
  0xb0   :  { %1631 = vst [vmem:[%s2412_s1 + $0x72] sm:$0x3] %v1019_v44  ;;  %1687 = vst [vmem:[%s2412_s1 + $0xe2] sm:$0x3] %v1355_v42  ;;  %v1217_v59 = vld [vmem:[#allocation0 + $0x2d0] sm:$0x3] }
  0xb1   :  { %1695 = vst [vmem:[%s2412_s1 + $0xf2] sm:$0x3] %v1403_v43  ;;  %1575 = vst [vmem:[%s2412_s1 + $0x2] sm:$0x3] %v684_v45  ;;  %v1265_v60 = vld [vmem:[#allocation0 + $0x310] sm:$0x3] }
  0xb2   :  { %1583 = vst [vmem:[%s2412_s1 + $0x12] sm:$0x3] %v731_v46  ;;  %1591 = vst [vmem:[%s2412_s1 + $0x22] sm:$0x3] %v779_v47  ;;  %v1313_v61 = vld [vmem:[#allocation0 + $0x350] sm:$0x3]  ;;  %v536_v47 = vpop.permute.xlu1 %535  }
  0xb3   :  { %1599 = vst [vmem:[%s2412_s1 + $0x32] sm:$0x3] %v827_v48  ;;  %1607 = vst [vmem:[%s2412_s1 + $0x42] sm:$0x3] %v875_v49  ;;  %v1361_v62 = vld [vmem:[#allocation0 + $0x390] sm:$0x3]  ;;  %v515_v48 = vpop.permute.xlu0 %514  }
  0xb4   :  { %1615 = vst [vmem:[%s2412_s1 + $0x52] sm:$0x3] %v923_v50  ;;  %293 = vst.msk [vmem:[#allocation0 + $0x218] sm:$0x1] %vm21_vm0, %v290_v51   ;;  %v1409_v63 = vld [vmem:[#allocation0 + $0x3d0] sm:$0x3] }
  0xb5   :  { %295 = vst.msk [vmem:[#allocation0 + $0x297] sm:$0x2] %vm21_vm0, %v290_v51   ;;  %297 = vst.msk [vmem:[#allocation0 + $0x316] sm:$0x4] %vm21_vm0, %v290_v51   ;;  %v737_v0 = vld [vmem:[#allocation0 + $0x50] sm:$0x3] }
  0xb6   :  { %299 = vst.msk [vmem:[#allocation0 + $0x395] sm:$0x8] %vm21_vm0, %v290_v51   ;;  %301 = vst.msk [vmem:[#allocation0 + $0x254] sm:$0x10] %vm21_vm0, %v290_v51   ;;  %v833_v1 = vld [vmem:[#allocation0 + $0xd0] sm:$0x3] }
  0xb7   :  { %303 = vst.msk [vmem:[#allocation0 + $0x2d3] sm:$0x20] %vm21_vm0, %v290_v51   ;;  %305 = vst.msk [vmem:[#allocation0 + $0x352] sm:$0x40] %vm21_vm0, %v290_v51   ;;  %v929_v2 = vld [vmem:[#allocation0 + $0x150] sm:$0x3] }
  0xb8   :  { %307 = vst.msk [vmem:[#allocation0 + $0x3d1] sm:$0x80] %vm21_vm0, %v290_v51   ;;  %272 = vst.msk [vmem:[#allocation0 + $0x18] sm:$0x1] %vm21_vm0, %v269_v52   ;;  %v689_v3 = vld [vmem:[#allocation0 + $0x10] sm:$0x3] }
  0xb9   :  { %274 = vst.msk [vmem:[#allocation0 + $0x97] sm:$0x2] %vm21_vm0, %v269_v52   ;;  %276 = vst.msk [vmem:[#allocation0 + $0x116] sm:$0x4] %vm21_vm0, %v269_v52   ;;  %v785_v4 = vld [vmem:[#allocation0 + $0x90] sm:$0x3] }
  0xba   :  { %278 = vst.msk [vmem:[#allocation0 + $0x195] sm:$0x8] %vm21_vm0, %v269_v52   ;;  %280 = vst.msk [vmem:[#allocation0 + $0x54] sm:$0x10] %vm21_vm0, %v269_v52   ;;  %v881_v5 = vld [vmem:[#allocation0 + $0x110] sm:$0x3] }
  0xbb   :  { %282 = vst.msk [vmem:[#allocation0 + $0xd3] sm:$0x20] %vm21_vm0, %v269_v52   ;;  %284 = vst.msk [vmem:[#allocation0 + $0x152] sm:$0x40] %vm21_vm0, %v269_v52   ;;  %v977_v6 = vld [vmem:[#allocation0 + $0x190] sm:$0x3] }
  0xbc   :  { %286 = vst.msk [vmem:[#allocation0 + $0x1d1] sm:$0x80] %vm21_vm0, %v269_v52   ;;  %1623 = vst [vmem:[%s2412_s1 + $0x62] sm:$0x3] %v971_v53  ;;  %v1025_v9 = vld [vmem:[#allocation0 + $0x1d0] sm:$0x3]  ;;  %v577_v53 = vpop.permute.xlu1 %576  }
  0xbd   :  { %1640 = vst [vmem:[%s2412_s1 + $0x84] sm:$0x3] %v1073_v54  ;;  %1656 = vst [vmem:[%s2412_s1 + $0xa4] sm:$0x3] %v1169_v55  ;;  %v556_v54 = vpop.permute.xlu0 %555  }
  0xbe   :  { %1648 = vst [vmem:[%s2412_s1 + $0x94] sm:$0x3] %v1121_v56  ;;  %334 = vst.msk [vmem:[#allocation0 + $0x219] sm:$0x1] %vm21_vm0, %v331_v57  }
  0xbf   :  { %336 = vst.msk [vmem:[#allocation0 + $0x298] sm:$0x2] %vm21_vm0, %v331_v57   ;;  %338 = vst.msk [vmem:[#allocation0 + $0x317] sm:$0x4] %vm21_vm0, %v331_v57  }
  0xc0   :  { %340 = vst.msk [vmem:[#allocation0 + $0x396] sm:$0x8] %vm21_vm0, %v331_v57   ;;  %342 = vst.msk [vmem:[#allocation0 + $0x255] sm:$0x10] %vm21_vm0, %v331_v57  }
  0xc1   :  { %344 = vst.msk [vmem:[#allocation0 + $0x2d4] sm:$0x20] %vm21_vm0, %v331_v57   ;;  %346 = vst.msk [vmem:[#allocation0 + $0x353] sm:$0x40] %vm21_vm0, %v331_v57  }
  0xc2   :  { %348 = vst.msk [vmem:[#allocation0 + $0x3d2] sm:$0x80] %vm21_vm0, %v331_v57   ;;  %313 = vst.msk [vmem:[#allocation0 + $0x19] sm:$0x1] %vm21_vm0, %v310_v58  }
  0xc3   :  { %315 = vst.msk [vmem:[#allocation0 + $0x98] sm:$0x2] %vm21_vm0, %v310_v58   ;;  %317 = vst.msk [vmem:[#allocation0 + $0x117] sm:$0x4] %vm21_vm0, %v310_v58  }
  0xc4   :  { %319 = vst.msk [vmem:[#allocation0 + $0x196] sm:$0x8] %vm21_vm0, %v310_v58   ;;  %321 = vst.msk [vmem:[#allocation0 + $0x55] sm:$0x10] %vm21_vm0, %v310_v58  }
  0xc5   :  { %323 = vst.msk [vmem:[#allocation0 + $0xd4] sm:$0x20] %vm21_vm0, %v310_v58   ;;  %325 = vst.msk [vmem:[#allocation0 + $0x153] sm:$0x40] %vm21_vm0, %v310_v58   ;;  %v1079_v12 = vld [vmem:[#allocation0 + $0x218] sm:$0x3] }
  0xc6   :  { %327 = vst.msk [vmem:[#allocation0 + $0x1d2] sm:$0x80] %vm21_vm0, %v310_v58   ;;  %1664 = vst [vmem:[%s2412_s1 + $0xb4] sm:$0x3] %v1217_v59  ;;  %v1271_v11 = vld [vmem:[#allocation0 + $0x318] sm:$0x3] }
  0xc7   :  { %1672 = vst [vmem:[%s2412_s1 + $0xc4] sm:$0x3] %v1265_v60  ;;  %1680 = vst [vmem:[%s2412_s1 + $0xd4] sm:$0x3] %v1313_v61  ;;  %v1127_v10 = vld [vmem:[#allocation0 + $0x258] sm:$0x3] }
  0xc8   :  { %1584 = vst [vmem:[%s2412_s1 + $0x14] sm:$0x3] %v737_v0  ;;  %1688 = vst [vmem:[%s2412_s1 + $0xe4] sm:$0x3] %v1361_v62  ;;  %v1175_v15 = vld [vmem:[#allocation0 + $0x298] sm:$0x3] }
  0xc9   :  { %1696 = vst [vmem:[%s2412_s1 + $0xf4] sm:$0x3] %v1409_v63  ;;  %1600 = vst [vmem:[%s2412_s1 + $0x34] sm:$0x3] %v833_v1  ;;  %v1223_v16 = vld [vmem:[#allocation0 + $0x2d8] sm:$0x3] }
  0xca   :  { %1616 = vst [vmem:[%s2412_s1 + $0x54] sm:$0x3] %v929_v2  ;;  %1576 = vst [vmem:[%s2412_s1 + $0x4] sm:$0x3] %v689_v3  ;;  %v1319_v17 = vld [vmem:[#allocation0 + $0x358] sm:$0x3]  ;;  %v618_v3 = vpop.permute.xlu1 %617  }
  0xcb   :  { %1592 = vst [vmem:[%s2412_s1 + $0x24] sm:$0x3] %v785_v4  ;;  %1608 = vst [vmem:[%s2412_s1 + $0x44] sm:$0x3] %v881_v5  ;;  %v1367_v18 = vld [vmem:[#allocation0 + $0x398] sm:$0x3]  ;;  %v597_v4 = vpop.permute.xlu0 %596  }
  0xcc   :  { %1624 = vst [vmem:[%s2412_s1 + $0x64] sm:$0x3] %v977_v6  ;;  %375 = vst.msk [vmem:[#allocation0 + $0x220] sm:$0x1] %vm21_vm0, %v372_v7   ;;  %v1415_v19 = vld [vmem:[#allocation0 + $0x3d8] sm:$0x3] }
  0xcd   :  { %377 = vst.msk [vmem:[#allocation0 + $0x29f] sm:$0x2] %vm21_vm0, %v372_v7   ;;  %379 = vst.msk [vmem:[#allocation0 + $0x31e] sm:$0x4] %vm21_vm0, %v372_v7   ;;  %v983_v20 = vld [vmem:[#allocation0 + $0x198] sm:$0x3] }
  0xce   :  { %381 = vst.msk [vmem:[#allocation0 + $0x39d] sm:$0x8] %vm21_vm0, %v372_v7   ;;  %383 = vst.msk [vmem:[#allocation0 + $0x25c] sm:$0x10] %vm21_vm0, %v372_v7   ;;  %v695_v21 = vld [vmem:[#allocation0 + $0x18] sm:$0x3] }
  0xcf   :  { %385 = vst.msk [vmem:[#allocation0 + $0x2db] sm:$0x20] %vm21_vm0, %v372_v7   ;;  %387 = vst.msk [vmem:[#allocation0 + $0x35a] sm:$0x40] %vm21_vm0, %v372_v7   ;;  %v743_v22 = vld [vmem:[#allocation0 + $0x58] sm:$0x3] }
  0xd0   :  { %389 = vst.msk [vmem:[#allocation0 + $0x3d9] sm:$0x80] %vm21_vm0, %v372_v7   ;;  %354 = vst.msk [vmem:[#allocation0 + $0x20] sm:$0x1] %vm21_vm0, %v351_v8   ;;  %v791_v23 = vld [vmem:[#allocation0 + $0x98] sm:$0x3] }
  0xd1   :  { %356 = vst.msk [vmem:[#allocation0 + $0x9f] sm:$0x2] %vm21_vm0, %v351_v8   ;;  %358 = vst.msk [vmem:[#allocation0 + $0x11e] sm:$0x4] %vm21_vm0, %v351_v8   ;;  %v839_v24 = vld [vmem:[#allocation0 + $0xd8] sm:$0x3] }
  0xd2   :  { %360 = vst.msk [vmem:[#allocation0 + $0x19d] sm:$0x8] %vm21_vm0, %v351_v8   ;;  %362 = vst.msk [vmem:[#allocation0 + $0x5c] sm:$0x10] %vm21_vm0, %v351_v8   ;;  %v887_v25 = vld [vmem:[#allocation0 + $0x118] sm:$0x3] }
  0xd3   :  { %364 = vst.msk [vmem:[#allocation0 + $0xdb] sm:$0x20] %vm21_vm0, %v351_v8   ;;  %366 = vst.msk [vmem:[#allocation0 + $0x15a] sm:$0x40] %vm21_vm0, %v351_v8   ;;  %v935_v26 = vld [vmem:[#allocation0 + $0x158] sm:$0x3] }
  0xd4   :  { %368 = vst.msk [vmem:[#allocation0 + $0x1d9] sm:$0x80] %vm21_vm0, %v351_v8   ;;  %1632 = vst [vmem:[%s2412_s1 + $0x74] sm:$0x3] %v1025_v9  ;;  %v1031_v29 = vld [vmem:[#allocation0 + $0x1d8] sm:$0x3]  ;;  %v659_v9 = vpop.permute.xlu1 %658  }
  0xd5   :  { %1649 = vst [vmem:[%s2412_s1 + $0x96] sm:$0x3] %v1127_v10  ;;  %1673 = vst [vmem:[%s2412_s1 + $0xc6] sm:$0x3] %v1271_v11  ;;  %v638_v10 = vpop.permute.xlu0 %637  }
  0xd6   :  { %1641 = vst [vmem:[%s2412_s1 + $0x86] sm:$0x3] %v1079_v12  ;;  %416 = vst.msk [vmem:[#allocation0 + $0x221] sm:$0x1] %vm21_vm0, %v413_v13  }
  0xd7   :  { %418 = vst.msk [vmem:[#allocation0 + $0x2a0] sm:$0x2] %vm21_vm0, %v413_v13   ;;  %420 = vst.msk [vmem:[#allocation0 + $0x31f] sm:$0x4] %vm21_vm0, %v413_v13  }
  0xd8   :  { %422 = vst.msk [vmem:[#allocation0 + $0x39e] sm:$0x8] %vm21_vm0, %v413_v13   ;;  %424 = vst.msk [vmem:[#allocation0 + $0x25d] sm:$0x10] %vm21_vm0, %v413_v13  }
  0xd9   :  { %426 = vst.msk [vmem:[#allocation0 + $0x2dc] sm:$0x20] %vm21_vm0, %v413_v13   ;;  %428 = vst.msk [vmem:[#allocation0 + $0x35b] sm:$0x40] %vm21_vm0, %v413_v13  }
  0xda   :  { %430 = vst.msk [vmem:[#allocation0 + $0x3da] sm:$0x80] %vm21_vm0, %v413_v13   ;;  %395 = vst.msk [vmem:[#allocation0 + $0x21] sm:$0x1] %vm21_vm0, %v392_v14  }
  0xdb   :  { %397 = vst.msk [vmem:[#allocation0 + $0xa0] sm:$0x2] %vm21_vm0, %v392_v14   ;;  %399 = vst.msk [vmem:[#allocation0 + $0x11f] sm:$0x4] %vm21_vm0, %v392_v14  }
  0xdc   :  { %401 = vst.msk [vmem:[#allocation0 + $0x19e] sm:$0x8] %vm21_vm0, %v392_v14   ;;  %403 = vst.msk [vmem:[#allocation0 + $0x5d] sm:$0x10] %vm21_vm0, %v392_v14  }
  0xdd   :  { %405 = vst.msk [vmem:[#allocation0 + $0xdc] sm:$0x20] %vm21_vm0, %v392_v14   ;;  %407 = vst.msk [vmem:[#allocation0 + $0x15b] sm:$0x40] %vm21_vm0, %v392_v14   ;;  %v1085_v30 = vld [vmem:[#allocation0 + $0x220] sm:$0x3] }
  0xde   :  { %409 = vst.msk [vmem:[#allocation0 + $0x1da] sm:$0x80] %vm21_vm0, %v392_v14   ;;  %1657 = vst [vmem:[%s2412_s1 + $0xa6] sm:$0x3] %v1175_v15  ;;  %v1181_v32 = vld [vmem:[#allocation0 + $0x2a0] sm:$0x3] }
  0xdf   :  { %1665 = vst [vmem:[%s2412_s1 + $0xb6] sm:$0x3] %v1223_v16  ;;  %1681 = vst [vmem:[%s2412_s1 + $0xd6] sm:$0x3] %v1319_v17  ;;  %v1133_v31 = vld [vmem:[#allocation0 + $0x260] sm:$0x3] }
  0xe0   :  { %1625 = vst [vmem:[%s2412_s1 + $0x66] sm:$0x3] %v983_v20  ;;  %1689 = vst [vmem:[%s2412_s1 + $0xe6] sm:$0x3] %v1367_v18  ;;  %v1229_v35 = vld [vmem:[#allocation0 + $0x2e0] sm:$0x3] }
  0xe1   :  { %1697 = vst [vmem:[%s2412_s1 + $0xf6] sm:$0x3] %v1415_v19  ;;  %1577 = vst [vmem:[%s2412_s1 + $0x6] sm:$0x3] %v695_v21  ;;  %v1277_v36 = vld [vmem:[#allocation0 + $0x320] sm:$0x3] }
  0xe2   :  { %1585 = vst [vmem:[%s2412_s1 + $0x16] sm:$0x3] %v743_v22  ;;  %1593 = vst [vmem:[%s2412_s1 + $0x26] sm:$0x3] %v791_v23  ;;  %v1325_v37 = vld [vmem:[#allocation0 + $0x360] sm:$0x3] }
  0xe3   :  { %1601 = vst [vmem:[%s2412_s1 + $0x36] sm:$0x3] %v839_v24  ;;  %1609 = vst [vmem:[%s2412_s1 + $0x46] sm:$0x3] %v887_v25  ;;  %v1373_v38 = vld [vmem:[#allocation0 + $0x3a0] sm:$0x3] }
  0xe4   :  { %1617 = vst [vmem:[%s2412_s1 + $0x56] sm:$0x3] %v935_v26  ;;  %457 = vst.msk [vmem:[#allocation0 + $0x228] sm:$0x1] %vm21_vm0, %v454_v27   ;;  %v1421_v39 = vld [vmem:[#allocation0 + $0x3e0] sm:$0x3] }
  0xe5   :  { %459 = vst.msk [vmem:[#allocation0 + $0x2a7] sm:$0x2] %vm21_vm0, %v454_v27   ;;  %461 = vst.msk [vmem:[#allocation0 + $0x326] sm:$0x4] %vm21_vm0, %v454_v27   ;;  %v701_v40 = vld [vmem:[#allocation0 + $0x20] sm:$0x3] }
  0xe6   :  { %463 = vst.msk [vmem:[#allocation0 + $0x3a5] sm:$0x8] %vm21_vm0, %v454_v27   ;;  %465 = vst.msk [vmem:[#allocation0 + $0x264] sm:$0x10] %vm21_vm0, %v454_v27   ;;  %v749_v41 = vld [vmem:[#allocation0 + $0x60] sm:$0x3] }
  0xe7   :  { %467 = vst.msk [vmem:[#allocation0 + $0x2e3] sm:$0x20] %vm21_vm0, %v454_v27   ;;  %469 = vst.msk [vmem:[#allocation0 + $0x362] sm:$0x40] %vm21_vm0, %v454_v27   ;;  %v797_v42 = vld [vmem:[#allocation0 + $0xa0] sm:$0x3] }
  0xe8   :  { %471 = vst.msk [vmem:[#allocation0 + $0x3e1] sm:$0x80] %vm21_vm0, %v454_v27   ;;  %436 = vst.msk [vmem:[#allocation0 + $0x28] sm:$0x1] %vm21_vm0, %v433_v28   ;;  %v845_v43 = vld [vmem:[#allocation0 + $0xe0] sm:$0x3] }
  0xe9   :  { %438 = vst.msk [vmem:[#allocation0 + $0xa7] sm:$0x2] %vm21_vm0, %v433_v28   ;;  %440 = vst.msk [vmem:[#allocation0 + $0x126] sm:$0x4] %vm21_vm0, %v433_v28   ;;  %v893_v44 = vld [vmem:[#allocation0 + $0x120] sm:$0x3] }
  0xea   :  { %442 = vst.msk [vmem:[#allocation0 + $0x1a5] sm:$0x8] %vm21_vm0, %v433_v28   ;;  %444 = vst.msk [vmem:[#allocation0 + $0x64] sm:$0x10] %vm21_vm0, %v433_v28   ;;  %v941_v45 = vld [vmem:[#allocation0 + $0x160] sm:$0x3] }
  0xeb   :  { %446 = vst.msk [vmem:[#allocation0 + $0xe3] sm:$0x20] %vm21_vm0, %v433_v28   ;;  %448 = vst.msk [vmem:[#allocation0 + $0x162] sm:$0x40] %vm21_vm0, %v433_v28   ;;  %v989_v46 = vld [vmem:[#allocation0 + $0x1a0] sm:$0x3] }
  0xec   :  { %450 = vst.msk [vmem:[#allocation0 + $0x1e1] sm:$0x80] %vm21_vm0, %v433_v28   ;;  %1633 = vst [vmem:[%s2412_s1 + $0x76] sm:$0x3] %v1031_v29  ;;  %v1037_v49 = vld [vmem:[#allocation0 + $0x1e0] sm:$0x3] }
  0xed   :  { %1642 = vst [vmem:[%s2412_s1 + $0x88] sm:$0x3] %v1085_v30  ;;  %1650 = vst [vmem:[%s2412_s1 + $0x98] sm:$0x3] %v1133_v31 }
  0xee   :  { %1658 = vst [vmem:[%s2412_s1 + $0xa8] sm:$0x3] %v1181_v32  ;;  %498 = vst.msk [vmem:[#allocation0 + $0x229] sm:$0x1] %vm21_vm0, %v495_v33  }
  0xef   :  { %500 = vst.msk [vmem:[#allocation0 + $0x2a8] sm:$0x2] %vm21_vm0, %v495_v33   ;;  %502 = vst.msk [vmem:[#allocation0 + $0x327] sm:$0x4] %vm21_vm0, %v495_v33  }
  0xf0   :  { %504 = vst.msk [vmem:[#allocation0 + $0x3a6] sm:$0x8] %vm21_vm0, %v495_v33   ;;  %506 = vst.msk [vmem:[#allocation0 + $0x265] sm:$0x10] %vm21_vm0, %v495_v33  }
  0xf1   :  { %508 = vst.msk [vmem:[#allocation0 + $0x2e4] sm:$0x20] %vm21_vm0, %v495_v33   ;;  %510 = vst.msk [vmem:[#allocation0 + $0x363] sm:$0x40] %vm21_vm0, %v495_v33  }
  0xf2   :  { %512 = vst.msk [vmem:[#allocation0 + $0x3e2] sm:$0x80] %vm21_vm0, %v495_v33   ;;  %477 = vst.msk [vmem:[#allocation0 + $0x29] sm:$0x1] %vm21_vm0, %v474_v34  }
  0xf3   :  { %479 = vst.msk [vmem:[#allocation0 + $0xa8] sm:$0x2] %vm21_vm0, %v474_v34   ;;  %481 = vst.msk [vmem:[#allocation0 + $0x127] sm:$0x4] %vm21_vm0, %v474_v34  }
  0xf4   :  { %483 = vst.msk [vmem:[#allocation0 + $0x1a6] sm:$0x8] %vm21_vm0, %v474_v34   ;;  %485 = vst.msk [vmem:[#allocation0 + $0x65] sm:$0x10] %vm21_vm0, %v474_v34  }
  0xf5   :  { %487 = vst.msk [vmem:[#allocation0 + $0xe4] sm:$0x20] %vm21_vm0, %v474_v34   ;;  %489 = vst.msk [vmem:[#allocation0 + $0x163] sm:$0x40] %vm21_vm0, %v474_v34   ;;  %v1091_v57 = vld [vmem:[#allocation0 + $0x228] sm:$0x3] }
  0xf6   :  { %491 = vst.msk [vmem:[#allocation0 + $0x1e2] sm:$0x80] %vm21_vm0, %v474_v34   ;;  %1666 = vst [vmem:[%s2412_s1 + $0xb8] sm:$0x3] %v1229_v35  ;;  %v1187_v51 = vld [vmem:[#allocation0 + $0x2a8] sm:$0x3] }
  0xf7   :  { %1674 = vst [vmem:[%s2412_s1 + $0xc8] sm:$0x3] %v1277_v36  ;;  %1682 = vst [vmem:[%s2412_s1 + $0xd8] sm:$0x3] %v1325_v37  ;;  %v1139_v50 = vld [vmem:[#allocation0 + $0x268] sm:$0x3] }
  0xf8   :  { %1690 = vst [vmem:[%s2412_s1 + $0xe8] sm:$0x3] %v1373_v38  ;;  %1698 = vst [vmem:[%s2412_s1 + $0xf8] sm:$0x3] %v1421_v39  ;;  %v1235_v52 = vld [vmem:[#allocation0 + $0x2e8] sm:$0x3] }
  0xf9   :  { %1578 = vst [vmem:[%s2412_s1 + $0x8] sm:$0x3] %v701_v40  ;;  %1586 = vst [vmem:[%s2412_s1 + $0x18] sm:$0x3] %v749_v41  ;;  %v1331_v55 = vld [vmem:[#allocation0 + $0x368] sm:$0x3] }
  0xfa   :  { %1594 = vst [vmem:[%s2412_s1 + $0x28] sm:$0x3] %v797_v42  ;;  %1602 = vst [vmem:[%s2412_s1 + $0x38] sm:$0x3] %v845_v43  ;;  %v1379_v56 = vld [vmem:[#allocation0 + $0x3a8] sm:$0x3] }
  0xfb   :  { %1610 = vst [vmem:[%s2412_s1 + $0x48] sm:$0x3] %v893_v44  ;;  %1618 = vst [vmem:[%s2412_s1 + $0x58] sm:$0x3] %v941_v45  ;;  %v1283_v58 = vld [vmem:[#allocation0 + $0x328] sm:$0x3] }
  0xfc   :  { %1626 = vst [vmem:[%s2412_s1 + $0x68] sm:$0x3] %v989_v46  ;;  %539 = vst.msk [vmem:[#allocation0 + $0x230] sm:$0x1] %vm21_vm0, %v536_v47   ;;  %v1427_v59 = vld [vmem:[#allocation0 + $0x3e8] sm:$0x3] }
  0xfd   :  { %541 = vst.msk [vmem:[#allocation0 + $0x2af] sm:$0x2] %vm21_vm0, %v536_v47   ;;  %543 = vst.msk [vmem:[#allocation0 + $0x32e] sm:$0x4] %vm21_vm0, %v536_v47   ;;  %v707_v60 = vld [vmem:[#allocation0 + $0x28] sm:$0x3] }
  0xfe   :  { %545 = vst.msk [vmem:[#allocation0 + $0x3ad] sm:$0x8] %vm21_vm0, %v536_v47   ;;  %547 = vst.msk [vmem:[#allocation0 + $0x26c] sm:$0x10] %vm21_vm0, %v536_v47   ;;  %v755_v61 = vld [vmem:[#allocation0 + $0x68] sm:$0x3] }
  0xff   :  { %549 = vst.msk [vmem:[#allocation0 + $0x2eb] sm:$0x20] %vm21_vm0, %v536_v47   ;;  %551 = vst.msk [vmem:[#allocation0 + $0x36a] sm:$0x40] %vm21_vm0, %v536_v47   ;;  %v803_v62 = vld [vmem:[#allocation0 + $0xa8] sm:$0x3] }
 0x100   :  { %553 = vst.msk [vmem:[#allocation0 + $0x3e9] sm:$0x80] %vm21_vm0, %v536_v47   ;;  %518 = vst.msk [vmem:[#allocation0 + $0x30] sm:$0x1] %vm21_vm0, %v515_v48   ;;  %v851_v63 = vld [vmem:[#allocation0 + $0xe8] sm:$0x3] }
 0x101   :  { %520 = vst.msk [vmem:[#allocation0 + $0xaf] sm:$0x2] %vm21_vm0, %v515_v48   ;;  %522 = vst.msk [vmem:[#allocation0 + $0x12e] sm:$0x4] %vm21_vm0, %v515_v48   ;;  %v899_v0 = vld [vmem:[#allocation0 + $0x128] sm:$0x3] }
 0x102   :  { %524 = vst.msk [vmem:[#allocation0 + $0x1ad] sm:$0x8] %vm21_vm0, %v515_v48   ;;  %526 = vst.msk [vmem:[#allocation0 + $0x6c] sm:$0x10] %vm21_vm0, %v515_v48   ;;  %v947_v1 = vld [vmem:[#allocation0 + $0x168] sm:$0x3] }
 0x103   :  { %528 = vst.msk [vmem:[#allocation0 + $0xeb] sm:$0x20] %vm21_vm0, %v515_v48   ;;  %530 = vst.msk [vmem:[#allocation0 + $0x16a] sm:$0x40] %vm21_vm0, %v515_v48   ;;  %v995_v2 = vld [vmem:[#allocation0 + $0x1a8] sm:$0x3] }
 0x104   :  { %532 = vst.msk [vmem:[#allocation0 + $0x1e9] sm:$0x80] %vm21_vm0, %v515_v48   ;;  %1634 = vst [vmem:[%s2412_s1 + $0x78] sm:$0x3] %v1037_v49  ;;  %v1043_v5 = vld [vmem:[#allocation0 + $0x1e8] sm:$0x3] }
 0x105   :  { %1651 = vst [vmem:[%s2412_s1 + $0x9a] sm:$0x3] %v1139_v50  ;;  %1659 = vst [vmem:[%s2412_s1 + $0xaa] sm:$0x3] %v1187_v51 }
 0x106   :  { %1667 = vst [vmem:[%s2412_s1 + $0xba] sm:$0x3] %v1235_v52  ;;  %580 = vst.msk [vmem:[#allocation0 + $0x231] sm:$0x1] %vm21_vm0, %v577_v53  }
 0x107   :  { %582 = vst.msk [vmem:[#allocation0 + $0x2b0] sm:$0x2] %vm21_vm0, %v577_v53   ;;  %584 = vst.msk [vmem:[#allocation0 + $0x32f] sm:$0x4] %vm21_vm0, %v577_v53  }
 0x108   :  { %586 = vst.msk [vmem:[#allocation0 + $0x3ae] sm:$0x8] %vm21_vm0, %v577_v53   ;;  %588 = vst.msk [vmem:[#allocation0 + $0x26d] sm:$0x10] %vm21_vm0, %v577_v53  }
 0x109   :  { %590 = vst.msk [vmem:[#allocation0 + $0x2ec] sm:$0x20] %vm21_vm0, %v577_v53   ;;  %592 = vst.msk [vmem:[#allocation0 + $0x36b] sm:$0x40] %vm21_vm0, %v577_v53  }
 0x10a   :  { %594 = vst.msk [vmem:[#allocation0 + $0x3ea] sm:$0x80] %vm21_vm0, %v577_v53   ;;  %559 = vst.msk [vmem:[#allocation0 + $0x31] sm:$0x1] %vm21_vm0, %v556_v54  }
 0x10b   :  { %561 = vst.msk [vmem:[#allocation0 + $0xb0] sm:$0x2] %vm21_vm0, %v556_v54   ;;  %563 = vst.msk [vmem:[#allocation0 + $0x12f] sm:$0x4] %vm21_vm0, %v556_v54  }
 0x10c   :  { %565 = vst.msk [vmem:[#allocation0 + $0x1ae] sm:$0x8] %vm21_vm0, %v556_v54   ;;  %567 = vst.msk [vmem:[#allocation0 + $0x6d] sm:$0x10] %vm21_vm0, %v556_v54  }
 0x10d   :  { %569 = vst.msk [vmem:[#allocation0 + $0xec] sm:$0x20] %vm21_vm0, %v556_v54   ;;  %571 = vst.msk [vmem:[#allocation0 + $0x16b] sm:$0x40] %vm21_vm0, %v556_v54   ;;  %v1097_v13 = vld [vmem:[#allocation0 + $0x230] sm:$0x3] }
 0x10e   :  { %573 = vst.msk [vmem:[#allocation0 + $0x1ea] sm:$0x80] %vm21_vm0, %v556_v54   ;;  %1683 = vst [vmem:[%s2412_s1 + $0xda] sm:$0x3] %v1331_v55  ;;  %v1193_v6 = vld [vmem:[#allocation0 + $0x2b0] sm:$0x3] }
 0x10f   :  { %1691 = vst [vmem:[%s2412_s1 + $0xea] sm:$0x3] %v1379_v56  ;;  %1643 = vst [vmem:[%s2412_s1 + $0x8a] sm:$0x3] %v1091_v57  ;;  %v1289_v8 = vld [vmem:[#allocation0 + $0x330] sm:$0x3] }
 0x110   :  { %1579 = vst [vmem:[%s2412_s1 + $0xa] sm:$0x3] %v707_v60  ;;  %1675 = vst [vmem:[%s2412_s1 + $0xca] sm:$0x3] %v1283_v58  ;;  %v1241_v7 = vld [vmem:[#allocation0 + $0x2f0] sm:$0x3] }
 0x111   :  { %1699 = vst [vmem:[%s2412_s1 + $0xfa] sm:$0x3] %v1427_v59  ;;  %1587 = vst [vmem:[%s2412_s1 + $0x1a] sm:$0x3] %v755_v61  ;;  %v1337_v11 = vld [vmem:[#allocation0 + $0x370] sm:$0x3] }
 0x112   :  { %1595 = vst [vmem:[%s2412_s1 + $0x2a] sm:$0x3] %v803_v62  ;;  %1603 = vst [vmem:[%s2412_s1 + $0x3a] sm:$0x3] %v851_v63  ;;  %v1385_v12 = vld [vmem:[#allocation0 + $0x3b0] sm:$0x3] }
 0x113   :  { %1611 = vst [vmem:[%s2412_s1 + $0x4a] sm:$0x3] %v899_v0  ;;  %1619 = vst [vmem:[%s2412_s1 + $0x5a] sm:$0x3] %v947_v1  ;;  %v1145_v14 = vld [vmem:[#allocation0 + $0x270] sm:$0x3] }
 0x114   :  { %1627 = vst [vmem:[%s2412_s1 + $0x6a] sm:$0x3] %v995_v2  ;;  %621 = vst.msk [vmem:[#allocation0 + $0x238] sm:$0x1] %vm21_vm0, %v618_v3   ;;  %v1433_v15 = vld [vmem:[#allocation0 + $0x3f0] sm:$0x3] }
 0x115   :  { %623 = vst.msk [vmem:[#allocation0 + $0x2b7] sm:$0x2] %vm21_vm0, %v618_v3   ;;  %625 = vst.msk [vmem:[#allocation0 + $0x336] sm:$0x4] %vm21_vm0, %v618_v3   ;;  %v713_v16 = vld [vmem:[#allocation0 + $0x30] sm:$0x3] }
 0x116   :  { %627 = vst.msk [vmem:[#allocation0 + $0x3b5] sm:$0x8] %vm21_vm0, %v618_v3   ;;  %629 = vst.msk [vmem:[#allocation0 + $0x274] sm:$0x10] %vm21_vm0, %v618_v3   ;;  %v953_v17 = vld [vmem:[#allocation0 + $0x170] sm:$0x3] }
 0x117   :  { %631 = vst.msk [vmem:[#allocation0 + $0x2f3] sm:$0x20] %vm21_vm0, %v618_v3   ;;  %633 = vst.msk [vmem:[#allocation0 + $0x372] sm:$0x40] %vm21_vm0, %v618_v3   ;;  %v1001_v18 = vld [vmem:[#allocation0 + $0x1b0] sm:$0x3] }
 0x118   :  { %635 = vst.msk [vmem:[#allocation0 + $0x3f1] sm:$0x80] %vm21_vm0, %v618_v3   ;;  %600 = vst.msk [vmem:[#allocation0 + $0x38] sm:$0x1] %vm21_vm0, %v597_v4   ;;  %v761_v19 = vld [vmem:[#allocation0 + $0x70] sm:$0x3] }
 0x119   :  { %602 = vst.msk [vmem:[#allocation0 + $0xb7] sm:$0x2] %vm21_vm0, %v597_v4   ;;  %604 = vst.msk [vmem:[#allocation0 + $0x136] sm:$0x4] %vm21_vm0, %v597_v4   ;;  %v809_v20 = vld [vmem:[#allocation0 + $0xb0] sm:$0x3] }
 0x11a   :  { %606 = vst.msk [vmem:[#allocation0 + $0x1b5] sm:$0x8] %vm21_vm0, %v597_v4   ;;  %608 = vst.msk [vmem:[#allocation0 + $0x74] sm:$0x10] %vm21_vm0, %v597_v4   ;;  %v857_v21 = vld [vmem:[#allocation0 + $0xf0] sm:$0x3] }
 0x11b   :  { %610 = vst.msk [vmem:[#allocation0 + $0xf3] sm:$0x20] %vm21_vm0, %v597_v4   ;;  %612 = vst.msk [vmem:[#allocation0 + $0x172] sm:$0x40] %vm21_vm0, %v597_v4   ;;  %v905_v22 = vld [vmem:[#allocation0 + $0x130] sm:$0x3] }
 0x11c   :  { %614 = vst.msk [vmem:[#allocation0 + $0x1f1] sm:$0x80] %vm21_vm0, %v597_v4   ;;  %1635 = vst [vmem:[%s2412_s1 + $0x7a] sm:$0x3] %v1043_v5  ;;  %v1049_v23 = vld [vmem:[#allocation0 + $0x1f0] sm:$0x3] }
 0x11d   :  { %1660 = vst [vmem:[%s2412_s1 + $0xac] sm:$0x3] %v1193_v6  ;;  %1668 = vst [vmem:[%s2412_s1 + $0xbc] sm:$0x3] %v1241_v7 }
 0x11e   :  { %1676 = vst [vmem:[%s2412_s1 + $0xcc] sm:$0x3] %v1289_v8  ;;  %662 = vst.msk [vmem:[#allocation0 + $0x239] sm:$0x1] %vm21_vm0, %v659_v9  }
 0x11f   :  { %664 = vst.msk [vmem:[#allocation0 + $0x2b8] sm:$0x2] %vm21_vm0, %v659_v9   ;;  %666 = vst.msk [vmem:[#allocation0 + $0x337] sm:$0x4] %vm21_vm0, %v659_v9  }
 0x120   :  { %668 = vst.msk [vmem:[#allocation0 + $0x3b6] sm:$0x8] %vm21_vm0, %v659_v9   ;;  %670 = vst.msk [vmem:[#allocation0 + $0x275] sm:$0x10] %vm21_vm0, %v659_v9  }
 0x121   :  { %672 = vst.msk [vmem:[#allocation0 + $0x2f4] sm:$0x20] %vm21_vm0, %v659_v9   ;;  %674 = vst.msk [vmem:[#allocation0 + $0x373] sm:$0x40] %vm21_vm0, %v659_v9  }
 0x122   :  { %676 = vst.msk [vmem:[#allocation0 + $0x3f2] sm:$0x80] %vm21_vm0, %v659_v9   ;;  %641 = vst.msk [vmem:[#allocation0 + $0x39] sm:$0x1] %vm21_vm0, %v638_v10  }
 0x123   :  { %643 = vst.msk [vmem:[#allocation0 + $0xb8] sm:$0x2] %vm21_vm0, %v638_v10   ;;  %645 = vst.msk [vmem:[#allocation0 + $0x137] sm:$0x4] %vm21_vm0, %v638_v10  }
 0x124   :  { %647 = vst.msk [vmem:[#allocation0 + $0x1b6] sm:$0x8] %vm21_vm0, %v638_v10   ;;  %649 = vst.msk [vmem:[#allocation0 + $0x75] sm:$0x10] %vm21_vm0, %v638_v10  }
 0x125   :  { %651 = vst.msk [vmem:[#allocation0 + $0xf4] sm:$0x20] %vm21_vm0, %v638_v10   ;;  %653 = vst.msk [vmem:[#allocation0 + $0x173] sm:$0x40] %vm21_vm0, %v638_v10   ;;  %v1103_v24 = vld [vmem:[#allocation0 + $0x238] sm:$0x3] }
 0x126   :  { %655 = vst.msk [vmem:[#allocation0 + $0x1f2] sm:$0x80] %vm21_vm0, %v638_v10   ;;  %1684 = vst [vmem:[%s2412_s1 + $0xdc] sm:$0x3] %v1337_v11  ;;  %v1199_v26 = vld [vmem:[#allocation0 + $0x2b8] sm:$0x3] }
 0x127   :  { %1692 = vst [vmem:[%s2412_s1 + $0xec] sm:$0x3] %v1385_v12  ;;  %1644 = vst [vmem:[%s2412_s1 + $0x8c] sm:$0x3] %v1097_v13  ;;  %v1151_v25 = vld [vmem:[#allocation0 + $0x278] sm:$0x3] }
 0x128   :  { %1580 = vst [vmem:[%s2412_s1 + $0xc] sm:$0x3] %v713_v16  ;;  %1652 = vst [vmem:[%s2412_s1 + $0x9c] sm:$0x3] %v1145_v14  ;;  %v1247_v27 = vld [vmem:[#allocation0 + $0x2f8] sm:$0x3] }
 0x129   :  { %1700 = vst [vmem:[%s2412_s1 + $0xfc] sm:$0x3] %v1433_v15  ;;  %1620 = vst [vmem:[%s2412_s1 + $0x5c] sm:$0x3] %v953_v17  ;;  %v1295_v28 = vld [vmem:[#allocation0 + $0x338] sm:$0x3] }
 0x12a   :  { %1628 = vst [vmem:[%s2412_s1 + $0x6c] sm:$0x3] %v1001_v18  ;;  %1588 = vst [vmem:[%s2412_s1 + $0x1c] sm:$0x3] %v761_v19  ;;  %v1343_v29 = vld [vmem:[#allocation0 + $0x378] sm:$0x3] }
 0x12b   :  { %1596 = vst [vmem:[%s2412_s1 + $0x2c] sm:$0x3] %v809_v20  ;;  %1604 = vst [vmem:[%s2412_s1 + $0x3c] sm:$0x3] %v857_v21  ;;  %v1391_v30 = vld [vmem:[#allocation0 + $0x3b8] sm:$0x3] }
 0x12c   :  { %1612 = vst [vmem:[%s2412_s1 + $0x4c] sm:$0x3] %v905_v22  ;;  %1636 = vst [vmem:[%s2412_s1 + $0x7c] sm:$0x3] %v1049_v23  ;;  %v1439_v31 = vld [vmem:[#allocation0 + $0x3f8] sm:$0x3] }
 0x12d   :  { %1645 = vst [vmem:[%s2412_s1 + $0x8e] sm:$0x3] %v1103_v24  ;;  %1653 = vst [vmem:[%s2412_s1 + $0x9e] sm:$0x3] %v1151_v25  ;;  %v719_v32 = vld [vmem:[#allocation0 + $0x38] sm:$0x3] }
 0x12e   :  { %1661 = vst [vmem:[%s2412_s1 + $0xae] sm:$0x3] %v1199_v26  ;;  %1669 = vst [vmem:[%s2412_s1 + $0xbe] sm:$0x3] %v1247_v27  ;;  %v767_v33 = vld [vmem:[#allocation0 + $0x78] sm:$0x3] }
 0x12f   :  { %1677 = vst [vmem:[%s2412_s1 + $0xce] sm:$0x3] %v1295_v28  ;;  %1685 = vst [vmem:[%s2412_s1 + $0xde] sm:$0x3] %v1343_v29  ;;  %v815_v34 = vld [vmem:[#allocation0 + $0xb8] sm:$0x3] }
 0x130   :  { %1693 = vst [vmem:[%s2412_s1 + $0xee] sm:$0x3] %v1391_v30  ;;  %1701 = vst [vmem:[%s2412_s1 + $0xfe] sm:$0x3] %v1439_v31  ;;  %v863_v35 = vld [vmem:[#allocation0 + $0xf8] sm:$0x3] }
 0x131   :  { %1581 = vst [vmem:[%s2412_s1 + $0xe] sm:$0x3] %v719_v32  ;;  %1589 = vst [vmem:[%s2412_s1 + $0x1e] sm:$0x3] %v767_v33  ;;  %v911_v36 = vld [vmem:[#allocation0 + $0x138] sm:$0x3] }
 0x132   :  { %1597 = vst [vmem:[%s2412_s1 + $0x2e] sm:$0x3] %v815_v34  ;;  %1605 = vst [vmem:[%s2412_s1 + $0x3e] sm:$0x3] %v863_v35  ;;  %v959_v37 = vld [vmem:[#allocation0 + $0x178] sm:$0x3] }
 0x133   :  { %v1007_v38 = vld [vmem:[#allocation0 + $0x1b8] sm:$0x3]  ;;  %1613 = vst [vmem:[%s2412_s1 + $0x4e] sm:$0x3] %v911_v36  ;;  %1621 = vst [vmem:[%s2412_s1 + $0x5e] sm:$0x3] %v959_v37 }
 0x134   :  { %1629 = vst [vmem:[%s2412_s1 + $0x6e] sm:$0x3] %v1007_v38  ;;  %v1055_v39 = vld [vmem:[#allocation0 + $0x1f8] sm:$0x3] }
 0x135   :  { %1637 = vst [vmem:[%s2412_s1 + $0x7e] sm:$0x3] %v1055_v39 }

// kernel: rel_patch_attention2d_forward.3
= control target key start
LH: loop header
LB: loop body
LE: loop exit
PB: predicated region body
PF: predicated region fallthrough
CT: control target
= control target key end

     0   :  { %s903_s12 = smov 0   ;;  %s905_s13 = smov 0   ;;  %s1017_s0 = inlined_call_operand.vmem [shape: f32[2,1,4,290], index: 0, kind: input, shape index: {}]   ;;  %s1018_s1 = inlined_call_operand.vmem [shape: bf16[1,4,36], index: 1, kind: input, shape index: {}]   ;;  %s1019_s2 = inlined_call_operand.vmem [shape: f32[1,4,1], index: 2, kind: input, shape index: {}]   ;;  %s1020_s3 = inlined_call_operand.vmem [shape: f32[2,1,4,256], index: 3, kind: output, shape index: {}]  }
   0x1   :  { %s907_s14 = smov 0  }
   0x2 LB: > { %s25_s15 = sadd.s32 1, %s868_s13  ;;  %p742_p0 = scmp.ge.s32.totalorder %s872_s14, 1  ;;  %s872_s14 = sphi %s907_s14, %s13_s14   ;;  %s868_s13 = sphi %s905_s13, %s1030_s13   ;;  %s864_s12 = sphi %s903_s12, %s1029_s12  }
   0x3   : > { %p27_p1 = scmp.ge.s32.totalorder %s25_s15, 2  ;;  %p175_p2 = scmp.lt.s32.totalorder %s872_s14, 3 }
   0x5   : > { %s1032_s15 = smov (%p27_p1, %s25_s15), 0  ;;  %p176_p3 = pnand %p742_p0, %p175_p2 }
   0x6   : > { %p215_p4 = scmp.lt.s32.totalorder (!%p176_p3), %s864_s12, 1  ;;  %v242_v0 = vlaneseq (!%p176_p3)  ;;  %s874_s20 = smov (!%p176_p3), 112   ;;  %v882_v28 = vmov (!%p176_p3), 0   ;;  %v525_v29 = vld [vmem:[%s1019_s2] sm:$0xf] (!%p176_p3)  ;;  %vm364_vm2 = vcmask (!%p176_p3), 916480  }
   0x7   : > { %179 = sbr.rel (%p176_p3) target bundleno = 400 (0x190), region = 32  ;;  %s875_s21 = smov (!%p176_p3), 126   ;;  %599 = vmatprep.mubr.bf16.mxu0 (!%p176_p3), %v882_v28  ;;  %840 = vset.pattern.permute.xlu0 (!%p176_p3), %v882_v28  ;;  %vm337_vm4 = vcmask (!%p176_p3), 1031168   ;;  %vm419_vm6 = vcmask (!%p176_p3), 900096   ;;  %vm316_vm7 = vcmask (!%p176_p3), 1043456   ;;  %vm318_vm8 = vcmask (!%p176_p3), 1039360  }
   0x8   : > { %v923_v1 = vand.u32 (!%p176_p3), 127, %v242_v0  ;;  %s876_s22 = smov (!%p176_p3), 110   ;;  %s877_s23 = smov (!%p176_p3), 127   ;;  %vm404_vm9 = vcmask (!%p176_p3), 908288   ;;  %vm447_vm10 = vcmask (!%p176_p3), 785408   ;;  %vm488_vm11 = vcmask (!%p176_p3), 777216  }
   0x9   : > { %s878_s24 = smov (!%p176_p3), 111   ;;  %s879_s25 = smov (!%p176_p3), 96   ;;  %vm503_vm12 = vcmask (!%p176_p3), 769024   ;;  %vm560_vm13 = vcmask (!%p176_p3), 1041408   ;;  %v519_v38 = vld [vmem:[%s1018_s1] sm:$0x3] (!%p176_p3) }
   0xa   : > { %v927_v2 = vadd.s32 (!%p176_p3), 128, %v923_v1  ;;  %v249_v3 = vand.u32 (!%p176_p3), 15, %v923_v1  ;;  %s880_s26 = smov (!%p176_p3), 95   ;;  %s881_s27 = smov (!%p176_p3), 94   ;;  %vm556_vm14 = vcmask (!%p176_p3), 293888  }
   0xc   : > { %v256_v7 = vand.u32 (!%p176_p3), 15, %v927_v2  ;;  %vm943_vm0 = vcmp.eq.s32.totalorder (!%p176_p3), %v249_v3, 0  ;;  %vm966_vm3 = vcmp.eq.s32.totalorder (!%p176_p3), %v249_v3, 15 }
   0xe   : > { %s1034_s12 = smov (!%p215_p4, %s864_s12), 1  ;;  %vm949_vm1 = vcmp.eq.s32.totalorder %v256_v7, 0  ;;  %vm976_vm5 = vcmp.eq.s32.totalorder %v256_v7, 15 }
   0xf   : > { %s781_s16 = smul.u32 12, %s1034_s12  ;;  %s768_s5 = sshll.u32 %s1034_s12, 3 }
  0x10   : > { %s240_s8 = scalar_lea.vmem %s1020_s3, %s768_s5 }
  0x11   : > { %s932_s19 = scalar_lea.vmem %s1017_s0, %s781_s16 }
  0x12   : > { %v354_v4 = vld [vmem:[%s932_s19 + $0x8] sm:$0xf]  ;;  %v353_v6 = vld [vmem:[%s932_s19] sm:$0xff] }
  0x13   : > { %v323_v5 = vld [vmem:[%s932_s19 + $0x8] sm:$0xf]  ;;  %362 = vrot.lane.b32.xlu0 %v354_v4, %s874_s20  ;;  %v357_v8 = vcombine.high %v353_v6, %v353_v6  ;;  %v281_v17 = vsel %vm943_vm0, 0.0, %v353_v6 }
  0x14   : > { %335 = vrot.lane.b32.xlu1 %v323_v5, %s875_s21  ;;  %v293_v9 = vld [vmem:[%s932_s19 + $0x8] sm:$0xf] }
  0x15   : > { %v409_v10 = vld [vmem:[%s932_s19 + $0x8] sm:$0xf]  ;;  %v771_v11 = vpack.c.bf16 %v293_v9, %v293_v9  ;;  %v815_v12 = vpack.i.bf16 %v357_v8, %v353_v6  ;;  %v770_v16 = vpack.c.bf16 %v357_v8, %v353_v6  ;;  %v282_v18 = vsel %vm949_vm1, 0.0, %v357_v8 }
  0x16   : > { %v769_v19 = vpack.c.bf16 %v282_v18, %v281_v17  ;;  %v382_v21 = vld [vmem:[%s932_s19 + $0x8] sm:$0xf] }
  0x17   : > { %816 = vrot.lane.b32.xlu0 %v815_v12, %s874_s20  ;;  %v309_v15 = vrot.slane %v771_v11, 6  ;;  %v308_v20 = vrot.slane %v770_v16, 6  ;;  %v775_v22 = vpack.c.bf16 %v382_v21, %v382_v21  ;;  %v464_v23 = vld [vmem:[%s932_s19 + $0x8] sm:$0xf] }
  0x18   : > { %417 = vrot.lane.b32.xlu1 %v409_v10, %s876_s22  ;;  %291 = vst [vmem:[#allocation2] sm:$0x33] %v769_v19  ;;  %v779_v24 = vpack.c.bf16 %v464_v23, %v464_v23  ;;  %v437_v25 = vld [vmem:[%s932_s19 + $0x8] sm:$0xf] }
  0x19   : > { %v493_v27 = vld [vmem:[%s932_s19 + $0x8] sm:$0xf] }
  0x1a   : > { %v480_v26 = vrot.slane %v779_v24, 6 }
  0x1b   : > { %821 = vrot.lane.b32.xlu0 %v815_v12, %s875_s21 }
  0x1c   : > { %312 = vrot.lane.b32.xlu1 %v309_v15, %s877_s23 }
  0x1f   : > { %826 = vrot.lane.b32.xlu0 %v815_v12, %s876_s22 }
  0x20   : > { %310 = vrot.lane.b32.xlu1 %v308_v20, %s877_s23 }
  0x23   : > { %397 = vrot.lane.b32.xlu0 %v770_v16, %s878_s24 }
  0x24   : > { %399 = vrot.lane.b32.xlu1 %v775_v22, %s878_s24 }
  0x27   : > { %831 = vrot.lane.b32.xlu0 %v815_v12, %s879_s25 }
  0x28   : > { %445 = vrot.lane.b32.xlu1 %v437_v25, %s879_s25 }
  0x2b   : > { %481 = vrot.lane.b32.xlu0 %v308_v20, %s880_s26 }
  0x2c   : > { %483 = vrot.lane.b32.xlu1 %v480_v26, %s880_s26 }
  0x2f   : > { %836 = vrot.lane.b32.xlu0 %v815_v12, %s881_s27 }
  0x30   : > { %501 = vrot.lane.b32.xlu1 %v493_v27, %s881_s27 }
  0x33   : > { %528 = vperm.xlu0 %840, %v525_v29  }
  0x85   : > { %v363_v30 = vpop.permute.xlu0 %362 }
  0x86   : > { %v336_v31 = vpop.permute.xlu1 %335 }
  0x89   : > { %v817_v32 = vpop.permute.xlu0 %816 }
  0x8a   : > { %v418_v33 = vpop.permute.xlu1 %417  ;;  %v819_v34 = vunpack.i.h.bf16 %v817_v32  ;;  %v818_v35 = vunpack.i.l.bf16 %v817_v32 }
  0x8c   : > { %v366_v36 = vsel %vm364_vm2, %v819_v34, %v363_v30  ;;  %v365_v37 = vsel %vm364_vm2, %v818_v35, %v819_v34 }
  0x8d   : > { %v822_v39 = vpop.permute.xlu0 %821  ;;  %v369_v41 = vsel %vm943_vm0, 0.0, %v365_v37  ;;  %v370_v42 = vsel %vm949_vm1, 0.0, %v366_v36 }
  0x8e   : > { %v313_v40 = vpop.permute.xlu1 %312  ;;  %v824_v43 = vunpack.i.h.bf16 %v822_v39  ;;  %v823_v44 = vunpack.i.l.bf16 %v822_v39  ;;  %v773_v46 = vpack.c.bf16 %v370_v42, %v369_v41 }
  0x8f   : > { %v315_v51 = vrot.slane %v313_v40, 4 }
  0x90   : > { %v339_v47 = vsel %vm337_vm4, %v824_v43, %v336_v31  ;;  %v338_v48 = vsel %vm337_vm4, %v823_v44, %v824_v43  ;;  %v378_v49 = vrot.slane %v773_v46, 6 }
  0x91   : > { %v342_v50 = vsel %vm966_vm3, 0.0, %v338_v48  ;;  %v827_v52 = vpop.permute.xlu0 %826  ;;  %v343_v54 = vsel %vm976_vm5, 0.0, %v339_v47 }
  0x92   : > { %v311_v53 = vpop.permute.xlu1 %310  ;;  %v829_v55 = vunpack.i.h.bf16 %v827_v52  ;;  %v828_v56 = vunpack.i.l.bf16 %v827_v52  ;;  %v772_v58 = vpack.c.bf16 %v343_v54, %v342_v50  ;;  %380 = vst [vmem:[#allocation2 + $0x8] sm:$0xcc] %v378_v49 }
  0x93   : > { %v314_v57 = vrot.slane %v311_v53, 4 }
  0x94   : > { %v421_v59 = vsel %vm419_vm6, %v829_v55, %v418_v33  ;;  %v420_v60 = vsel %vm419_vm6, %v828_v56, %v829_v55  ;;  %352 = vst [vmem:[#allocation2 + $0x8] sm:$0x33] %v772_v58 }
  0x95   : > { %v317_v61 = vsel %vm316_vm7, %v314_v57, %v315_v51  ;;  %v424_v62 = vsel %vm966_vm3, 0.0, %v420_v60  ;;  %v398_v0 = vpop.permute.xlu0 %397  ;;  %v425_v2 = vsel %vm976_vm5, 0.0, %v421_v59 }
  0x96   : > { %v319_v63 = vsel %vm318_vm8, %v311_v53, %v317_v61  ;;  %v400_v1 = vpop.permute.xlu1 %399  ;;  %v401_v3 = vrot.slane %v398_v0, 4  ;;  %v776_v5 = vpack.c.bf16 %v425_v2, %v424_v62 }
  0x97   : > { %321 = vst [vmem:[#allocation2] sm:$0xcc] %v319_v63  ;;  %v402_v4 = vrot.slane %v400_v1, 4 }
  0x98   : > { %v433_v7 = vrot.slane %v776_v5, 6 }
  0x99   : > { %v403_v6 = vsel %vm316_vm7, %v401_v3, %v402_v4  ;;  %v832_v9 = vpop.permute.xlu0 %831 }
  0x9a   : > { %v405_v8 = vsel %vm404_vm9, %v398_v0, %v403_v6  ;;  %v446_v10 = vpop.permute.xlu1 %445  ;;  %v834_v11 = vunpack.i.h.bf16 %v832_v9  ;;  %v833_v12 = vunpack.i.l.bf16 %v832_v9  ;;  %435 = vst [vmem:[#allocation2 + $0x10] sm:$0xcc] %v433_v7 }
  0x9b   : > { %407 = vst [vmem:[#allocation2 + $0x10] sm:$0x33] %v405_v8 }
  0x9c   : > { %v448_v15 = vsel %vm447_vm10, %v833_v12, %v834_v11  ;;  %v449_v16 = vsel %vm447_vm10, %v834_v11, %v446_v10 }
  0x9d   : > { %v452_v17 = vsel %vm943_vm0, 0.0, %v448_v15  ;;  %v453_v18 = vsel %vm949_vm1, 0.0, %v449_v16  ;;  %v482_v19 = vpop.permute.xlu0 %481 }
  0x9e   : > { %v484_v20 = vpop.permute.xlu1 %483  ;;  %v842_v21 = vld [vmem:[#allocation2 + $0x4] ss:$8 sps:$4 sm:$0xff]   ;;  %v777_v22 = vpack.c.bf16 %v453_v18, %v452_v17  ;;  %v485_v23 = vrot.slane %v482_v19, 4  ;;  %v844_v25 = vld [vmem:[#allocation2] ss:$8 sps:$4 sm:$0xff]  }
  0x9f   : > { %v486_v24 = vrot.slane %v484_v20, 4  ;;  %567 = vmatprep.subr.bf16.mxu0 %v842_v21 }
  0xa0   : > { %462 = vst [vmem:[#allocation2 + $0x18] sm:$0x33] %v777_v22  ;;  %568 = vmatpush1.bf16.msra.mxu0 %v844_v25 }
  0xa1   : > { %v487_v26 = vsel %vm316_vm7, %v485_v23, %v486_v24  ;;  %v837_v28 = vpop.permute.xlu0 %836 }
  0xa2   : > { %v489_v27 = vsel %vm488_vm11, %v482_v19, %v487_v26  ;;  %v502_v13 = vpop.permute.xlu1 %501  ;;  %v839_v14 = vunpack.i.h.bf16 %v837_v28  ;;  %v838_v29 = vunpack.i.l.bf16 %v837_v28 }
  0xa3   : > { %491 = vst [vmem:[#allocation2 + $0x18] sm:$0xcc] %v489_v27 }
  0xa4   : > { %v504_v30 = vsel %vm503_vm12, %v838_v29, %v839_v14  ;;  %v505_v31 = vsel %vm503_vm12, %v839_v14, %v502_v13 }
  0xa5   : > { %v508_v32 = vsel %vm966_vm3, 0.0, %v504_v30  ;;  %v509_v33 = vsel %vm976_vm5, 0.0, %v505_v31 }
  0xa6   : > { %v780_v34 = vpack.c.bf16 %v509_v33, %v508_v32 }
  0xa8   : > { %518 = vst [vmem:[#allocation2 + $0x20] sm:$0x33] %v780_v34 }
  0xaa   : > { %v845_v35 = vld [vmem:[#allocation2 + $0x14] ss:$8 sps:$4 sm:$0xff]   ;;  %v847_v36 = vld [vmem:[#allocation2 + $0x10] ss:$8 sps:$4 sm:$0xff]  }
  0xab   : > { %569 = vmatprep.subr.bf16.mxu0 %v845_v35 }
  0xac   : > { %570 = vmatpush1.bf16.msra.mxu0 %v847_v36 }
  0xaf   : > { %v524_v37 = vld [vmem:[#allocation2 + $0x20] sm:$0x33] }
  0xb0   : > { %v763_v39 = vcombine.high %v524_v37, %v524_v37  ;;  %v762_v40 = vcombine.low %v524_v37, %v524_v37 }
  0xb2   : > { %764 = vmatprep.subr.msk.bf16.mxu0 %vm560_vm13, %v763_v39  ;;  %v562_v41 = vsel %vm560_vm13, %v762_v40, 0  ;;  %v529_v42 = vpop.permute.xlu0 %528 }
  0xb3   : > { %572 = vmatpush1.bf16.msra.mxu0 %v562_v41 }
  0xb6   : > { %765 = vmatmul.mubr.msk.bf16.vlgmr.msra.gmra.mrb[0].mxu0 %vm556_vm14, %v519_v38 }
 0x189   : > { %v601_v43 = vpop.f32.mrb[0].mxu0 }
 0x18a   : > { %v602_v44 = vadd.f32 %v601_v43, %v529_v42  ;;  %v603_v45 = vpop.f32.mrb[1].mxu0 }
 0x18b   : > { %v604_v46 = vadd.f32 %v603_v45, %v529_v42  ;;  %v605_v47 = vpop.f32.mrb[2].mxu0 }
 0x18c   : > { %v606_v48 = vpop.f32.mrb[3].mxu0 }
 0x18d   : > { %v610_v49 = vcombine.low %v602_v44, %v604_v46 }
 0x18f   : > { %612 = vst [vmem:[%s240_s8] sm:$0xff] %v610_v49 }
 0x190 PF: > { %s13_s14 = sadd.s32 1, %s872_s14   ;;  %s1029_s12 = smov %s868_s13 }
 0x191   : > { %p10_p5 = scmp.ge.s32.totalorder %s13_s14, 4   ;;  %s1030_s13 = smov %s1032_s15 }
 0x193   :  { %12 = sbr.rel (!%p10_p5) target bundleno = 2 (0x2), region = 68 }

// kernel: rel_patch_attention2d_forward.5
= control target key start
LH: loop header
LB: loop body
LE: loop exit
PB: predicated region body
PF: predicated region fallthrough
CT: control target
= control target key end

     0   :  { %s833_s23 = smov 0   ;;  %s935_s0 = inlined_call_operand.vmem [shape: f32[2,8,128], index: 0, kind: input, shape index: {}]   ;;  %s936_s1 = inlined_call_operand.vmem [shape: f32[2,8,128], index: 1, kind: input, shape index: {}]   ;;  %s937_s2 = inlined_call_operand.vmem [shape: f32[2,2,4,256], index: 2, kind: input, shape index: {}]   ;;  %s938_s3 = inlined_call_operand.vmem [shape: s32[4,256], index: 3, kind: input, shape index: {}]   ;;  %s939_s4 = inlined_call_operand.vmem [shape: f32[1,8], index: 4, kind: input, shape index: {}]   ;;  %s940_s5 = inlined_call_operand.<no memory space> [shape: f32[1,1], index: 5, kind: input, shape index: {}]   ;;  %s941_s6 = inlined_call_operand.vmem [shape: f32[2,4,256], index: 6, kind: output, shape index: {}]  }
   0x1   :  { %v11_v0 = vstv %s940_s5 }
   0x2   :  { %12 = vst [vmem:[#allocation2] sm:$0x1] %v11_v0 }
   0x3 LB: > { %s727_s24 = sadd.s32 4294967295, %s790_s23   ;;  %p731_p0 = scmp.ge.s32.totalorder %s790_s23, 1  ;;  %s790_s23 = sphi %s833_s23, %s18_s23  }
   0x4   : > { %p233_p1 = scmp.lt.s32.totalorder %s790_s23, 3 }
   0x6   : > { %p234_p2 = pnand %p731_p0, %p233_p1 }
   0x7   : > { %p272_p3 = scmp.lt.s32.totalorder (!%p234_p2), %s727_s24, 1  ;;  %v792_v1 = vmov (!%p234_p2), 0.0   ;;  %vm793_vm0 = vmmov (!%p234_p2), 0   ;;  %v356_v16 = vlaneseq (!%p234_p2)  ;;  %v794_v18 = vmov (!%p234_p2), 0  }
   0x8   : > { %237 = sbr.rel (%p234_p2) target bundleno = 741 (0x2e5), region = 44  ;;  %749 = vmatprep.subr.bf16.mxu0 (!%p234_p2), %v792_v1  ;;  %751 = vmatprep.mubr.msk.bf16.mxu0 (!%p234_p2), %vm793_vm0, %v792_v1  ;;  %vm551_vm1 = vcmask (!%p234_p2), 1041409   ;;  %vm553_vm2 = vcmask (!%p234_p2), 1042434   ;;  %vm555_vm3 = vcmask (!%p234_p2), 1043459   ;;  %vm557_vm4 = vcmask (!%p234_p2), 1044484  }
   0x9   : > { %v855_v17 = vshrl.u32 (!%p234_p2), %v356_v16, 7  ;;  %768 = vset.pattern.permute.xlu1 (!%p234_p2), %v794_v18  ;;  %769 = vset.pattern.permute.xlu0 (!%p234_p2), %v794_v18  ;;  %vm559_vm5 = vcmask (!%p234_p2), 1045509   ;;  %vm561_vm6 = vcmask (!%p234_p2), 1046534   ;;  %vm563_vm7 = vcmask (!%p234_p2), 1047559  }
   0xa   : > { %vm576_vm8 = vcmask (!%p234_p2), 64512  }
   0xb   : > { %v858_v19 = vsub.s32 (!%p234_p2), 2, %v855_v17  ;;  %v861_v20 = vsub.s32 (!%p234_p2), 0, %v855_v17  ;;  %v870_v25 = vsub.s32 (!%p234_p2), 1, %v855_v17  ;;  %v875_v29 = vsub.s32 (!%p234_p2), 3, %v855_v17 }
   0xc   : > { %v880_v31 = vsub.s32 (!%p234_p2), 4, %v855_v17  ;;  %v885_v33 = vsub.s32 (!%p234_p2), 5, %v855_v17  ;;  %v890_v35 = vsub.s32 (!%p234_p2), 6, %v855_v17  ;;  %v895_v37 = vsub.s32 (!%p234_p2), 7, %v855_v17 }
   0xf   : > { %s943_s24 = smov (!%p272_p3, %s727_s24), 1 }
  0x10   : > { %s844_s5 = sshll.u32 %s943_s24, 3  ;;  %s745_s12 = sshll.u32 %s943_s24, 4 }
  0x11   : > { %s275_s27 = scalar_lea.vmem %s935_s0, %s844_s5  ;;  %s279_s30 = scalar_lea.vmem %s936_s1, %s844_s5 }
  0x12   : > { %v292_v2 = vld [vmem:[%s275_s27] sm:$0xff]  ;;  %s687_s15 = scalar_lea.vmem %s937_s2, %s745_s12  ;;  %s290_s18 = scalar_lea.vmem %s941_s6, %s844_s5 }
  0x13   : > { %v738_v3 = vmul.f32 -1.442695, %v292_v2  ;;  %v299_v4 = vld [vmem:[%s279_s30] sm:$0xff] }
  0x14   : > { %v739_v5 = vmul.f32 -1.442695, %v299_v4 }
  0x15   : > { %770 = vpow2.f32 %v738_v3 }
  0x16   : > { %772 = vpow2.f32 %v739_v5 }
  0x1f   : > { %v771_v6 = vpop.eup %770 }
  0x20   : > { %v773_v7 = vpop.eup %772  ;;  %v296_v8 = vadd.f32 1.0, %v771_v6 }
  0x21   : > { %v303_v9 = vadd.f32 1.0, %v773_v7 }
  0x22   : > { %774 = vrcp.f32 %v296_v8 }
  0x23   : > { %776 = vrcp.f32 %v303_v9 }
  0x2c   : > { %v775_v10 = vpop.eup %774 }
  0x2d   : > { %v777_v11 = vpop.eup %776  ;;  %v307_v12 = vpack.c.bf16 %v775_v10, %v775_v10  ;;  %v351_v14 = vmul.f32 %v775_v10, %v775_v10 }
  0x2e   : > { %v348_v13 = vmul.f32 %v777_v11, %v777_v11  ;;  %v306_v15 = vpack.c.bf16 %v777_v11, %v777_v11 }
  0x2f   : > { %750 = vmatpush3.bf16.xpose.msra.mxu0 %v307_v12 }
  0x30   : > { %349 = vadd.xlane.f32.xlu0 %v348_v13 }
  0x34   : > { %352 = vadd.xlane.f32.xlu0 %v351_v14 }
  0x36   : > { %752 = vmatmul.mubr.bf16.vlgmr.msra.gmra.mrb[0].mxu0 %v306_v15 }
  0xbd   : > { %v350_v39 = vpop.xlane.xlu0 %349 }
  0xbe   : > { %v359_v40 = vrot.slane %v350_v39, %v861_v20  ;;  %v367_v42 = vrot.slane %v350_v39, %v858_v19  ;;  %v363_v44 = vrot.slane %v350_v39, %v870_v25  ;;  %v371_v52 = vrot.slane %v350_v39, %v875_v29 }
  0xbf   : > { %v375_v58 = vrot.slane %v350_v39, %v880_v31  ;;  %v379_v63 = vrot.slane %v350_v39, %v885_v33  ;;  %v383_v4 = vrot.slane %v350_v39, %v890_v35  ;;  %v387_v9 = vrot.slane %v350_v39, %v895_v37 }
  0xc1   : > { %v353_v41 = vpop.xlane.xlu0 %352 }
  0xc2   : > { %v396_v43 = vadd.f32 %v359_v40, %v353_v41  ;;  %v398_v45 = vadd.f32 %v367_v42, %v353_v41  ;;  %v397_v49 = vadd.f32 %v363_v44, %v353_v41  ;;  %v399_v57 = vadd.f32 %v371_v52, %v353_v41 }
  0xc3   : > { %v400_v62 = vadd.f32 %v375_v58, %v353_v41  ;;  %v401_v3 = vadd.f32 %v379_v63, %v353_v41  ;;  %v402_v8 = vadd.f32 %v383_v4, %v353_v41  ;;  %v403_v13 = vadd.f32 %v387_v9, %v353_v41 }
 0x109   : > { %v863_v21 = vpop.f32.mrb[0].mxu0 }
 0x10a   : > { %v753_v22 = vpop.f32.mrb[1].mxu0  ;;  %v422_v23 = vrot.slane %v863_v21, %v858_v19  ;;  %v408_v24 = vrot.slane %v863_v21, %v861_v20  ;;  %v415_v28 = vrot.slane %v863_v21, %v870_v25  ;;  %v429_v30 = vrot.slane %v863_v21, %v875_v29 }
 0x10b   : > { %v345_v26 = vpop.f32.mrb[2].mxu0  ;;  %v436_v32 = vrot.slane %v863_v21, %v880_v31  ;;  %v443_v34 = vrot.slane %v863_v21, %v885_v33  ;;  %v450_v36 = vrot.slane %v863_v21, %v890_v35  ;;  %v457_v38 = vrot.slane %v863_v21, %v895_v37  ;;  %v580_v22 = vld [vmem:[#allocation2] sm:$0x1] }
 0x10c   : > { %424 = vbcast.lane.b32.xlu0 %v422_v23, 256  ;;  %410 = vbcast.lane.b32.xlu1 %v408_v24, 256  ;;  %v754_v27 = vpop.f32.mrb[3].mxu0  ;;  %755 = vpush %v580_v22  ;;  %v518_v26 = vand.u32 127, %v356_v16  ;;  %v354_v52 = vadd.f32 1e-05, %v863_v21 }
 0x110   : > { %417 = vbcast.lane.b32.xlu1 %v415_v28, 256  ;;  %v521_v28 = vsub.s32 %v518_v26, %v855_v17 }
 0x114   : > { %431 = vbcast.lane.b32.xlu1 %v429_v30, 256 }
 0x118   : > { %438 = vbcast.lane.b32.xlu1 %v436_v32, 256 }
 0x11c   : > { %445 = vbcast.lane.b32.xlu1 %v443_v34, 256 }
 0x120   : > { %452 = vbcast.lane.b32.xlu1 %v450_v36, 256 }
 0x124   : > { %459 = vbcast.lane.b32.xlu1 %v457_v38, 256 }
 0x13d   : > { %s756_s9 = spop %755 }
 0x13e   : > { %v582_v58 = vstv %s756_s9 }
 0x17e   : > { %v425_v46 = vpop.permute.xlu0 %424  ;;  %v411_v47 = vpop.permute.xlu1 %410 }
 0x17f   : > { %v469_v48 = vsub.f32 %v396_v43, %v411_v47  ;;  %v471_v50 = vsub.f32 %v398_v45, %v425_v46 }
 0x181   : > { %v477_v51 = vadd.f32 1e-05, %v469_v48  ;;  %v479_v55 = vadd.f32 1e-05, %v471_v50 }
 0x182   : > { %v418_v53 = vpop.permute.xlu1 %417 }
 0x183   : > { %v470_v54 = vsub.f32 %v397_v49, %v418_v53  ;;  %494 = vperm.xlu1 %768, %v477_v51  }
 0x185   : > { %v478_v56 = vadd.f32 1e-05, %v470_v54  ;;  %v740_v54 = vld [vmem:[%s939_s4] ss:$0 sm:$0xff] }
 0x186   : > { %v432_v59 = vpop.permute.xlu1 %431 }
 0x187   : > { %v472_v60 = vsub.f32 %v399_v57, %v432_v59  ;;  %500 = vperm.xlu1 %768, %v479_v55   ;;  %497 = vperm.xlu0 %769, %v478_v56   ;;  %v585_v59 = vld [vmem:[%s938_s3] sm:$0xff] }
 0x188   : > { %vm586_vm9 = vcmp.eq.s32.totalorder %v585_v59, 0  ;;  %vm592_vm10 = vcmp.eq.s32.totalorder %v585_v59, 1  ;;  %vm598_vm11 = vcmp.eq.s32.totalorder %v585_v59, 2  ;;  %vm604_vm12 = vcmp.eq.s32.totalorder %v585_v59, 3 }
 0x189   : > { %v480_v61 = vadd.f32 1e-05, %v472_v60  ;;  %vm610_vm13 = vcmp.eq.s32.totalorder %v585_v59, 4  ;;  %vm616_vm14 = vcmp.eq.s32.totalorder %v585_v59, 5  ;;  %vm622_vm15 = vcmp.eq.s32.totalorder %v585_v59, 6 }
 0x18a   : > { %v439_v0 = vpop.permute.xlu1 %438  ;;  %vm628_vm0 = vcmp.eq.s32.totalorder %v585_v59, 7 }
 0x18b   : > { %v473_v1 = vsub.f32 %v400_v62, %v439_v0  ;;  %503 = vperm.xlu1 %768, %v480_v61  }
 0x18d   : > { %v481_v2 = vadd.f32 1e-05, %v473_v1 }
 0x18e   : > { %v446_v5 = vpop.permute.xlu1 %445 }
 0x18f   : > { %v474_v6 = vsub.f32 %v401_v3, %v446_v5  ;;  %506 = vperm.xlu0 %769, %v481_v2  }
 0x191   : > { %v482_v7 = vadd.f32 1e-05, %v474_v6  ;;  %v741_v6 = vld [vmem:[%s687_s15 + $0x8] sm:$0xff] }
 0x192   : > { %v453_v10 = vpop.permute.xlu1 %452 }
 0x193   : > { %v475_v11 = vsub.f32 %v402_v8, %v453_v10  ;;  %509 = vperm.xlu1 %768, %v482_v7  }
 0x195   : > { %v483_v12 = vadd.f32 1e-05, %v475_v11 }
 0x196   : > { %v460_v14 = vpop.permute.xlu1 %459 }
 0x197   : > { %v476_v15 = vsub.f32 %v403_v13, %v460_v14  ;;  %512 = vperm.xlu0 %769, %v483_v12  }
 0x199   : > { %v484_v18 = vadd.f32 1e-05, %v476_v15 }
 0x19b   : > { %515 = vperm.xlu1 %768, %v484_v18  }
 0x202   : > { %v495_v23 = vpop.permute.xlu1 %494 }
 0x203   : > { %v522_v36 = vrot.slane %v495_v23, %v521_v28 }
 0x206   : > { %v501_v24 = vpop.permute.xlu1 %500  ;;  %v498_v27 = vpop.permute.xlu0 %497 }
 0x207   : > { %v526_v32 = vrot.slane %v498_v27, %v521_v28  ;;  %v530_v38 = vrot.slane %v501_v24, %v521_v28 }
 0x209   : > { %v552_v40 = vsel %vm551_vm1, %v526_v32, %v522_v36 }
 0x20a   : > { %v504_v30 = vpop.permute.xlu1 %503  ;;  %v554_v45 = vsel %vm553_vm2, %v530_v38, %v552_v40 }
 0x20b   : > { %v534_v41 = vrot.slane %v504_v30, %v521_v28 }
 0x20d   : > { %v556_v46 = vsel %vm555_vm3, %v534_v41, %v554_v45 }
 0x20e   : > { %v507_v34 = vpop.permute.xlu0 %506 }
 0x20f   : > { %v538_v42 = vrot.slane %v507_v34, %v521_v28 }
 0x211   : > { %v558_v17 = vsel %vm557_vm4, %v538_v42, %v556_v46 }
 0x212   : > { %v510_v39 = vpop.permute.xlu1 %509 }
 0x213   : > { %v542_v44 = vrot.slane %v510_v39, %v521_v28 }
 0x215   : > { %v560_v48 = vsel %vm559_vm5, %v542_v44, %v558_v17 }
 0x216   : > { %v513_v43 = vpop.permute.xlu0 %512 }
 0x217   : > { %v546_v16 = vrot.slane %v513_v43, %v521_v28 }
 0x219   : > { %v562_v50 = vsel %vm561_vm6, %v546_v16, %v560_v48 }
 0x21a   : > { %v516_v47 = vpop.permute.xlu1 %515 }
 0x21b   : > { %v550_v49 = vrot.slane %v516_v47, %v521_v28 }
 0x21d   : > { %v564_v51 = vsel %vm563_vm7, %v550_v49, %v562_v50 }
 0x21e   : > { %778 = vrcp.f32 %v564_v51 }
 0x228   : > { %v779_v53 = vpop.eup %778 }
 0x229   : > { %v567_v55 = vmul.f32 %v779_v53, %v354_v52 }
 0x22b   : > { %v575_v56 = vmul.f32 %v740_v54, %v567_v55 }
 0x22d   : > { %v577_v57 = vsel %vm576_vm8, %v575_v56, 0.0 }
 0x22e   : > { %578 = vadd.xlane.f32.xlu0 %v577_v57 }
 0x2bb   : > { %v579_v60 = vpop.xlane.xlu0 %578 }
 0x2bc   : > { %v583_v61 = vadd.f32 %v582_v58, %v579_v60 }
 0x2be   : > { %v590_v21 = vrot.slane %v583_v61, %v861_v20  ;;  %v596_v62 = vrot.slane %v583_v61, %v870_v25  ;;  %v602_v0 = vrot.slane %v583_v61, %v858_v19  ;;  %v608_v2 = vrot.slane %v583_v61, %v875_v29 }
 0x2bf   : > { %v614_v20 = vrot.slane %v583_v61, %v880_v31  ;;  %v620_v4 = vrot.slane %v583_v61, %v885_v33  ;;  %v626_v19 = vrot.slane %v583_v61, %v890_v35  ;;  %v632_v29 = vrot.slane %v583_v61, %v895_v37 }
 0x2c0   : > { %v591_v63 = vsel %vm586_vm9, %v590_v21, 0.0 }
 0x2c1   : > { %v597_v1 = vsel %vm592_vm10, %v596_v62, %v591_v63 }
 0x2c2   : > { %v603_v3 = vsel %vm598_vm11, %v602_v0, %v597_v1 }
 0x2c3   : > { %v609_v25 = vsel %vm604_vm12, %v608_v2, %v603_v3 }
 0x2c4   : > { %v615_v5 = vsel %vm610_vm13, %v614_v20, %v609_v25 }
 0x2c5   : > { %v621_v7 = vsel %vm616_vm14, %v620_v4, %v615_v5 }
 0x2c6   : > { %v627_v8 = vsel %vm622_vm15, %v626_v19, %v621_v7 }
 0x2c7   : > { %v633_v9 = vsel %vm628_vm0, %v632_v29, %v627_v8 }
 0x2c8   : > { %v634_v10 = vmul.f32 %v741_v6, %v633_v9 }
 0x2ca   : > { %v742_v11 = vmul.f32 -1.442695, %v634_v10 }
 0x2cc   : > { %780 = vpow2.f32 %v742_v11 }
 0x2d6   : > { %v781_v12 = vpop.eup %780 }
 0x2d7   : > { %v638_v31 = vadd.f32 1.0, %v781_v12 }
 0x2d9   : > { %782 = vrcp.f32 %v638_v31 }
 0x2e3   : > { %v783_v33 = vpop.eup %782 }
 0x2e4   : > { %641 = vst [vmem:[%s290_s18] sm:$0xff] %v783_v33 }
 0x2e5 PF: > { %s18_s23 = sadd.s32 1, %s790_s23  }
 0x2e6   : > { %p15_p4 = scmp.ge.s32.totalorder %s18_s23, 4  }
 0x2e8   :  { %17 = sbr.rel (!%p15_p4) target bundleno = 3 (0x3), region = 80 }

// kernel: rel_patch_attention2d_forward.4
= control target key start
LH: loop header
LB: loop body
LE: loop exit
PB: predicated region body
PF: predicated region fallthrough
CT: control target
= control target key end

     0   :  { %s1624_s12 = smov 0   ;;  %s1626_s13 = smov 0   ;;  %s1873_s0 = inlined_call_operand.vmem [shape: f32[2,2,2,290], index: 0, kind: input, shape index: {}]   ;;  %s1874_s1 = inlined_call_operand.vmem [shape: bf16[2,4,18], index: 1, kind: input, shape index: {}]   ;;  %s1875_s2 = inlined_call_operand.vmem [shape: f32[2,4,1], index: 2, kind: input, shape index: {}]   ;;  %s1876_s3 = inlined_call_operand.vmem [shape: f32[2,2,4,256], index: 3, kind: output, shape index: {}]  }
   0x1   :  { %s1628_s14 = smov 0   ;;  %s1630_s15 = smov 0  }
   0x2   :  { %s1632_s16 = smov 0  }
   0x3 LB: > { %s22_s17 = sadd.s32 1, %s1588_s15  ;;  %s1320_s18 = sadd.s32 4294967295, %s1592_s16   ;;  %s1592_s16 = sphi %s1632_s16, %s13_s16   ;;  %s1588_s15 = sphi %s1630_s15, %s1889_s15   ;;  %s1584_s14 = sphi %s1628_s14, %s1888_s14   ;;  %s1580_s13 = sphi %s1626_s13, %s1887_s13   ;;  %s1576_s12 = sphi %s1624_s12, %s1886_s12  }
   0x4   : > { %p23_p0 = scmp.ge.s32.totalorder %s22_s17, 2  ;;  %p41_p1 = scmp.ne.s32.totalorder %s1580_s13, %s1576_s12 }
   0x5   : > { %p42_p2 = scmp.eq.s32.totalorder %s1592_s16, 0  ;;  %p125_p4 = scmp.eq.s32.totalorder %s1320_s18, 1 }
   0x6   : > { %s1891_s17 = smov (%p23_p0, %s22_s17), 0  ;;  %s34_s20 = sadd.s32 1, %s1580_s13 }
   0x7   : > { %p43_p3 = por %p42_p2, %p41_p1  ;;  %s30_s19 = ssub.s32 %s1588_s15, %s1891_s17 }
   0x8   : > { %p32_p5 = scmp.eq.s32.totalorder %s30_s19, 0  ;;  %p1659_p6 = por %p125_p4, %p41_p1 }
   0x9   : > { %p1323_p7 = scmp.ge.s32.totalorder %s1592_s16, 2 }
   0xa   : > { %s1664_s22 = scalar_select %p32_p5, %s1580_s13, %s34_s20  }
   0xb   : > { %147 = sbr.rel (%p1323_p7) target bundleno = 25 (0x19), region = 16 }
  0x12   : > { %150 = sbr.rel (!%p43_p3) target bundleno = 25 (0x19), region = 20  ;;  %s152_s23 = sand.u32 (%p43_p3), 1, %s1580_s13  }
  0x13   : > { %s1399_s24 = smul.u32 (%p43_p3), 6, %s1588_s15 }
  0x14   : > { %s1398_s25 = smul.u32 (%p43_p3), 12, %s152_s23 }
  0x15   : > { %s160_s28 = scalar_lea.vmem (%p43_p3), %s1873_s0, %s1399_s24 }
  0x16   : > { %v176_v0 = vld [vmem:[%s160_s28] sm:$0x3f] (%p43_p3)  ;;  %v178_v1 = vld [vmem:[%s160_s28 + $0xc] sm:$0x3f] (%p43_p3)  ;;  %s154_s29 = scalar_lea.vmem (%p43_p3), [#allocation3], %s1398_s25 }
  0x17   : > { %177 = vst [vmem:[%s154_s29] sm:$0x3f] (%p43_p3), %v176_v0  ;;  %179 = vst [vmem:[%s154_s29 + $0x6] sm:$0x3f] (%p43_p3), %v178_v1 }
  0x19 PF: > { %p1325_p8 = scmp.ge.s32.totalorder %s1592_s16, 1  ;;  %p219_p9 = scmp.lt.s32.totalorder %s1592_s16, 3 }
  0x1b   : > { %p220_p10 = pnand %p1325_p8, %p219_p9 }
  0x1c   : > { %s226_s30 = sand.u32 (!%p220_p10), 1, %s1576_s12   ;;  %v267_v2 = vlaneseq (!%p220_p10)  ;;  %v1594_v3 = vmov (!%p220_p10), 1983009808   ;;  %s1595_s6 = smov (!%p220_p10), 126   ;;  %vm490_vm3 = vcmask (!%p220_p10), 1031168   ;;  %vm571_vm5 = vcmask (!%p220_p10), 916480  }
  0x1d   : > { %223 = sbr.rel (%p220_p10) target bundleno = 453 (0x1c5), region = 69  ;;  %v354_v4 = vunpack.c.l.s4 (!%p220_p10), %v1594_v3  ;;  %s1596_s7 = smov (!%p220_p10), 112   ;;  %vm737_vm6 = vcmask (!%p220_p10), 900096   ;;  %vm818_vm7 = vcmask (!%p220_p10), 785408   ;;  %vm412_vm8 = vcmask (!%p220_p10), 1043456  }
  0x1e   : > { %s1400_s4 = smul.u32 (!%p220_p10), 12, %s226_s30  ;;  %v357_v5 = vshrl.u32 (!%p220_p10), %v267_v2, 7  ;;  %s1597_s8 = smov (!%p220_p10), 110   ;;  %v1711_v62 = vand.u32 (!%p220_p10), 127, %v267_v2  ;;  %vm414_vm9 = vcmask (!%p220_p10), 1039360   ;;  %vm667_vm10 = vcmask (!%p220_p10), 908288  }
  0x1f   : > { %v355_v6 = vunpack.c.0.s8 (!%p220_p10), %v354_v4  ;;  %s1598_s9 = smov (!%p220_p10), 96   ;;  %s1599_s10 = smov (!%p220_p10), 127   ;;  %vm916_vm11 = vcmask (!%p220_p10), 777216   ;;  %vm988_vm12 = vcmask (!%p220_p10), 769024   ;;  %vm1060_vm13 = vcmask (!%p220_p10), 1040384  }
  0x20   : > { %s1678_s5 = scalar_lea.vmem (!%p220_p10), [#allocation3], %s1400_s4  ;;  %s1600_s11 = smov (!%p220_p10), 111   ;;  %vm1056_vm14 = vcmask (!%p220_p10), 146432  }
  0x21   : > { %v438_v7 = vld [vmem:[%s1678_s5] sm:$0x3f] (!%p220_p10)  ;;  %v439_v8 = vld [vmem:[%s1678_s5 + $0x6] sm:$0x3f] (!%p220_p10)  ;;  %v1683_v10 = vsub.s32 (!%p220_p10), %v355_v6, %v357_v5  ;;  %s1601_s18 = smov (!%p220_p10), 95   ;;  %s1602_s19 = smov (!%p220_p10), 94  }
  0x22   : > { %v523_v9 = vld [vmem:[%s1678_s5] sm:$0x3f] (!%p220_p10)  ;;  %v446_v11 = vcombine.high (!%p220_p10), %v438_v7, %v438_v7  ;;  %v462_v12 = vcombine.high (!%p220_p10), %v439_v8, %v439_v8  ;;  %v524_v13 = vld [vmem:[%s1678_s5 + $0x6] sm:$0x3f] (!%p220_p10)  ;;  %p257_p11 = scmp.lt.s32.totalorder (!%p220_p10), %s1584_s14, 1 }
  0x23   : > { %v527_v14 = vcombine.high (!%p220_p10), %v523_v9, %v523_v9  ;;  %v469_v16 = vrot.slane (!%p220_p10), %v439_v8, %v1683_v10  ;;  %v550_v19 = vrot.slane (!%p220_p10), %v524_v13, %v1683_v10  ;;  %v534_v20 = vrot.slane (!%p220_p10), %v523_v9, %v1683_v10  ;;  %v689_v22 = vld [vmem:[%s1678_s5] sm:$0x3f] (!%p220_p10)  ;;  %v690_v31 = vld [vmem:[%s1678_s5 + $0x6] sm:$0x3f] (!%p220_p10) }
  0x24   : > { %v460_v15 = vrot.slane %v446_v11, %v1683_v10  ;;  %v476_v17 = vrot.slane %v462_v12, %v1683_v10  ;;  %v453_v21 = vrot.slane %v438_v7, %v1683_v10  ;;  %v543_v25 = vcombine.high %v524_v13, %v524_v13  ;;  %v770_v37 = vld [vmem:[%s1678_s5] sm:$0x3f]  ;;  %v771_v46 = vld [vmem:[%s1678_s5 + $0x6] sm:$0x3f]  ;;  %s1762_s20 = scalar_select %p257_p11, %s1584_s14, 1 }
  0x25   : > { %v541_v18 = vrot.slane %v527_v14, %v1683_v10  ;;  %v477_v24 = vcombine.high %v469_v16, %v469_v16  ;;  %v542_v26 = vcombine.high %v534_v20, %v534_v20  ;;  %v700_v30 = vrot.slane %v689_v22, %v1683_v10  ;;  %v348_v41 = vld [vmem:[%s1678_s5] sm:$0x3f]  ;;  %v349_v51 = vld [vmem:[%s1678_s5 + $0x6] sm:$0x3f]  ;;  %s1397_s12 = sshll.u32 (%p1659_p6), %s1584_s14, 3 }
  0x26   : > { %v1451_v23 = vpack.i.bf16 %v469_v16, %v460_v15  ;;  %v461_v29 = vcombine.high %v453_v21, %v453_v21  ;;  %v557_v33 = vrot.slane %v543_v25, %v1683_v10  ;;  %v558_v34 = vcombine.high %v550_v19, %v550_v19  ;;  %v604_v7 = vld [vmem:[%s1678_s5] sm:$0x3f]  ;;  %v1330_v11 = vld.sshfl [vmem:[%s1678_s5 + $0x6] sm:$0x33 pattern:$0x76325410] }
  0x27   : > { %v1466_v27 = vpack.i.bf16 %v476_v17, %v477_v24  ;;  %v1456_v28 = vpack.i.bf16 %v550_v19, %v541_v18  ;;  %v1471_v32 = vpack.i.bf16 %v542_v26, %v534_v20  ;;  %v693_v35 = vcombine.high %v689_v22, %v689_v22  ;;  %v1329_v8 = vld.sshfl [vmem:[%s1678_s5] sm:$0x33 pattern:$0x76325410]  ;;  %v605_v18 = vld [vmem:[%s1678_s5 + $0x6] sm:$0x3f] }
  0x28   : > { %1452 = vrot.lane.b32.xlu0 %v1451_v23, %s1595_s6  ;;  %v709_v36 = vcombine.high %v690_v31, %v690_v31  ;;  %v1461_v38 = vpack.i.bf16 %v461_v29, %v453_v21  ;;  %v708_v39 = vcombine.high %v700_v30, %v700_v30  ;;  %v716_v40 = vrot.slane %v690_v31, %v1683_v10  ;;  %v851_v24 = vld [vmem:[%s1678_s5] sm:$0x3f]  ;;  %s1328_s23 = sshll.u32 %s1762_s20, 2  ;;  %s1327_s27 = sshll.u32 %s1762_s20, 1 }
  0x29   : > { %1467 = vrot.lane.b32.xlu1 %v1466_v27, %s1595_s6  ;;  %v1476_v42 = vpack.i.bf16 %v557_v33, %v558_v34  ;;  %v707_v43 = vrot.slane %v693_v35, %v1683_v10  ;;  %v781_v44 = vrot.slane %v770_v37, %v1683_v10  ;;  %v774_v49 = vcombine.high %v770_v37, %v770_v37  ;;  %s264_s26 = scalar_lea.vmem %s1875_s2, %s1328_s23  ;;  %s260_s4 = scalar_lea.vmem %s1874_s1, %s1327_s27 }
  0x2a   : > { %v723_v45 = vrot.slane %v709_v36, %v1683_v10  ;;  %v1481_v47 = vpack.i.bf16 %v708_v39, %v700_v30  ;;  %v724_v48 = vcombine.high %v716_v40, %v716_v40  ;;  %v359_v50 = vrot.slane %v348_v41, %v1683_v10 }
  0x2b   : > { %v352_v52 = vcombine.high %v348_v41, %v348_v41  ;;  %v1486_v53 = vpack.i.bf16 %v716_v40, %v707_v43  ;;  %v789_v54 = vcombine.high %v781_v44, %v781_v44  ;;  %v797_v55 = vrot.slane %v771_v46, %v1683_v10 }
  0x2c   : > { %1457 = vrot.lane.b32.xlu0 %v1456_v28, %s1596_s7  ;;  %v790_v56 = vcombine.high %v771_v46, %v771_v46  ;;  %v375_v57 = vrot.slane %v349_v51, %v1683_v10  ;;  %v1491_v58 = vpack.i.bf16 %v723_v45, %v724_v48  ;;  %v788_v59 = vrot.slane %v774_v49, %v1683_v10 }
  0x2d   : > { %1472 = vrot.lane.b32.xlu1 %v1471_v32, %s1596_s7  ;;  %v367_v60 = vcombine.high %v359_v50, %v359_v50  ;;  %v366_v61 = vrot.slane %v352_v52, %v1683_v10  ;;  %v1496_v63 = vpack.i.bf16 %v789_v54, %v781_v44  ;;  %v805_v1 = vcombine.high %v797_v55, %v797_v55  ;;  %v940_v54 = vld [vmem:[%s1678_s5] sm:$0x3f] }
  0x2e   : > { %v804_v0 = vrot.slane %v790_v56, %v1683_v10  ;;  %v368_v3 = vcombine.high %v349_v51, %v349_v51  ;;  %v383_v4 = vcombine.high %v375_v57, %v375_v57  ;;  %v1501_v5 = vpack.i.bf16 %v797_v55, %v788_v59 }
  0x2f   : > { %v1375_v6 = vpack.c.bf16 %v367_v60, %v359_v50  ;;  %v1376_v9 = vpack.c.bf16 %v366_v61, %v366_v61  ;;  %v1719_v13 = vadd.s32 128, %v1711_v62  ;;  %v615_v15 = vrot.slane %v604_v7, %v1683_v10  ;;  %v941_v61 = vld [vmem:[%s1678_s5 + $0x6] sm:$0x3f] }
  0x30   : > { %1462 = vrot.lane.b32.xlu0 %v1461_v38, %s1595_s6  ;;  %v1506_v2 = vpack.i.bf16 %v804_v0, %v805_v1  ;;  %v382_v12 = vrot.slane %v368_v3, %v1683_v10  ;;  %v1377_v14 = vpack.c.bf16 %v383_v4, %v375_v57  ;;  %v274_v16 = vand.u32 15, %v1711_v62  ;;  %v852_v38 = vld [vmem:[%s1678_s5 + $0x6] sm:$0x3f]  ;;  %s1326_s5 = sshll.u32 %s226_s30, 4 }
  0x31   : > { %1477 = vrot.lane.b32.xlu1 %v1476_v42, %s1596_s7  ;;  %v404_v17 = vrot.slane %v1375_v6, 7  ;;  %v281_v19 = vand.u32 15, %v1719_v13  ;;  %v313_v20 = vcombine.high %v1329_v8, %v1329_v8  ;;  %v321_v21 = vcombine.high %v1330_v11, %v1330_v11  ;;  %s255_s6 = scalar_lea.vmem [#allocation4], %s1326_s5 }
  0x32   : > { %v405_v22 = vrot.slane %v1376_v9, 7  ;;  %v608_v23 = vcombine.high %v604_v7, %v604_v7  ;;  %vm1728_vm0 = vcmp.eq.s32.totalorder %v274_v16, 0  ;;  %v1378_v26 = vpack.c.bf16 %v382_v12, %v382_v12 }
  0x33   : > { %vm1734_vm1 = vcmp.eq.s32.totalorder %v281_v19, 0  ;;  %v326_v28 = vsel %vm1728_vm0, 0.0, %v1329_v8  ;;  %v328_v29 = vsel %vm1728_vm0, 0.0, %v1330_v11  ;;  %v623_v30 = vcombine.high %v615_v15, %v615_v15 }
  0x34   : > { %1482 = vrot.lane.b32.xlu0 %v1481_v47, %s1597_s8  ;;  %v631_v31 = vrot.slane %v605_v18, %v1683_v10  ;;  %v327_v32 = vsel %vm1734_vm1, 0.0, %v313_v20  ;;  %v329_v33 = vsel %vm1734_vm1, 0.0, %v321_v21  ;;  %v426_v34 = vrot.slane %v1377_v14, 7 }
  0x35   : > { %1487 = vrot.lane.b32.xlu1 %v1486_v53, %s1597_s8  ;;  %v862_v35 = vrot.slane %v851_v24, %v1683_v10  ;;  %v1373_v36 = vpack.c.bf16 %v327_v32, %v326_v28  ;;  %v1374_v37 = vpack.c.bf16 %v329_v33, %v328_v29  ;;  %v427_v39 = vrot.slane %v1378_v26, 7 }
  0x36   : > { %v622_v40 = vrot.slane %v608_v23, %v1683_v10  ;;  %v624_v41 = vcombine.high %v605_v18, %v605_v18  ;;  %v855_v42 = vcombine.high %v851_v24, %v851_v24  ;;  %v1383_v43 = vpack.c.bf16 %v623_v30, %v615_v15 }
  0x37   : > { %340 = vst [vmem:[#allocation2] sm:$0x11] %v1373_v36  ;;  %347 = vst [vmem:[#allocation2 + $0x8] sm:$0x11] %v1374_v37  ;;  %v639_v44 = vcombine.high %v631_v31, %v631_v31  ;;  %v870_v45 = vcombine.high %v862_v35, %v862_v35  ;;  %v878_v46 = vrot.slane %v852_v38, %v1683_v10  ;;  %v1603_v15 = vmov 0  }
  0x38   : > { %1492 = vrot.lane.b32.xlu0 %v1491_v58, %s1597_s8  ;;  %v1384_v47 = vpack.c.bf16 %v622_v40, %v622_v40  ;;  %v638_v48 = vrot.slane %v624_v41, %v1683_v10  ;;  %v869_v49 = vrot.slane %v855_v42, %v1683_v10  ;;  %v871_v50 = vcombine.high %v852_v38, %v852_v38  ;;  %s1188_s8 = scalar_lea.vmem (%p1659_p6), %s1876_s3, %s1397_s12 }
  0x39   : > { %1497 = vrot.lane.b32.xlu1 %v1496_v63, %s1598_s9  ;;  %v1385_v51 = vpack.c.bf16 %v639_v44, %v631_v31  ;;  %v1391_v52 = vpack.c.bf16 %v870_v45, %v862_v35  ;;  %v886_v53 = vcombine.high %v878_v46, %v878_v46  ;;  %v951_v60 = vrot.slane %v940_v54, %v1683_v10 }
  0x3a   : > { %v1386_v55 = vpack.c.bf16 %v638_v48, %v638_v48  ;;  %v1392_v56 = vpack.c.bf16 %v869_v49, %v869_v49  ;;  %v885_v57 = vrot.slane %v871_v50, %v1683_v10  ;;  %v944_v1 = vcombine.high %v940_v54, %v940_v54  ;;  %1105 = vmatprep.mubr.bf16.mxu0 %v1603_v15 }
  0x3b   : > { %v907_v58 = vrot.slane %v1391_v52, 5  ;;  %v1393_v59 = vpack.c.bf16 %v886_v53, %v878_v46  ;;  %v959_v4 = vcombine.high %v951_v60, %v951_v60  ;;  %v960_v6 = vcombine.high %v941_v61, %v941_v61  ;;  %1146 = vmatprep.mubr.bf16.mxu1 %v1603_v15  ;;  %1526 = vset.pattern.permute.xlu1 %v1603_v15 }
  0x3c   : > { %1502 = vrot.lane.b32.xlu0 %v1501_v5, %s1598_s9  ;;  %v908_v63 = vrot.slane %v1392_v56, 5  ;;  %v1394_v0 = vpack.c.bf16 %v885_v57, %v885_v57  ;;  %v967_v5 = vrot.slane %v941_v61, %v1683_v10  ;;  %v958_v8 = vrot.slane %v944_v1, %v1683_v10 }
  0x3d   : > { %1507 = vrot.lane.b32.xlu1 %v1506_v2, %s1598_s9  ;;  %v928_v3 = vrot.slane %v1393_v59, 5  ;;  %v1511_v9 = vpack.i.bf16 %v959_v4, %v951_v60  ;;  %v974_v11 = vrot.slane %v960_v6, %v1683_v10  ;;  %1527 = vset.pattern.permute.xlu0 %v1603_v15  ;;  %v1155_v10 = vld [vmem:[%s264_s26] sm:$0xf]  ;;  %vm1770_vm2 = vcmp.eq.s32.totalorder %v274_v16, 15 }
  0x3e   : > { %v929_v7 = vrot.slane %v1394_v0, 5  ;;  %v975_v2 = vcombine.high %v967_v5, %v967_v5  ;;  %v1516_v12 = vpack.i.bf16 %v967_v5, %v958_v8  ;;  %vm1776_vm4 = vcmp.eq.s32.totalorder %v281_v19, 15 }
  0x40   : > { %406 = vrot.lane.b32.xlu0 %v404_v17, %s1599_s10  ;;  %v1521_v14 = vpack.i.bf16 %v974_v11, %v975_v2 }
  0x41   : > { %408 = vrot.lane.b32.xlu1 %v405_v22, %s1599_s10 }
  0x44   : > { %428 = vrot.lane.b32.xlu0 %v426_v34, %s1599_s10 }
  0x45   : > { %430 = vrot.lane.b32.xlu1 %v427_v39, %s1599_s10 }
  0x48   : > { %660 = vrot.lane.b32.xlu0 %v1383_v43, %s1600_s11 }
  0x49   : > { %662 = vrot.lane.b32.xlu1 %v1384_v47, %s1600_s11 }
  0x4c   : > { %679 = vrot.lane.b32.xlu0 %v1385_v51, %s1600_s11 }
  0x4d   : > { %681 = vrot.lane.b32.xlu1 %v1386_v55, %s1600_s11 }
  0x50   : > { %909 = vrot.lane.b32.xlu0 %v907_v58, %s1601_s18 }
  0x51   : > { %911 = vrot.lane.b32.xlu1 %v908_v63, %s1601_s18 }
  0x54   : > { %930 = vrot.lane.b32.xlu0 %v928_v3, %s1601_s18 }
  0x55   : > { %932 = vrot.lane.b32.xlu1 %v929_v7, %s1601_s18 }
  0x58   : > { %1512 = vrot.lane.b32.xlu0 %v1511_v9, %s1602_s19 }
  0x59   : > { %1517 = vrot.lane.b32.xlu1 %v1516_v12, %s1602_s19 }
  0x5c   : > { %1522 = vrot.lane.b32.xlu0 %v1521_v14, %s1602_s19 }
  0x5d   : > { %1158 = vperm.xlu1 %1526, %v1155_v10  }
  0x9a   : > { %v1453_v17 = vpop.permute.xlu0 %1452 }
  0x9b   : > { %v1468_v20 = vpop.permute.xlu1 %1467  ;;  %v1455_v21 = vunpack.i.h.bf16 %v1453_v17  ;;  %v1454_v33 = vunpack.i.l.bf16 %v1453_v17 }
  0x9c   : > { %v1470_v23 = vunpack.i.h.bf16 %v1468_v20  ;;  %v1469_v24 = vunpack.i.l.bf16 %v1468_v20 }
  0x9e   : > { %v1458_v26 = vpop.permute.xlu0 %1457  ;;  %v493_v28 = vsel %vm490_vm3, %v1455_v21, %v1469_v24  ;;  %v494_v62 = vsel %vm490_vm3, %v1469_v24, %v1470_v23 }
  0x9f   : > { %v501_v16 = vsel %vm1770_vm2, 0.0, %v493_v28  ;;  %v502_v29 = vsel %vm1776_vm4, 0.0, %v494_v62  ;;  %v1473_v30 = vpop.permute.xlu1 %1472  ;;  %v1459_v19 = vunpack.i.l.bf16 %v1458_v26  ;;  %v1460_v39 = vunpack.i.h.bf16 %v1458_v26 }
  0xa0   : > { %v1380_v13 = vpack.c.bf16 %v502_v29, %v501_v16  ;;  %v1475_v31 = vunpack.i.h.bf16 %v1473_v30  ;;  %v1474_v32 = vunpack.i.l.bf16 %v1473_v30 }
  0xa2   : > { %v1463_v34 = vpop.permute.xlu0 %1462  ;;  %v520_v35 = vrot.slane %v1380_v13, 6  ;;  %v572_v36 = vsel %vm571_vm5, %v1474_v32, %v1475_v31  ;;  %v573_v37 = vsel %vm571_vm5, %v1475_v31, %v1459_v19 }
  0xa3   : > { %v1465_v38 = vunpack.i.h.bf16 %v1463_v34  ;;  %v580_v40 = vsel %vm1728_vm0, 0.0, %v572_v36  ;;  %v581_v41 = vsel %vm1734_vm1, 0.0, %v573_v37  ;;  %v1464_v42 = vunpack.i.l.bf16 %v1463_v34  ;;  %v1478_v43 = vpop.permute.xlu1 %1477 }
  0xa4   : > { %522 = vst [vmem:[#allocation2 + $0x8] sm:$0x44] %v520_v35  ;;  %v1381_v44 = vpack.c.bf16 %v581_v41, %v580_v40  ;;  %v1480_v46 = vunpack.i.h.bf16 %v1478_v43  ;;  %v1479_v47 = vunpack.i.l.bf16 %v1478_v43 }
  0xa5   : > { %v492_v45 = vsel %vm490_vm3, %v1465_v38, %v1454_v33  ;;  %v491_v48 = vsel %vm490_vm3, %v1464_v42, %v1465_v38 }
  0xa6   : > { %v500_v49 = vsel %vm1776_vm4, 0.0, %v492_v45  ;;  %v1483_v50 = vpop.permute.xlu0 %1482  ;;  %v593_v51 = vrot.slane %v1381_v44, 5  ;;  %v499_v52 = vsel %vm1770_vm2, 0.0, %v491_v48  ;;  %v574_v53 = vsel %vm571_vm5, %v1460_v39, %v1479_v47 }
  0xa7   : > { %v575_v54 = vsel %vm571_vm5, %v1479_v47, %v1480_v46  ;;  %v1379_v55 = vpack.c.bf16 %v500_v49, %v499_v52  ;;  %v582_v56 = vsel %vm1728_vm0, 0.0, %v574_v53  ;;  %v1485_v58 = vunpack.i.h.bf16 %v1483_v50  ;;  %v1488_v59 = vpop.permute.xlu1 %1487 }
  0xa8   : > { %v583_v57 = vsel %vm1734_vm1, 0.0, %v575_v54  ;;  %595 = vst [vmem:[#allocation2] sm:$0x88] %v593_v51  ;;  %v1484_v61 = vunpack.i.l.bf16 %v1483_v50  ;;  %v1489_v63 = vunpack.i.l.bf16 %v1488_v59  ;;  %v1490_v1 = vunpack.i.h.bf16 %v1488_v59 }
  0xa9   : > { %v1382_v60 = vpack.c.bf16 %v583_v57, %v582_v56  ;;  %v512_v0 = vrot.slane %v1379_v55, 6 }
  0xaa   : > { %v1493_v3 = vpop.permute.xlu0 %1492  ;;  %v738_v5 = vsel %vm737_vm6, %v1484_v61, %v1485_v58  ;;  %v739_v6 = vsel %vm737_vm6, %v1485_v58, %v1489_v63 }
  0xab   : > { %v601_v4 = vrot.slane %v1382_v60, 5  ;;  %v1495_v7 = vunpack.i.h.bf16 %v1493_v3  ;;  %514 = vst [vmem:[#allocation2] sm:$0x44] %v512_v0  ;;  %v746_v8 = vsel %vm1770_vm2, 0.0, %v738_v5  ;;  %v747_v9 = vsel %vm1776_vm4, 0.0, %v739_v6  ;;  %v1498_v2 = vpop.permute.xlu1 %1497 }
  0xac   : > { %v1494_v11 = vunpack.i.l.bf16 %v1493_v3  ;;  %v1387_v12 = vpack.c.bf16 %v747_v9, %v746_v8  ;;  %v1500_v14 = vunpack.i.h.bf16 %v1498_v2  ;;  %v1499_v15 = vunpack.i.l.bf16 %v1498_v2 }
  0xad   : > { %603 = vst [vmem:[#allocation2 + $0x8] sm:$0x88] %v601_v4 }
  0xae   : > { %v740_v10 = vsel %vm737_vm6, %v1490_v1, %v1494_v11  ;;  %v741_v17 = vsel %vm737_vm6, %v1494_v11, %v1495_v7  ;;  %v1503_v20 = vpop.permute.xlu0 %1502  ;;  %v759_v21 = vrot.slane %v1387_v12, 7  ;;  %v819_v26 = vsel %vm818_vm7, %v1499_v15, %v1500_v14 }
  0xaf   : > { %v748_v23 = vsel %vm1770_vm2, 0.0, %v740_v10  ;;  %v749_v24 = vsel %vm1776_vm4, 0.0, %v741_v17  ;;  %v1504_v62 = vunpack.i.l.bf16 %v1503_v20  ;;  %v1508_v16 = vpop.permute.xlu1 %1507  ;;  %v827_v29 = vsel %vm1728_vm0, 0.0, %v819_v26 }
  0xb0   : > { %v1388_v28 = vpack.c.bf16 %v749_v24, %v748_v23  ;;  %761 = vst [vmem:[#allocation2 + $0x10] sm:$0x22] %v759_v21  ;;  %v1505_v30 = vunpack.i.h.bf16 %v1503_v20  ;;  %v1510_v13 = vunpack.i.h.bf16 %v1508_v16  ;;  %v1509_v19 = vunpack.i.l.bf16 %v1508_v16 }
  0xb1   : > { %v820_v32 = vsel %vm818_vm7, %v1500_v14, %v1504_v62 }
  0xb2   : > { %v767_v31 = vrot.slane %v1388_v28, 7  ;;  %v407_v33 = vpop.permute.xlu0 %406  ;;  %v828_v34 = vsel %vm1734_vm1, 0.0, %v820_v32  ;;  %v821_v35 = vsel %vm818_vm7, %v1505_v30, %v1509_v19  ;;  %v822_v36 = vsel %vm818_vm7, %v1509_v19, %v1510_v13 }
  0xb3   : > { %v1389_v37 = vpack.c.bf16 %v828_v34, %v827_v29  ;;  %v829_v38 = vsel %vm1728_vm0, 0.0, %v821_v35  ;;  %v830_v39 = vsel %vm1734_vm1, 0.0, %v822_v36  ;;  %v409_v40 = vpop.permute.xlu1 %408  ;;  %v410_v42 = vrot.slane %v407_v33, 4 }
  0xb4   : > { %769 = vst [vmem:[#allocation2 + $0x18] sm:$0x22] %v767_v31  ;;  %v1390_v41 = vpack.c.bf16 %v830_v39, %v829_v38  ;;  %v411_v43 = vrot.slane %v409_v40, 4 }
  0xb5   : > { %v840_v44 = vrot.slane %v1389_v37, 6 }
  0xb6   : > { %v429_v45 = vpop.permute.xlu0 %428  ;;  %v848_v46 = vrot.slane %v1390_v41, 6  ;;  %v413_v47 = vsel %vm412_vm8, %v410_v42, %v411_v43 }
  0xb7   : > { %842 = vst [vmem:[#allocation2 + $0x10] sm:$0x44] %v840_v44  ;;  %v415_v48 = vsel %vm414_vm9, %v407_v33, %v413_v47  ;;  %v431_v49 = vpop.permute.xlu1 %430  ;;  %v432_v25 = vrot.slane %v429_v45, 4  ;;  %v1019_v44 = vld [vmem:[%s260_s4] sm:$0x3] }
  0xb8   : > { %850 = vst [vmem:[#allocation2 + $0x18] sm:$0x44] %v848_v46  ;;  %417 = vst [vmem:[#allocation2] sm:$0x22] %v415_v48  ;;  %v433_v50 = vrot.slane %v431_v49, 4 }
  0xba   : > { %v661_v27 = vpop.permute.xlu0 %660  ;;  %v434_v51 = vsel %vm412_vm8, %v432_v25, %v433_v50 }
  0xbb   : > { %v435_v52 = vsel %vm414_vm9, %v429_v45, %v434_v51  ;;  %v663_v53 = vpop.permute.xlu1 %662  ;;  %v664_v54 = vrot.slane %v661_v27, 4 }
  0xbc   : > { %437 = vst [vmem:[#allocation2 + $0x8] sm:$0x22] %v435_v52  ;;  %v665_v55 = vrot.slane %v663_v53, 4 }
  0xbe   : > { %v680_v56 = vpop.permute.xlu0 %679  ;;  %v666_v57 = vsel %vm412_vm8, %v664_v54, %v665_v55 }
  0xbf   : > { %v668_v58 = vsel %vm667_vm10, %v661_v27, %v666_v57  ;;  %v682_v59 = vpop.permute.xlu1 %681  ;;  %v683_v60 = vrot.slane %v680_v56, 4 }
  0xc0   : > { %670 = vst [vmem:[#allocation2 + $0x10] sm:$0x11] %v668_v58  ;;  %v684_v61 = vrot.slane %v682_v59, 4 }
  0xc2   : > { %v910_v63 = vpop.permute.xlu0 %909  ;;  %v685_v0 = vsel %vm412_vm8, %v683_v60, %v684_v61 }
  0xc3   : > { %v686_v1 = vsel %vm667_vm10, %v680_v56, %v685_v0  ;;  %v912_v3 = vpop.permute.xlu1 %911  ;;  %v913_v4 = vrot.slane %v910_v63, 4 }
  0xc4   : > { %688 = vst [vmem:[#allocation2 + $0x18] sm:$0x11] %v686_v1  ;;  %v914_v5 = vrot.slane %v912_v3, 4 }
  0xc6   : > { %v931_v6 = vpop.permute.xlu0 %930  ;;  %v915_v7 = vsel %vm412_vm8, %v913_v4, %v914_v5 }
  0xc7   : > { %v917_v8 = vsel %vm916_vm11, %v910_v63, %v915_v7  ;;  %v933_v9 = vpop.permute.xlu1 %932  ;;  %v934_v11 = vrot.slane %v931_v6, 4 }
  0xc8   : > { %919 = vst [vmem:[#allocation2 + $0x10] sm:$0x88] %v917_v8  ;;  %v935_v2 = vrot.slane %v933_v9, 4 }
  0xca   : > { %v1513_v12 = vpop.permute.xlu0 %1512  ;;  %v936_v14 = vsel %vm412_vm8, %v934_v11, %v935_v2 }
  0xcb   : > { %v1515_v15 = vunpack.i.h.bf16 %v1513_v12  ;;  %v1514_v10 = vunpack.i.l.bf16 %v1513_v12  ;;  %v937_v17 = vsel %vm916_vm11, %v931_v6, %v936_v14  ;;  %v1518_v20 = vpop.permute.xlu1 %1517 }
  0xcc   : > { %939 = vst [vmem:[#allocation2 + $0x18] sm:$0x88] %v937_v17  ;;  %v1520_v23 = vunpack.i.h.bf16 %v1518_v20  ;;  %v1519_v24 = vunpack.i.l.bf16 %v1518_v20 }
  0xcd   : > { %v989_v21 = vsel %vm988_vm12, %v1514_v10, %v1515_v15 }
  0xce   : > { %v1523_v26 = vpop.permute.xlu0 %1522  ;;  %v997_v28 = vsel %vm1770_vm2, 0.0, %v989_v21  ;;  %v990_v62 = vsel %vm988_vm12, %v1515_v15, %v1519_v24 }
  0xcf   : > { %v1525_v16 = vunpack.i.h.bf16 %v1523_v26  ;;  %v1524_v29 = vunpack.i.l.bf16 %v1523_v26  ;;  %v998_v30 = vsel %vm1776_vm4, 0.0, %v990_v62  ;;  %v1544_v13 = vld [vmem:[#allocation2 + $0x4] ss:$16 sps:$4 sm:$0xff]   ;;  %v1546_v19 = vld [vmem:[#allocation2] ss:$16 sps:$4 sm:$0xff]  }
  0xd0   : > { %v1395_v31 = vpack.c.bf16 %v998_v30, %v997_v28  ;;  %1073 = vmatprep.subr.bf16.mxu0 %v1544_v13 }
  0xd1   : > { %v991_v32 = vsel %vm988_vm12, %v1520_v23, %v1524_v29  ;;  %v992_v33 = vsel %vm988_vm12, %v1524_v29, %v1525_v16  ;;  %1074 = vmatpush1.bf16.msra.mxu0 %v1546_v19 }
  0xd2   : > { %v999_v34 = vsel %vm1770_vm2, 0.0, %v991_v32  ;;  %v1000_v35 = vsel %vm1776_vm4, 0.0, %v992_v33  ;;  %1011 = vst [vmem:[#allocation2 + $0x20] sm:$0x11] %v1395_v31 }
  0xd3   : > { %v1396_v36 = vpack.c.bf16 %v1000_v35, %v999_v34  ;;  %v1547_v37 = vld [vmem:[#allocation2 + $0xc] ss:$16 sps:$4 sm:$0xff]   ;;  %v1549_v38 = vld [vmem:[#allocation2 + $0x8] ss:$16 sps:$4 sm:$0xff]  }
  0xd4   : > { %1114 = vmatprep.subr.bf16.mxu1 %v1547_v37 }
  0xd5   : > { %1018 = vst [vmem:[#allocation2 + $0x28] sm:$0x11] %v1396_v36  ;;  %1115 = vmatpush1.bf16.msra.mxu1 %v1549_v38 }
  0xd9   : > { %v1024_v39 = vld [vmem:[#allocation2 + $0x20] sm:$0x11] }
  0xda   : > { %v1360_v40 = vcombine.high %v1024_v39, %v1024_v39  ;;  %v1359_v41 = vcombine.low %v1024_v39, %v1024_v39 }
  0xdc   : > { %v1025_v18 = vld [vmem:[#allocation2 + $0x28] sm:$0x11]  ;;  %1363 = vmatprep.subr.msk.bf16.mxu0 %vm1060_vm13, %v1360_v40  ;;  %v1062_v22 = vsel %vm1060_vm13, %v1359_v41, 0  ;;  %v1159_v46 = vpop.permute.xlu1 %1158 }
  0xdd   : > { %v1362_v42 = vcombine.high %v1025_v18, %v1025_v18  ;;  %v1361_v43 = vcombine.low %v1025_v18, %v1025_v18  ;;  %1076 = vmatpush1.bf16.msra.mxu0 %v1062_v22 }
  0xdf   : > { %1365 = vmatprep.subr.msk.bf16.mxu1 %vm1060_vm13, %v1362_v42  ;;  %v1068_v45 = vsel %vm1060_vm13, %v1361_v43, 0 }
  0xe0   : > { %1117 = vmatpush1.bf16.msra.mxu1 %v1068_v45  ;;  %1364 = vmatmul.mubr.msk.bf16.vlgmr.msra.gmra.mrb[0].mxu0 %vm1056_vm14, %v1019_v44 }
  0xe3   : > { %1366 = vmatmul.mubr.msk.bf16.vlgmr.msra.gmra.mrb[0].mxu1 %vm1056_vm14, %v1019_v44 }
 0x1b3   : > { %v1107_v47 = vpop.f32.mrb[0].mxu0 }
 0x1b4   : > { %v1109_v48 = vpop.f32.mrb[1].mxu0  ;;  %v1161_v49 = vadd.f32 %v1159_v46, %v1107_v47 }
 0x1b5   : > { %v1162_v25 = vadd.f32 %v1159_v46, %v1109_v48  ;;  %v1111_v50 = vpop.f32.mrb[2].mxu0 }
 0x1b6   : > { %v1148_v27 = vpop.f32.mrb[0].mxu1  ;;  %v1112_v52 = vpop.f32.mrb[3].mxu0  ;;  %1182 = sbr.rel (!%p1659_p6) target bundleno = 453 (0x1c5), region = 77 }
 0x1b7   : > { %v1168_v51 = vadd.f32 %v1159_v46, %v1148_v27  ;;  %v1150_v53 = vpop.f32.mrb[1].mxu1  ;;  %v1165_v54 = vcombine.low %v1161_v49, %v1162_v25 }
 0x1b8   : > { %v1169_v55 = vadd.f32 %v1159_v46, %v1150_v53  ;;  %v1152_v56 = vpop.f32.mrb[2].mxu1 }
 0x1b9   : > { %v1153_v57 = vpop.f32.mrb[3].mxu1  ;;  %1167 = vst [vmem:[%s255_s6] sm:$0xff] %v1165_v54 }
 0x1ba   : > { %v1172_v58 = vcombine.low %v1168_v51, %v1169_v55 }
 0x1bc   : > { %1367 = vst [vmem:[%s255_s6 + $0x8] sm:$0xff] %v1172_v58 }
 0x1c0   : > { %v1218_v59 = vld [vmem:[%s255_s6] sm:$0xff] }
 0x1c1   : > { %1219 = vst [vmem:[%s1188_s8] sm:$0xff] %v1218_v59 }
 0x1c3   : > { %v1220_v60 = vld [vmem:[%s255_s6 + $0x8] sm:$0xff] }
 0x1c4   : > { %1221 = vst [vmem:[%s1188_s8 + $0x10] sm:$0xff] %v1220_v60 }
 0x1c5 PF: > { %s13_s16 = sadd.s32 1, %s1592_s16   ;;  %s1886_s12 = smov %s1580_s13 }
 0x1c6   : > { %p10_p12 = scmp.ge.s32.totalorder %s13_s16, 4   ;;  %s1887_s13 = smov %s1664_s22 }
 0x1c7   : > { %s1888_s14 = smov %s1588_s15  ;;  %s1889_s15 = smov %s1891_s17 }
 0x1c8   :  { %12 = sbr.rel (!%p10_p12) target bundleno = 3 (0x3), region = 153 }

</bundles_post_ra>
